<compile_context>
chip_gen: v7x
topology: tpu7x:2x2x1
jax: 0.10.0
libtpu: 0.0.40
codegen_flags: <defaults>
</compile_context>

<pallas_src>
import functools
import math

import jax
import jax.numpy as jnp
from jax.experimental import pallas as pl
from jax.experimental.pallas import tpu as pltpu


# ------------------------------- helpers ------------------------------------

def _pick_tile(dim, preferred, step):
    """Largest tile <= preferred that divides dim (multiple of step), else dim."""
    if dim <= preferred:
        return dim
    t = (preferred // step) * step
    while t > step and dim % t != 0:
        t -= step
    return t if (t > 0 and dim % t == 0) else dim


# --------------------------- tiled linear kernel -----------------------------

def _linear_kernel(x_ref, w_ref, b_ref, o_ref, acc_ref, *, activation):
    # x: (tm, tk) bf16, w: (tk, tn) bf16, b: (1, tn) f32 -> o: (tm, tn)
    @pl.when(pl.program_id(2) == 0)
    def _():
        acc_ref[...] = jnp.zeros_like(acc_ref)

    acc_ref[...] += jnp.dot(x_ref[...], w_ref[...],
                            preferred_element_type=jnp.float32)

    @pl.when(pl.program_id(2) == pl.num_programs(2) - 1)
    def _():
        y = acc_ref[...] + b_ref[...]
        if activation == "relu":
            y = jnp.maximum(y, 0.0)
        elif activation == "gelu":
            # tanh-approx GELU: the tanh lands on the (otherwise idle) EUP slot.
            y = 0.5 * y * (1.0 + jnp.tanh(0.7978845608028654 *
                                          (y + 0.044715 * y * y * y)))
        o_ref[...] = y.astype(o_ref.dtype)


def linear(x, w, b, activation="none", out_dtype=jnp.bfloat16):
    M, K = x.shape
    N = w.shape[1]
    tm = _pick_tile(M, 256, 8)
    tk = _pick_tile(K, 256, 128)
    tn = _pick_tile(N, 256, 128)
    grid = (M // tm, N // tn, K // tk)
    return pl.pallas_call(
        functools.partial(_linear_kernel, activation=activation),
        out_shape=jax.ShapeDtypeStruct((M, N), out_dtype),
        grid=grid,
        in_specs=[pl.BlockSpec((tm, tk), lambda i, j, k: (i, k)),
                  pl.BlockSpec((tk, tn), lambda i, j, k: (k, j)),
                  pl.BlockSpec((1, tn), lambda i, j, k: (0, j))],
        out_specs=pl.BlockSpec((tm, tn), lambda i, j, k: (i, j)),
        scratch_shapes=[pltpu.VMEM((tm, tn), jnp.float32)],
        compiler_params=pltpu.CompilerParams(
            dimension_semantics=("parallel", "parallel", "arbitrary")),
    )(x, w, b.reshape(1, N).astype(jnp.float32))


# ---------------------- fused residual + LayerNorm ---------------------------

def _ln_kernel(*refs, eps, has_residual):
    if has_residual:
        x_ref, r_ref, g_ref, b_ref, o_ref = refs
        x = x_ref[...].astype(jnp.float32) + r_ref[...].astype(jnp.float32)
    else:
        x_ref, g_ref, b_ref, o_ref = refs
        x = x_ref[...].astype(jnp.float32)
    mean = jnp.mean(x, axis=-1, keepdims=True)
    xc = x - mean
    var = jnp.mean(xc * xc, axis=-1, keepdims=True)
    inv = jax.lax.rsqrt(var + eps)
    o_ref[...] = (xc * inv * g_ref[...] + b_ref[...]).astype(o_ref.dtype)


def layernorm(x, gamma, beta, residual=None, eps=1e-12, out_dtype=jnp.bfloat16):
    M, H = x.shape
    tm = _pick_tile(M, 256, 8)
    grid = (M // tm,)
    row_spec = pl.BlockSpec((tm, H), lambda i: (i, 0))
    vec_spec = pl.BlockSpec((1, H), lambda i: (0, 0))
    has_res = residual is not None
    in_specs = [row_spec] + ([row_spec] if has_res else []) + [vec_spec, vec_spec]
    args = ((x, residual) if has_res else (x,)) + (
        gamma.reshape(1, H).astype(jnp.float32),
        beta.reshape(1, H).astype(jnp.float32))
    return pl.pallas_call(
        functools.partial(_ln_kernel, eps=eps, has_residual=has_res),
        out_shape=jax.ShapeDtypeStruct((M, H), out_dtype),
        grid=grid,
        in_specs=in_specs,
        out_specs=row_spec,
        compiler_params=pltpu.CompilerParams(dimension_semantics=("parallel",)),
    )(*args)


# ------------------------------ attention ------------------------------------

def _attention_kernel(q_ref, k_ref, v_ref, m_ref, o_ref, *, scale, heads, dh):
    m = m_ref[0]                                           # (1, S) additive mask
    outs = []
    for h in range(heads):                                 # unrolled static loop
        sl = slice(h * dh, (h + 1) * dh)
        q = q_ref[:, sl]                                   # (S, dh) bf16
        k = k_ref[:, sl]
        v = v_ref[:, sl]
        # q @ k^T via dot_general contracting the dh axes (no transpose copy).
        s = jax.lax.dot_general(q, k, (((1,), (1,)), ((), ())),
                                preferred_element_type=jnp.float32) * scale
        s = s + m
        s = s - jnp.max(s, axis=-1, keepdims=True)         # stable softmax
        p = jnp.exp(s)
        p = p * pl.reciprocal(jnp.sum(p, axis=-1, keepdims=True), approx=True)
        outs.append(jnp.dot(p.astype(v.dtype), v,
                            preferred_element_type=jnp.float32))
    o_ref[...] = jnp.concatenate(outs, axis=-1).astype(o_ref.dtype)


def attention(qkv, add_mask, *, batch, seq, n_heads, dh):
    # qkv: [B*S, 3H] with columns laid out as [Q | K | V]; add_mask: [B, 1, S].
    # Output: [B*S, H] in the same token-major layout (no head merge transpose).
    H = n_heads * dh
    hpb = max(1, 128 // dh)                 # heads per grid step -> 128-lane tiles
    assert n_heads % hpb == 0
    width = hpb * dh
    cpm = H // width                        # column blocks per Q/K/V matrix
    scale = 1.0 / math.sqrt(dh)

    q_spec = pl.BlockSpec((seq, width), lambda b, c: (b, c))
    k_spec = pl.BlockSpec((seq, width), lambda b, c: (b, cpm + c))
    v_spec = pl.BlockSpec((seq, width), lambda b, c: (b, 2 * cpm + c))
    m_spec = pl.BlockSpec((1, 1, seq), lambda b, c: (b, 0, 0))
    o_spec = pl.BlockSpec((seq, width), lambda b, c: (b, c))

    return pl.pallas_call(
        functools.partial(_attention_kernel, scale=scale, heads=hpb, dh=dh),
        out_shape=jax.ShapeDtypeStruct((batch * seq, H), jnp.bfloat16),
        grid=(batch, cpm),
        in_specs=[q_spec, k_spec, v_spec, m_spec],
        out_specs=o_spec,
        compiler_params=pltpu.CompilerParams(
            dimension_semantics=("parallel", "parallel")),
    )(qkv, qkv, qkv, add_mask)


# ------------------------------- model glue ----------------------------------

def init_params(key, *, vocab, max_pos, type_vocab, hidden, n_layers,
                intermediate, label_num):
    std = 0.02
    keys = iter(jax.random.split(key, 16 + 4 * n_layers))

    def nrm(shape, dtype=jnp.bfloat16):
        return (std * jax.random.normal(next(keys), shape, jnp.float32)).astype(dtype)

    zeros = lambda n: jnp.zeros((n,), jnp.float32)
    ones = lambda n: jnp.ones((n,), jnp.float32)

    pad_labels = ((label_num + 127) // 128) * 128      # lane-dense classifier out
    w2 = std * jax.random.normal(next(keys), (hidden, label_num), jnp.float32)
    cls_w2 = jnp.zeros((hidden, pad_labels), jnp.float32)
    cls_w2 = cls_w2.at[:, :label_num].set(w2).astype(jnp.bfloat16)

    params = {
        "word_emb": nrm((vocab, hidden), jnp.float32),
        "pos_emb": nrm((max_pos, hidden), jnp.float32),
        "type_emb": nrm((type_vocab, hidden), jnp.float32),
        "emb_ln_g": ones(hidden), "emb_ln_b": zeros(hidden),
        "layers": [],
        # classifier = Linear(768,768) -> ReLU -> Linear(768,label_num)
        "cls_w1": nrm((hidden, hidden)), "cls_b1": zeros(hidden),
        "cls_w2": cls_w2, "cls_b2": zeros(pad_labels),
    }
    for _ in range(n_layers):
        params["layers"].append({
            # fused Q|K|V projection
            "w_qkv": nrm((hidden, 3 * hidden)), "b_qkv": zeros(3 * hidden),
            "wo": nrm((hidden, hidden)), "bo": zeros(hidden),
            "ln1_g": ones(hidden), "ln1_b": zeros(hidden),
            "w1": nrm((hidden, intermediate)), "b1": zeros(intermediate),
            "w2": nrm((intermediate, hidden)), "b2": zeros(hidden),
            "ln2_g": ones(hidden), "ln2_b": zeros(hidden),
        })
    return params


@functools.partial(jax.jit, static_argnames=("n_heads", "label_num"))
def bert_ner_forward(params, input_ids, token_type_ids, attention_masks, *,
                     n_heads, label_num):
    B, S = input_ids.shape
    H = params["word_emb"].shape[1]
    dh = H // n_heads

    # --- embeddings (gathers are glue) ---
    x = (params["word_emb"][input_ids]
         + params["pos_emb"][:S][None, :, :]
         + params["type_emb"][token_type_ids]).reshape(B * S, H)
    x = layernorm(x, params["emb_ln_g"], params["emb_ln_b"])        # bf16 [B*S, H]

    # additive attention mask: 0 for keep, -1e9 for padding (f32, applied to f32 scores)
    add_mask = ((1.0 - attention_masks.astype(jnp.float32)) * -1e9).reshape(B, 1, S)

    # --- transformer encoder layers ---
    for layer in params["layers"]:
        qkv = linear(x, layer["w_qkv"], layer["b_qkv"])             # [B*S, 3H] bf16
        ctx = attention(qkv, add_mask, batch=B, seq=S, n_heads=n_heads, dh=dh)
        attn_out = linear(ctx, layer["wo"], layer["bo"])
        x = layernorm(x, layer["ln1_g"], layer["ln1_b"], residual=attn_out)

        ff = linear(x, layer["w1"], layer["b1"], activation="gelu")
        ff = linear(ff, layer["w2"], layer["b2"])
        x = layernorm(x, layer["ln2_g"], layer["ln2_b"], residual=ff)

    # --- classifier head on last_hidden_state ---
    h = linear(x, params["cls_w1"], params["cls_b1"], activation="relu")
    logits_p = linear(h, params["cls_w2"], params["cls_b2"], out_dtype=jnp.float32)
    return logits_p[:, :label_num].reshape(B, S, label_num)


# ---------------------------------- main --------------------------------------

if __name__ == "__main__":
    B, S = 2, 8
    HIDDEN, N_HEADS, INTER = 768, 12, 3072
    N_LAYERS = 2              # scaled-down synthetic config (bert-base has 12)
    VOCAB, MAX_POS, TYPE_VOCAB, LABELS = 128, 512, 2, 9

    key = jax.random.PRNGKey(0)
    k_params, k_ids = jax.random.split(key)

    params = init_params(k_params, vocab=VOCAB, max_pos=MAX_POS,
                         type_vocab=TYPE_VOCAB, hidden=HIDDEN,
                         n_layers=N_LAYERS, intermediate=INTER,
                         label_num=LABELS)

    input_ids = jax.random.randint(k_ids, (B, S), 0, VOCAB, dtype=jnp.int32)
    token_type_ids = jnp.zeros((B, S), jnp.int32)
    attention_masks = jnp.ones((B, S), jnp.int32).at[1, 6:].set(0)   # pad tail of row 1

    logits = bert_ner_forward(params, input_ids, token_type_ids, attention_masks,
                              n_heads=N_HEADS, label_num=LABELS)
    jax.block_until_ready(logits)

    assert logits.shape == (B, S, LABELS), logits.shape
    assert logits.dtype == jnp.float32
    assert bool(jnp.all(jnp.isfinite(logits)))
    print("KERNEL_OK")
</pallas_src>

<mosaic_0001>
module attributes {stable_mosaic.version = 11 : i64} {
  func.func @_ln_kernel(%arg0: i32, %arg1: memref<16x768xf32, #tpu.memory_space<vmem>>, %arg2: memref<1x768xf32, #tpu.memory_space<vmem>>, %arg3: memref<1x768xf32, #tpu.memory_space<vmem>>, %arg4: memref<16x768xbf16, #tpu.memory_space<vmem>>) attributes {dimension_semantics = [#tpu.dimension_semantics<parallel>], iteration_bounds = array<i64: 1>, scalar_prefetch = 0 : i64, scratch_operands = 0 : i64, tpu.core_type = #tpu.core_type<tc>, window_params = [{transform_indices = @transform_0, window_bounds = array<i64: 16, 768>}, {pipeline_mode = #tpu.pipeline_mode<synchronous>, transform_indices = @transform_1, window_bounds = array<i64: 1, 768>}, {pipeline_mode = #tpu.pipeline_mode<synchronous>, transform_indices = @transform_2, window_bounds = array<i64: 1, 768>}, {transform_indices = @transform_3, window_bounds = array<i64: 16, 768>}]} {
    %c0 = arith.constant 0 : index
    %c0_0 = arith.constant 0 : index
    %0 = vector.load %arg1[%c0, %c0_0] : memref<16x768xf32, #tpu.memory_space<vmem>>, vector<16x768xf32>
    %cst = arith.constant dense<0.000000e+00> : vector<16xf32>
    %1 = vector.multi_reduction <add>, %0, %cst [1] : vector<16x768xf32> to vector<16xf32>
    %2 = vector.shape_cast %1 : vector<16xf32> to vector<16x1xf32>
    %cst_1 = arith.constant 7.680000e+02 : f32
    %3 = vector.broadcast %cst_1 : f32 to vector<16x1xf32>
    %4 = arith.divf %2, %3 : vector<16x1xf32>
    %5 = vector.broadcast %4 : vector<16x1xf32> to vector<16x768xf32>
    %6 = arith.subf %0, %5 : vector<16x768xf32>
    %7 = arith.mulf %6, %6 : vector<16x768xf32>
    %cst_2 = arith.constant dense<0.000000e+00> : vector<16xf32>
    %8 = vector.multi_reduction <add>, %7, %cst_2 [1] : vector<16x768xf32> to vector<16xf32>
    %9 = vector.shape_cast %8 : vector<16xf32> to vector<16x1xf32>
    %cst_3 = arith.constant 7.680000e+02 : f32
    %10 = vector.broadcast %cst_3 : f32 to vector<16x1xf32>
    %11 = arith.divf %9, %10 : vector<16x1xf32>
    %cst_4 = arith.constant 9.99999996E-13 : f32
    %12 = vector.broadcast %cst_4 : f32 to vector<16x1xf32>
    %13 = arith.addf %11, %12 : vector<16x1xf32>
    %14 = math.rsqrt %13 : vector<16x1xf32>
    %15 = vector.broadcast %14 : vector<16x1xf32> to vector<16x768xf32>
    %16 = arith.mulf %6, %15 : vector<16x768xf32>
    %c0_5 = arith.constant 0 : index
    %c0_6 = arith.constant 0 : index
    %17 = vector.load %arg2[%c0_5, %c0_6] : memref<1x768xf32, #tpu.memory_space<vmem>>, vector<1x768xf32>
    %18 = vector.broadcast %17 : vector<1x768xf32> to vector<16x768xf32>
    %19 = arith.mulf %16, %18 : vector<16x768xf32>
    %c0_7 = arith.constant 0 : index
    %c0_8 = arith.constant 0 : index
    %20 = vector.load %arg3[%c0_7, %c0_8] : memref<1x768xf32, #tpu.memory_space<vmem>>, vector<1x768xf32>
    %21 = vector.broadcast %20 : vector<1x768xf32> to vector<16x768xf32>
    %22 = arith.addf %19, %21 : vector<16x768xf32>
    %23 = arith.truncf %22 : vector<16x768xf32> to vector<16x768xbf16>
    %c0_9 = arith.constant 0 : index
    %c0_10 = arith.constant 0 : index
    %24 = vector.load %arg4[%c0_9, %c0_10] : memref<16x768xbf16, #tpu.memory_space<vmem>>, vector<16x768xbf16>
    tpu.vector_store %arg4[%c0_9, %c0_10], %23 {strides = array<i32>} : memref<16x768xbf16, #tpu.memory_space<vmem>>, vector<16x768xbf16>,
    return
  }
  func.func @transform_0(%arg0: i32) -> (i32, i32) {
    %c0_i32 = arith.constant 0 : i32
    %c0_i32_0 = arith.constant 0 : i32
    return %arg0, %c0_i32 : i32, i32
  }
  func.func @transform_1(%arg0: i32) -> (i32, i32) {
    %c0_i32 = arith.constant 0 : i32
    %c0_i32_0 = arith.constant 0 : i32
    %c0_i32_1 = arith.constant 0 : i32
    return %c0_i32, %c0_i32_0 : i32, i32
  }
  func.func @transform_2(%arg0: i32) -> (i32, i32) {
    %c0_i32 = arith.constant 0 : i32
    %c0_i32_0 = arith.constant 0 : i32
    %c0_i32_1 = arith.constant 0 : i32
    return %c0_i32, %c0_i32_0 : i32, i32
  }
  func.func @transform_3(%arg0: i32) -> (i32, i32) {
    %c0_i32 = arith.constant 0 : i32
    %c0_i32_0 = arith.constant 0 : i32
    return %arg0, %c0_i32 : i32, i32
  }
}

module attributes {stable_mosaic.version = 11 : i64} {
  func.func @_linear_kernel(%arg0: i32, %arg1: i32, %arg2: i32, %arg3: memref<16x256xbf16, #tpu.memory_space<vmem>>, %arg4: memref<256x256xbf16, #tpu.memory_space<vmem>>, %arg5: memref<1x256xf32, #tpu.memory_space<vmem>>, %arg6: memref<16x256xbf16, #tpu.memory_space<vmem>>, %arg7: memref<16x256xf32, #tpu.memory_space<vmem>>) attributes {dimension_semantics = [#tpu.dimension_semantics<parallel>, #tpu.dimension_semantics<parallel>, #tpu.dimension_semantics<arbitrary>], iteration_bounds = array<i64: 1, 9, 3>, scalar_prefetch = 0 : i64, scratch_operands = 1 : i64, tpu.core_type = #tpu.core_type<tc>, window_params = [{transform_indices = @transform_0, window_bounds = array<i64: 16, 256>}, {transform_indices = @transform_1, window_bounds = array<i64: 256, 256>}, {transform_indices = @transform_2, window_bounds = array<i64: 1, 256>}, {transform_indices = @transform_3, window_bounds = array<i64: 16, 256>}]} {
    %c0_i32 = arith.constant 0 : i32
    %0 = arith.cmpi eq, %arg2, %c0_i32 : i32
    %1 = arith.extui %0 : i1 to i32
    %c0_i32_0 = arith.constant 0 : i32
    %2 = arith.cmpi ne, %1, %c0_i32_0 : i32
    scf.if %2 {
      %cst_9 = arith.constant 0.000000e+00 : f32
      %12 = vector.broadcast %cst_9 : f32 to vector<16x256xf32>
      %c0_10 = arith.constant 0 : index
      %c0_11 = arith.constant 0 : index
      %13 = vector.load %arg7[%c0_10, %c0_11] : memref<16x256xf32, #tpu.memory_space<vmem>>, vector<16x256xf32>
      tpu.vector_store %arg7[%c0_10, %c0_11], %12 {strides = array<i32>} : memref<16x256xf32, #tpu.memory_space<vmem>>, vector<16x256xf32>,
    } else {
    }
    %c0 = arith.constant 0 : index
    %c0_1 = arith.constant 0 : index
    %3 = vector.load %arg7[%c0, %c0_1] : memref<16x256xf32, #tpu.memory_space<vmem>>, vector<16x256xf32>
    %c0_2 = arith.constant 0 : index
    %c0_3 = arith.constant 0 : index
    %4 = vector.load %arg3[%c0_2, %c0_3] : memref<16x256xbf16, #tpu.memory_space<vmem>>, vector<16x256xbf16>
    %c0_4 = arith.constant 0 : index
    %c0_5 = arith.constant 0 : index
    %5 = vector.load %arg4[%c0_4, %c0_5] : memref<256x256xbf16, #tpu.memory_space<vmem>>, vector<256x256xbf16>
    %cst = arith.constant dense<0.000000e+00> : vector<16x256xf32>
    %6 = tpu.matmul %4, %5, %cst {dimension_numbers = #tpu.dot_dimension_numbers<[1], [0], [0], [1], [0, 0, 1, 1], [], []>} : vector<16x256xbf16>, vector<256x256xbf16>, vector<16x256xf32> -> vector<16x256xf32>
    %7 = arith.addf %3, %6 : vector<16x256xf32>
    %c0_6 = arith.constant 0 : index
    %c0_7 = arith.constant 0 : index
    %8 = vector.load %arg7[%c0_6, %c0_7] : memref<16x256xf32, #tpu.memory_space<vmem>>, vector<16x256xf32>
    tpu.vector_store %arg7[%c0_6, %c0_7], %7 {strides = array<i32>} : memref<16x256xf32, #tpu.memory_space<vmem>>, vector<16x256xf32>,
    %c2_i32 = arith.constant 2 : i32
    %9 = arith.cmpi eq, %arg2, %c2_i32 : i32
    %10 = arith.extui %9 : i1 to i32
    %c0_i32_8 = arith.constant 0 : i32
    %11 = arith.cmpi ne, %10, %c0_i32_8 : i32
    scf.if %11 {
      %c0_9 = arith.constant 0 : index
      %c0_10 = arith.constant 0 : index
      %12 = vector.load %arg7[%c0_9, %c0_10] : memref<16x256xf32, #tpu.memory_space<vmem>>, vector<16x256xf32>
      %c0_11 = arith.constant 0 : index
      %c0_12 = arith.constant 0 : index
      %13 = vector.load %arg5[%c0_11, %c0_12] : memref<1x256xf32, #tpu.memory_space<vmem>>, vector<1x256xf32>
      %14 = vector.broadcast %13 : vector<1x256xf32> to vector<16x256xf32>
      %15 = arith.addf %12, %14 : vector<16x256xf32>
      %16 = arith.truncf %15 : vector<16x256xf32> to vector<16x256xbf16>
      %c0_13 = arith.constant 0 : index
      %c0_14 = arith.constant 0 : index
      %17 = vector.load %arg6[%c0_13, %c0_14] : memref<16x256xbf16, #tpu.memory_space<vmem>>, vector<16x256xbf16>
      tpu.vector_store %arg6[%c0_13, %c0_14], %16 {strides = array<i32>} : memref<16x256xbf16, #tpu.memory_space<vmem>>, vector<16x256xbf16>,
    } else {
    }
    return
  }
  func.func @transform_0(%arg0: i32, %arg1: i32, %arg2: i32) -> (i32, i32) {
    %c0_i32 = arith.constant 0 : i32
    return %arg0, %arg2 : i32, i32
  }
  func.func @transform_1(%arg0: i32, %arg1: i32, %arg2: i32) -> (i32, i32) {
    %c0_i32 = arith.constant 0 : i32
    return %arg2, %arg1 : i32, i32
  }
  func.func @transform_2(%arg0: i32, %arg1: i32, %arg2: i32) -> (i32, i32) {
    %c0_i32 = arith.constant 0 : i32
    %c0_i32_0 = arith.constant 0 : i32
    return %c0_i32, %arg1 : i32, i32
  }
  func.func @transform_3(%arg0: i32, %arg1: i32, %arg2: i32) -> (i32, i32) {
    %c0_i32 = arith.constant 0 : i32
    return %arg0, %arg1 : i32, i32
  }
}

module attributes {stable_mosaic.version = 11 : i64} {
  func.func @_attention_kernel(%arg0: i32, %arg1: i32, %arg2: memref<8x128xbf16, #tpu.memory_space<vmem>>, %arg3: memref<8x128xbf16, #tpu.memory_space<vmem>>, %arg4: memref<8x128xbf16, #tpu.memory_space<vmem>>, %arg5: memref<1x1x8xf32, #tpu.memory_space<vmem>>, %arg6: memref<8x128xbf16, #tpu.memory_space<vmem>>) attributes {dimension_semantics = [#tpu.dimension_semantics<parallel>, #tpu.dimension_semantics<parallel>], iteration_bounds = array<i64: 2, 6>, scalar_prefetch = 0 : i64, scratch_operands = 0 : i64, tpu.core_type = #tpu.core_type<tc>, window_params = [{transform_indices = @transform_0, window_bounds = array<i64: 8, 128>}, {transform_indices = @transform_1, window_bounds = array<i64: 8, 128>}, {transform_indices = @transform_2, window_bounds = array<i64: 8, 128>}, {transform_indices = @transform_3, window_bounds = array<i64: 1, 1, 8>}, {transform_indices = @transform_4, window_bounds = array<i64: 8, 128>}]} {
    %c0 = arith.constant 0 : index
    %c0_0 = arith.constant 0 : index
    %c0_1 = arith.constant 0 : index
    %0 = vector.load %arg5[%c0, %c0_0, %c0_1] : memref<1x1x8xf32, #tpu.memory_space<vmem>>, vector<1x1x8xf32>
    %1 = vector.shape_cast %0 : vector<1x1x8xf32> to vector<1x8xf32>
    %c0_2 = arith.constant 0 : index
    %c0_3 = arith.constant 0 : index
    %2 = vector.load %arg2[%c0_2, %c0_3] : memref<8x128xbf16, #tpu.memory_space<vmem>>, vector<8x64xbf16>
    %c0_4 = arith.constant 0 : index
    %c0_5 = arith.constant 0 : index
    %3 = vector.load %arg3[%c0_4, %c0_5] : memref<8x128xbf16, #tpu.memory_space<vmem>>, vector<8x64xbf16>
    %c0_6 = arith.constant 0 : index
    %c0_7 = arith.constant 0 : index
    %4 = vector.load %arg4[%c0_6, %c0_7] : memref<8x128xbf16, #tpu.memory_space<vmem>>, vector<8x64xbf16>
    %cst = arith.constant dense<0.000000e+00> : vector<8x8xf32>
    %5 = tpu.matmul %2, %3, %cst {dimension_numbers = #tpu.dot_dimension_numbers<[1], [1], [0], [0], [0, 0, 1, 0], [], []>} : vector<8x64xbf16>, vector<8x64xbf16>, vector<8x8xf32> -> vector<8x8xf32>
    %cst_8 = arith.constant 1.250000e-01 : f32
    %6 = vector.broadcast %cst_8 : f32 to vector<8x8xf32>
    %7 = arith.mulf %5, %6 : vector<8x8xf32>
    %8 = vector.broadcast %1 : vector<1x8xf32> to vector<8x8xf32>
    %9 = arith.addf %7, %8 : vector<8x8xf32>
    %cst_9 = arith.constant dense<0xFF800000> : vector<8xf32>
    %10 = vector.multi_reduction <maximumf>, %9, %cst_9 [1] : vector<8x8xf32> to vector<8xf32>
    %11 = vector.shape_cast %10 : vector<8xf32> to vector<8x1xf32>
    %12 = vector.broadcast %11 : vector<8x1xf32> to vector<8x8xf32>
    %13 = arith.subf %9, %12 : vector<8x8xf32>
    %14 = math.exp %13 : vector<8x8xf32>
    %cst_10 = arith.constant dense<0.000000e+00> : vector<8xf32>
    %15 = vector.multi_reduction <add>, %14, %cst_10 [1] : vector<8x8xf32> to vector<8xf32>
    %16 = vector.shape_cast %15 : vector<8xf32> to vector<8x1xf32>
    %17 = tpu.reciprocal %16 {approx = true} : vector<8x1xf32> -> vector<8x1xf32>
    %18 = vector.broadcast %17 : vector<8x1xf32> to vector<8x8xf32>
    %19 = arith.mulf %14, %18 : vector<8x8xf32>
    %20 = arith.truncf %19 : vector<8x8xf32> to vector<8x8xbf16>
    %cst_11 = arith.constant dense<0.000000e+00> : vector<8x64xf32>
    %21 = tpu.matmul %20, %4, %cst_11 {dimension_numbers = #tpu.dot_dimension_numbers<[1], [0], [0], [1], [0, 0, 1, 1], [], []>} : vector<8x8xbf16>, vector<8x64xbf16>, vector<8x64xf32> -> vector<8x64xf32>
    %c0_12 = arith.constant 0 : index
    %c64 = arith.constant 64 : index
    %22 = vector.load %arg2[%c0_12, %c64] : memref<8x128xbf16, #tpu.memory_space<vmem>>, vector<8x64xbf16>
    %c0_13 = arith.constant 0 : index
    %c64_14 = arith.constant 64 : index
    %23 = vector.load %arg3[%c0_13, %c64_14] : memref<8x128xbf16, #tpu.memory_space<vmem>>, vector<8x64xbf16>
    %c0_15 = arith.constant 0 : index
    %c64_16 = arith.constant 64 : index
    %24 = vector.load %arg4[%c0_15, %c64_16] : memref<8x128xbf16, #tpu.memory_space<vmem>>, vector<8x64xbf16>
    %cst_17 = arith.constant dense<0.000000e+00> : vector<8x8xf32>
    %25 = tpu.matmul %22, %23, %cst_17 {dimension_numbers = #tpu.dot_dimension_numbers<[1], [1], [0], [0], [0, 0, 1, 0], [], []>} : vector<8x64xbf16>, vector<8x64xbf16>, vector<8x8xf32> -> vector<8x8xf32>
    %cst_18 = arith.constant 1.250000e-01 : f32
    %26 = vector.broadcast %cst_18 : f32 to vector<8x8xf32>
    %27 = arith.mulf %25, %26 : vector<8x8xf32>
    %28 = vector.broadcast %1 : vector<1x8xf32> to vector<8x8xf32>
    %29 = arith.addf %27, %28 : vector<8x8xf32>
    %cst_19 = arith.constant dense<0xFF800000> : vector<8xf32>
    %30 = vector.multi_reduction <maximumf>, %29, %cst_19 [1] : vector<8x8xf32> to vector<8xf32>
    %31 = vector.shape_cast %30 : vector<8xf32> to vector<8x1xf32>
    %32 = vector.broadcast %31 : vector<8x1xf32> to vector<8x8xf32>
    %33 = arith.subf %29, %32 : vector<8x8xf32>
    %34 = math.exp %33 : vector<8x8xf32>
    %cst_20 = arith.constant dense<0.000000e+00> : vector<8xf32>
    %35 = vector.multi_reduction <add>, %34, %cst_20 [1] : vector<8x8xf32> to vector<8xf32>
    %36 = vector.shape_cast %35 : vector<8xf32> to vector<8x1xf32>
    %37 = tpu.reciprocal %36 {approx = true} : vector<8x1xf32> -> vector<8x1xf32>
    %38 = vector.broadcast %37 : vector<8x1xf32> to vector<8x8xf32>
    %39 = arith.mulf %34, %38 : vector<8x8xf32>
    %40 = arith.truncf %39 : vector<8x8xf32> to vector<8x8xbf16>
    %cst_21 = arith.constant dense<0.000000e+00> : vector<8x64xf32>
    %41 = tpu.matmul %40, %24, %cst_21 {dimension_numbers = #tpu.dot_dimension_numbers<[1], [0], [0], [1], [0, 0, 1, 1], [], []>} : vector<8x8xbf16>, vector<8x64xbf16>, vector<8x64xf32> -> vector<8x64xf32>
    %42 = tpu.concatenate %21, %41 in 1 : vector<8x64xf32>, vector<8x64xf32> -> vector<8x128xf32>
    %43 = arith.truncf %42 : vector<8x128xf32> to vector<8x128xbf16>
    %c0_22 = arith.constant 0 : index
    %c0_23 = arith.constant 0 : index
    %44 = vector.load %arg6[%c0_22, %c0_23] : memref<8x128xbf16, #tpu.memory_space<vmem>>, vector<8x128xbf16>
    tpu.vector_store %arg6[%c0_22, %c0_23], %43 {strides = array<i32>} : memref<8x128xbf16, #tpu.memory_space<vmem>>, vector<8x128xbf16>,
    return
  }
  func.func @transform_0(%arg0: i32, %arg1: i32) -> (i32, i32) {
    %c0_i32 = arith.constant 0 : i32
    return %arg0, %arg1 : i32, i32
  }
  func.func @transform_1(%arg0: i32, %arg1: i32) -> (i32, i32) {
    %c6_i32 = arith.constant 6 : i32
    %0 = arith.addi %c6_i32, %arg1 : i32
    %c0_i32 = arith.constant 0 : i32
    return %arg0, %0 : i32, i32
  }
  func.func @transform_2(%arg0: i32, %arg1: i32) -> (i32, i32) {
    %c12_i32 = arith.constant 12 : i32
    %0 = arith.addi %c12_i32, %arg1 : i32
    %c0_i32 = arith.constant 0 : i32
    return %arg0, %0 : i32, i32
  }
  func.func @transform_3(%arg0: i32, %arg1: i32) -> (i32, i32, i32) {
    %c0_i32 = arith.constant 0 : i32
    %c0_i32_0 = arith.constant 0 : i32
    %c0_i32_1 = arith.constant 0 : i32
    return %arg0, %c0_i32, %c0_i32_0 : i32, i32, i32
  }
  func.func @transform_4(%arg0: i32, %arg1: i32) -> (i32, i32) {
    %c0_i32 = arith.constant 0 : i32
    return %arg0, %arg1 : i32, i32
  }
}

module attributes {stable_mosaic.version = 11 : i64} {
  func.func @_linear_kernel(%arg0: i32, %arg1: i32, %arg2: i32, %arg3: memref<16x256xbf16, #tpu.memory_space<vmem>>, %arg4: memref<256x256xbf16, #tpu.memory_space<vmem>>, %arg5: memref<1x256xf32, #tpu.memory_space<vmem>>, %arg6: memref<16x256xbf16, #tpu.memory_space<vmem>>, %arg7: memref<16x256xf32, #tpu.memory_space<vmem>>) attributes {dimension_semantics = [#tpu.dimension_semantics<parallel>, #tpu.dimension_semantics<parallel>, #tpu.dimension_semantics<arbitrary>], iteration_bounds = array<i64: 1, 3, 3>, scalar_prefetch = 0 : i64, scratch_operands = 1 : i64, tpu.core_type = #tpu.core_type<tc>, window_params = [{transform_indices = @transform_0, window_bounds = array<i64: 16, 256>}, {transform_indices = @transform_1, window_bounds = array<i64: 256, 256>}, {transform_indices = @transform_2, window_bounds = array<i64: 1, 256>}, {transform_indices = @transform_3, window_bounds = array<i64: 16, 256>}]} {
    %c0_i32 = arith.constant 0 : i32
    %0 = arith.cmpi eq, %arg2, %c0_i32 : i32
    %1 = arith.extui %0 : i1 to i32
    %c0_i32_0 = arith.constant 0 : i32
    %2 = arith.cmpi ne, %1, %c0_i32_0 : i32
    scf.if %2 {
      %cst_9 = arith.constant 0.000000e+00 : f32
      %12 = vector.broadcast %cst_9 : f32 to vector<16x256xf32>
      %c0_10 = arith.constant 0 : index
      %c0_11 = arith.constant 0 : index
      %13 = vector.load %arg7[%c0_10, %c0_11] : memref<16x256xf32, #tpu.memory_space<vmem>>, vector<16x256xf32>
      tpu.vector_store %arg7[%c0_10, %c0_11], %12 {strides = array<i32>} : memref<16x256xf32, #tpu.memory_space<vmem>>, vector<16x256xf32>,
    } else {
    }
    %c0 = arith.constant 0 : index
    %c0_1 = arith.constant 0 : index
    %3 = vector.load %arg7[%c0, %c0_1] : memref<16x256xf32, #tpu.memory_space<vmem>>, vector<16x256xf32>
    %c0_2 = arith.constant 0 : index
    %c0_3 = arith.constant 0 : index
    %4 = vector.load %arg3[%c0_2, %c0_3] : memref<16x256xbf16, #tpu.memory_space<vmem>>, vector<16x256xbf16>
    %c0_4 = arith.constant 0 : index
    %c0_5 = arith.constant 0 : index
    %5 = vector.load %arg4[%c0_4, %c0_5] : memref<256x256xbf16, #tpu.memory_space<vmem>>, vector<256x256xbf16>
    %cst = arith.constant dense<0.000000e+00> : vector<16x256xf32>
    %6 = tpu.matmul %4, %5, %cst {dimension_numbers = #tpu.dot_dimension_numbers<[1], [0], [0], [1], [0, 0, 1, 1], [], []>} : vector<16x256xbf16>, vector<256x256xbf16>, vector<16x256xf32> -> vector<16x256xf32>
    %7 = arith.addf %3, %6 : vector<16x256xf32>
    %c0_6 = arith.constant 0 : index
    %c0_7 = arith.constant 0 : index
    %8 = vector.load %arg7[%c0_6, %c0_7] : memref<16x256xf32, #tpu.memory_space<vmem>>, vector<16x256xf32>
    tpu.vector_store %arg7[%c0_6, %c0_7], %7 {strides = array<i32>} : memref<16x256xf32, #tpu.memory_space<vmem>>, vector<16x256xf32>,
    %c2_i32 = arith.constant 2 : i32
    %9 = arith.cmpi eq, %arg2, %c2_i32 : i32
    %10 = arith.extui %9 : i1 to i32
    %c0_i32_8 = arith.constant 0 : i32
    %11 = arith.cmpi ne, %10, %c0_i32_8 : i32
    scf.if %11 {
      %c0_9 = arith.constant 0 : index
      %c0_10 = arith.constant 0 : index
      %12 = vector.load %arg7[%c0_9, %c0_10] : memref<16x256xf32, #tpu.memory_space<vmem>>, vector<16x256xf32>
      %c0_11 = arith.constant 0 : index
      %c0_12 = arith.constant 0 : index
      %13 = vector.load %arg5[%c0_11, %c0_12] : memref<1x256xf32, #tpu.memory_space<vmem>>, vector<1x256xf32>
      %14 = vector.broadcast %13 : vector<1x256xf32> to vector<16x256xf32>
      %15 = arith.addf %12, %14 : vector<16x256xf32>
      %16 = arith.truncf %15 : vector<16x256xf32> to vector<16x256xbf16>
      %c0_13 = arith.constant 0 : index
      %c0_14 = arith.constant 0 : index
      %17 = vector.load %arg6[%c0_13, %c0_14] : memref<16x256xbf16, #tpu.memory_space<vmem>>, vector<16x256xbf16>
      tpu.vector_store %arg6[%c0_13, %c0_14], %16 {strides = array<i32>} : memref<16x256xbf16, #tpu.memory_space<vmem>>, vector<16x256xbf16>,
    } else {
    }
    return
  }
  func.func @transform_0(%arg0: i32, %arg1: i32, %arg2: i32) -> (i32, i32) {
    %c0_i32 = arith.constant 0 : i32
    return %arg0, %arg2 : i32, i32
  }
  func.func @transform_1(%arg0: i32, %arg1: i32, %arg2: i32) -> (i32, i32) {
    %c0_i32 = arith.constant 0 : i32
    return %arg2, %arg1 : i32, i32
  }
  func.func @transform_2(%arg0: i32, %arg1: i32, %arg2: i32) -> (i32, i32) {
    %c0_i32 = arith.constant 0 : i32
    %c0_i32_0 = arith.constant 0 : i32
    return %c0_i32, %arg1 : i32, i32
  }
  func.func @transform_3(%arg0: i32, %arg1: i32, %arg2: i32) -> (i32, i32) {
    %c0_i32 = arith.constant 0 : i32
    return %arg0, %arg1 : i32, i32
  }
}

module attributes {stable_mosaic.version = 11 : i64} {
  func.func @_ln_kernel(%arg0: i32, %arg1: memref<16x768xbf16, #tpu.memory_space<vmem>>, %arg2: memref<16x768xbf16, #tpu.memory_space<vmem>>, %arg3: memref<1x768xf32, #tpu.memory_space<vmem>>, %arg4: memref<1x768xf32, #tpu.memory_space<vmem>>, %arg5: memref<16x768xbf16, #tpu.memory_space<vmem>>) attributes {dimension_semantics = [#tpu.dimension_semantics<parallel>], iteration_bounds = array<i64: 1>, scalar_prefetch = 0 : i64, scratch_operands = 0 : i64, tpu.core_type = #tpu.core_type<tc>, window_params = [{transform_indices = @transform_0, window_bounds = array<i64: 16, 768>}, {transform_indices = @transform_1, window_bounds = array<i64: 16, 768>}, {pipeline_mode = #tpu.pipeline_mode<synchronous>, transform_indices = @transform_2, window_bounds = array<i64: 1, 768>}, {pipeline_mode = #tpu.pipeline_mode<synchronous>, transform_indices = @transform_3, window_bounds = array<i64: 1, 768>}, {transform_indices = @transform_4, window_bounds = array<i64: 16, 768>}]} {
    %c0 = arith.constant 0 : index
    %c0_0 = arith.constant 0 : index
    %0 = vector.load %arg1[%c0, %c0_0] : memref<16x768xbf16, #tpu.memory_space<vmem>>, vector<16x768xbf16>
    %1 = arith.extf %0 : vector<16x768xbf16> to vector<16x768xf32>
    %c0_1 = arith.constant 0 : index
    %c0_2 = arith.constant 0 : index
    %2 = vector.load %arg2[%c0_1, %c0_2] : memref<16x768xbf16, #tpu.memory_space<vmem>>, vector<16x768xbf16>
    %3 = arith.extf %2 : vector<16x768xbf16> to vector<16x768xf32>
    %4 = arith.addf %1, %3 : vector<16x768xf32>
    %cst = arith.constant dense<0.000000e+00> : vector<16xf32>
    %5 = vector.multi_reduction <add>, %4, %cst [1] : vector<16x768xf32> to vector<16xf32>
    %6 = vector.shape_cast %5 : vector<16xf32> to vector<16x1xf32>
    %cst_3 = arith.constant 7.680000e+02 : f32
    %7 = vector.broadcast %cst_3 : f32 to vector<16x1xf32>
    %8 = arith.divf %6, %7 : vector<16x1xf32>
    %9 = vector.broadcast %8 : vector<16x1xf32> to vector<16x768xf32>
    %10 = arith.subf %4, %9 : vector<16x768xf32>
    %11 = arith.mulf %10, %10 : vector<16x768xf32>
    %cst_4 = arith.constant dense<0.000000e+00> : vector<16xf32>
    %12 = vector.multi_reduction <add>, %11, %cst_4 [1] : vector<16x768xf32> to vector<16xf32>
    %13 = vector.shape_cast %12 : vector<16xf32> to vector<16x1xf32>
    %cst_5 = arith.constant 7.680000e+02 : f32
    %14 = vector.broadcast %cst_5 : f32 to vector<16x1xf32>
    %15 = arith.divf %13, %14 : vector<16x1xf32>
    %cst_6 = arith.constant 9.99999996E-13 : f32
    %16 = vector.broadcast %cst_6 : f32 to vector<16x1xf32>
    %17 = arith.addf %15, %16 : vector<16x1xf32>
    %18 = math.rsqrt %17 : vector<16x1xf32>
    %19 = vector.broadcast %18 : vector<16x1xf32> to vector<16x768xf32>
    %20 = arith.mulf %10, %19 : vector<16x768xf32>
    %c0_7 = arith.constant 0 : index
    %c0_8 = arith.constant 0 : index
    %21 = vector.load %arg3[%c0_7, %c0_8] : memref<1x768xf32, #tpu.memory_space<vmem>>, vector<1x768xf32>
    %22 = vector.broadcast %21 : vector<1x768xf32> to vector<16x768xf32>
    %23 = arith.mulf %20, %22 : vector<16x768xf32>
    %c0_9 = arith.constant 0 : index
    %c0_10 = arith.constant 0 : index
    %24 = vector.load %arg4[%c0_9, %c0_10] : memref<1x768xf32, #tpu.memory_space<vmem>>, vector<1x768xf32>
    %25 = vector.broadcast %24 : vector<1x768xf32> to vector<16x768xf32>
    %26 = arith.addf %23, %25 : vector<16x768xf32>
    %27 = arith.truncf %26 : vector<16x768xf32> to vector<16x768xbf16>
    %c0_11 = arith.constant 0 : index
    %c0_12 = arith.constant 0 : index
    %28 = vector.load %arg5[%c0_11, %c0_12] : memref<16x768xbf16, #tpu.memory_space<vmem>>, vector<16x768xbf16>
    tpu.vector_store %arg5[%c0_11, %c0_12], %27 {strides = array<i32>} : memref<16x768xbf16, #tpu.memory_space<vmem>>, vector<16x768xbf16>,
    return
  }
  func.func @transform_0(%arg0: i32) -> (i32, i32) {
    %c0_i32 = arith.constant 0 : i32
    %c0_i32_0 = arith.constant 0 : i32
    return %arg0, %c0_i32 : i32, i32
  }
  func.func @transform_1(%arg0: i32) -> (i32, i32) {
    %c0_i32 = arith.constant 0 : i32
    %c0_i32_0 = arith.constant 0 : i32
    return %arg0, %c0_i32 : i32, i32
  }
  func.func @transform_2(%arg0: i32) -> (i32, i32) {
    %c0_i32 = arith.constant 0 : i32
    %c0_i32_0 = arith.constant 0 : i32
    %c0_i32_1 = arith.constant 0 : i32
    return %c0_i32, %c0_i32_0 : i32, i32
  }
  func.func @transform_3(%arg0: i32) -> (i32, i32) {
    %c0_i32 = arith.constant 0 : i32
    %c0_i32_0 = arith.constant 0 : i32
    %c0_i32_1 = arith.constant 0 : i32
    return %c0_i32, %c0_i32_0 : i32, i32
  }
  func.func @transform_4(%arg0: i32) -> (i32, i32) {
    %c0_i32 = arith.constant 0 : i32
    %c0_i32_0 = arith.constant 0 : i32
    return %arg0, %c0_i32 : i32, i32
  }
}

module attributes {stable_mosaic.version = 11 : i64} {
  func.func @_linear_kernel(%arg0: i32, %arg1: i32, %arg2: i32, %arg3: memref<16x256xbf16, #tpu.memory_space<vmem>>, %arg4: memref<256x256xbf16, #tpu.memory_space<vmem>>, %arg5: memref<1x256xf32, #tpu.memory_space<vmem>>, %arg6: memref<16x256xbf16, #tpu.memory_space<vmem>>, %arg7: memref<16x256xf32, #tpu.memory_space<vmem>>) attributes {dimension_semantics = [#tpu.dimension_semantics<parallel>, #tpu.dimension_semantics<parallel>, #tpu.dimension_semantics<arbitrary>], iteration_bounds = array<i64: 1, 12, 3>, scalar_prefetch = 0 : i64, scratch_operands = 1 : i64, tpu.core_type = #tpu.core_type<tc>, window_params = [{transform_indices = @transform_0, window_bounds = array<i64: 16, 256>}, {transform_indices = @transform_1, window_bounds = array<i64: 256, 256>}, {transform_indices = @transform_2, window_bounds = array<i64: 1, 256>}, {transform_indices = @transform_3, window_bounds = array<i64: 16, 256>}]} {
    %c0_i32 = arith.constant 0 : i32
    %0 = arith.cmpi eq, %arg2, %c0_i32 : i32
    %1 = arith.extui %0 : i1 to i32
    %c0_i32_0 = arith.constant 0 : i32
    %2 = arith.cmpi ne, %1, %c0_i32_0 : i32
    scf.if %2 {
      %cst_9 = arith.constant 0.000000e+00 : f32
      %12 = vector.broadcast %cst_9 : f32 to vector<16x256xf32>
      %c0_10 = arith.constant 0 : index
      %c0_11 = arith.constant 0 : index
      %13 = vector.load %arg7[%c0_10, %c0_11] : memref<16x256xf32, #tpu.memory_space<vmem>>, vector<16x256xf32>
      tpu.vector_store %arg7[%c0_10, %c0_11], %12 {strides = array<i32>} : memref<16x256xf32, #tpu.memory_space<vmem>>, vector<16x256xf32>,
    } else {
    }
    %c0 = arith.constant 0 : index
    %c0_1 = arith.constant 0 : index
    %3 = vector.load %arg7[%c0, %c0_1] : memref<16x256xf32, #tpu.memory_space<vmem>>, vector<16x256xf32>
    %c0_2 = arith.constant 0 : index
    %c0_3 = arith.constant 0 : index
    %4 = vector.load %arg3[%c0_2, %c0_3] : memref<16x256xbf16, #tpu.memory_space<vmem>>, vector<16x256xbf16>
    %c0_4 = arith.constant 0 : index
    %c0_5 = arith.constant 0 : index
    %5 = vector.load %arg4[%c0_4, %c0_5] : memref<256x256xbf16, #tpu.memory_space<vmem>>, vector<256x256xbf16>
    %cst = arith.constant dense<0.000000e+00> : vector<16x256xf32>
    %6 = tpu.matmul %4, %5, %cst {dimension_numbers = #tpu.dot_dimension_numbers<[1], [0], [0], [1], [0, 0, 1, 1], [], []>} : vector<16x256xbf16>, vector<256x256xbf16>, vector<16x256xf32> -> vector<16x256xf32>
    %7 = arith.addf %3, %6 : vector<16x256xf32>
    %c0_6 = arith.constant 0 : index
    %c0_7 = arith.constant 0 : index
    %8 = vector.load %arg7[%c0_6, %c0_7] : memref<16x256xf32, #tpu.memory_space<vmem>>, vector<16x256xf32>
    tpu.vector_store %arg7[%c0_6, %c0_7], %7 {strides = array<i32>} : memref<16x256xf32, #tpu.memory_space<vmem>>, vector<16x256xf32>,
    %c2_i32 = arith.constant 2 : i32
    %9 = arith.cmpi eq, %arg2, %c2_i32 : i32
    %10 = arith.extui %9 : i1 to i32
    %c0_i32_8 = arith.constant 0 : i32
    %11 = arith.cmpi ne, %10, %c0_i32_8 : i32
    scf.if %11 {
      %c0_9 = arith.constant 0 : index
      %c0_10 = arith.constant 0 : index
      %12 = vector.load %arg7[%c0_9, %c0_10] : memref<16x256xf32, #tpu.memory_space<vmem>>, vector<16x256xf32>
      %c0_11 = arith.constant 0 : index
      %c0_12 = arith.constant 0 : index
      %13 = vector.load %arg5[%c0_11, %c0_12] : memref<1x256xf32, #tpu.memory_space<vmem>>, vector<1x256xf32>
      %14 = vector.broadcast %13 : vector<1x256xf32> to vector<16x256xf32>
      %15 = arith.addf %12, %14 : vector<16x256xf32>
      %cst_13 = arith.constant 5.000000e-01 : f32
      %16 = vector.broadcast %cst_13 : f32 to vector<16x256xf32>
      %17 = arith.mulf %16, %15 : vector<16x256xf32>
      %cst_14 = arith.constant 4.471500e-02 : f32
      %18 = vector.broadcast %cst_14 : f32 to vector<16x256xf32>
      %19 = arith.mulf %18, %15 : vector<16x256xf32>
      %20 = arith.mulf %19, %15 : vector<16x256xf32>
      %21 = arith.mulf %20, %15 : vector<16x256xf32>
      %22 = arith.addf %15, %21 : vector<16x256xf32>
      %cst_15 = arith.constant 0.797884583 : f32
      %23 = vector.broadcast %cst_15 : f32 to vector<16x256xf32>
      %24 = arith.mulf %23, %22 : vector<16x256xf32>
      %25 = math.tanh %24 : vector<16x256xf32>
      %cst_16 = arith.constant 1.000000e+00 : f32
      %26 = vector.broadcast %cst_16 : f32 to vector<16x256xf32>
      %27 = arith.addf %26, %25 : vector<16x256xf32>
      %28 = arith.mulf %17, %27 : vector<16x256xf32>
      %29 = arith.truncf %28 : vector<16x256xf32> to vector<16x256xbf16>
      %c0_17 = arith.constant 0 : index
      %c0_18 = arith.constant 0 : index
      %30 = vector.load %arg6[%c0_17, %c0_18] : memref<16x256xbf16, #tpu.memory_space<vmem>>, vector<16x256xbf16>
      tpu.vector_store %arg6[%c0_17, %c0_18], %29 {strides = array<i32>} : memref<16x256xbf16, #tpu.memory_space<vmem>>, vector<16x256xbf16>,
    } else {
    }
    return
  }
  func.func @transform_0(%arg0: i32, %arg1: i32, %arg2: i32) -> (i32, i32) {
    %c0_i32 = arith.constant 0 : i32
    return %arg0, %arg2 : i32, i32
  }
  func.func @transform_1(%arg0: i32, %arg1: i32, %arg2: i32) -> (i32, i32) {
    %c0_i32 = arith.constant 0 : i32
    return %arg2, %arg1 : i32, i32
  }
  func.func @transform_2(%arg0: i32, %arg1: i32, %arg2: i32) -> (i32, i32) {
    %c0_i32 = arith.constant 0 : i32
    %c0_i32_0 = arith.constant 0 : i32
    return %c0_i32, %arg1 : i32, i32
  }
  func.func @transform_3(%arg0: i32, %arg1: i32, %arg2: i32) -> (i32, i32) {
    %c0_i32 = arith.constant 0 : i32
    return %arg0, %arg1 : i32, i32
  }
}

module attributes {stable_mosaic.version = 11 : i64} {
  func.func @_linear_kernel(%arg0: i32, %arg1: i32, %arg2: i32, %arg3: memref<16x256xbf16, #tpu.memory_space<vmem>>, %arg4: memref<256x256xbf16, #tpu.memory_space<vmem>>, %arg5: memref<1x256xf32, #tpu.memory_space<vmem>>, %arg6: memref<16x256xbf16, #tpu.memory_space<vmem>>, %arg7: memref<16x256xf32, #tpu.memory_space<vmem>>) attributes {dimension_semantics = [#tpu.dimension_semantics<parallel>, #tpu.dimension_semantics<parallel>, #tpu.dimension_semantics<arbitrary>], iteration_bounds = array<i64: 1, 3, 12>, scalar_prefetch = 0 : i64, scratch_operands = 1 : i64, tpu.core_type = #tpu.core_type<tc>, window_params = [{transform_indices = @transform_0, window_bounds = array<i64: 16, 256>}, {transform_indices = @transform_1, window_bounds = array<i64: 256, 256>}, {transform_indices = @transform_2, window_bounds = array<i64: 1, 256>}, {transform_indices = @transform_3, window_bounds = array<i64: 16, 256>}]} {
    %c0_i32 = arith.constant 0 : i32
    %0 = arith.cmpi eq, %arg2, %c0_i32 : i32
    %1 = arith.extui %0 : i1 to i32
    %c0_i32_0 = arith.constant 0 : i32
    %2 = arith.cmpi ne, %1, %c0_i32_0 : i32
    scf.if %2 {
      %cst_9 = arith.constant 0.000000e+00 : f32
      %12 = vector.broadcast %cst_9 : f32 to vector<16x256xf32>
      %c0_10 = arith.constant 0 : index
      %c0_11 = arith.constant 0 : index
      %13 = vector.load %arg7[%c0_10, %c0_11] : memref<16x256xf32, #tpu.memory_space<vmem>>, vector<16x256xf32>
      tpu.vector_store %arg7[%c0_10, %c0_11], %12 {strides = array<i32>} : memref<16x256xf32, #tpu.memory_space<vmem>>, vector<16x256xf32>,
    } else {
    }
    %c0 = arith.constant 0 : index
    %c0_1 = arith.constant 0 : index
    %3 = vector.load %arg7[%c0, %c0_1] : memref<16x256xf32, #tpu.memory_space<vmem>>, vector<16x256xf32>
    %c0_2 = arith.constant 0 : index
    %c0_3 = arith.constant 0 : index
    %4 = vector.load %arg3[%c0_2, %c0_3] : memref<16x256xbf16, #tpu.memory_space<vmem>>, vector<16x256xbf16>
    %c0_4 = arith.constant 0 : index
    %c0_5 = arith.constant 0 : index
    %5 = vector.load %arg4[%c0_4, %c0_5] : memref<256x256xbf16, #tpu.memory_space<vmem>>, vector<256x256xbf16>
    %cst = arith.constant dense<0.000000e+00> : vector<16x256xf32>
    %6 = tpu.matmul %4, %5, %cst {dimension_numbers = #tpu.dot_dimension_numbers<[1], [0], [0], [1], [0, 0, 1, 1], [], []>} : vector<16x256xbf16>, vector<256x256xbf16>, vector<16x256xf32> -> vector<16x256xf32>
    %7 = arith.addf %3, %6 : vector<16x256xf32>
    %c0_6 = arith.constant 0 : index
    %c0_7 = arith.constant 0 : index
    %8 = vector.load %arg7[%c0_6, %c0_7] : memref<16x256xf32, #tpu.memory_space<vmem>>, vector<16x256xf32>
    tpu.vector_store %arg7[%c0_6, %c0_7], %7 {strides = array<i32>} : memref<16x256xf32, #tpu.memory_space<vmem>>, vector<16x256xf32>,
    %c11_i32 = arith.constant 11 : i32
    %9 = arith.cmpi eq, %arg2, %c11_i32 : i32
    %10 = arith.extui %9 : i1 to i32
    %c0_i32_8 = arith.constant 0 : i32
    %11 = arith.cmpi ne, %10, %c0_i32_8 : i32
    scf.if %11 {
      %c0_9 = arith.constant 0 : index
      %c0_10 = arith.constant 0 : index
      %12 = vector.load %arg7[%c0_9, %c0_10] : memref<16x256xf32, #tpu.memory_space<vmem>>, vector<16x256xf32>
      %c0_11 = arith.constant 0 : index
      %c0_12 = arith.constant 0 : index
      %13 = vector.load %arg5[%c0_11, %c0_12] : memref<1x256xf32, #tpu.memory_space<vmem>>, vector<1x256xf32>
      %14 = vector.broadcast %13 : vector<1x256xf32> to vector<16x256xf32>
      %15 = arith.addf %12, %14 : vector<16x256xf32>
      %16 = arith.truncf %15 : vector<16x256xf32> to vector<16x256xbf16>
      %c0_13 = arith.constant 0 : index
      %c0_14 = arith.constant 0 : index
      %17 = vector.load %arg6[%c0_13, %c0_14] : memref<16x256xbf16, #tpu.memory_space<vmem>>, vector<16x256xbf16>
      tpu.vector_store %arg6[%c0_13, %c0_14], %16 {strides = array<i32>} : memref<16x256xbf16, #tpu.memory_space<vmem>>, vector<16x256xbf16>,
    } else {
    }
    return
  }
  func.func @transform_0(%arg0: i32, %arg1: i32, %arg2: i32) -> (i32, i32) {
    %c0_i32 = arith.constant 0 : i32
    return %arg0, %arg2 : i32, i32
  }
  func.func @transform_1(%arg0: i32, %arg1: i32, %arg2: i32) -> (i32, i32) {
    %c0_i32 = arith.constant 0 : i32
    return %arg2, %arg1 : i32, i32
  }
  func.func @transform_2(%arg0: i32, %arg1: i32, %arg2: i32) -> (i32, i32) {
    %c0_i32 = arith.constant 0 : i32
    %c0_i32_0 = arith.constant 0 : i32
    return %c0_i32, %arg1 : i32, i32
  }
  func.func @transform_3(%arg0: i32, %arg1: i32, %arg2: i32) -> (i32, i32) {
    %c0_i32 = arith.constant 0 : i32
    return %arg0, %arg1 : i32, i32
  }
}

module attributes {stable_mosaic.version = 11 : i64} {
  func.func @_linear_kernel(%arg0: i32, %arg1: i32, %arg2: i32, %arg3: memref<16x256xbf16, #tpu.memory_space<vmem>>, %arg4: memref<256x256xbf16, #tpu.memory_space<vmem>>, %arg5: memref<1x256xf32, #tpu.memory_space<vmem>>, %arg6: memref<16x256xbf16, #tpu.memory_space<vmem>>, %arg7: memref<16x256xf32, #tpu.memory_space<vmem>>) attributes {dimension_semantics = [#tpu.dimension_semantics<parallel>, #tpu.dimension_semantics<parallel>, #tpu.dimension_semantics<arbitrary>], iteration_bounds = array<i64: 1, 3, 3>, scalar_prefetch = 0 : i64, scratch_operands = 1 : i64, tpu.core_type = #tpu.core_type<tc>, window_params = [{transform_indices = @transform_0, window_bounds = array<i64: 16, 256>}, {transform_indices = @transform_1, window_bounds = array<i64: 256, 256>}, {transform_indices = @transform_2, window_bounds = array<i64: 1, 256>}, {transform_indices = @transform_3, window_bounds = array<i64: 16, 256>}]} {
    %c0_i32 = arith.constant 0 : i32
    %0 = arith.cmpi eq, %arg2, %c0_i32 : i32
    %1 = arith.extui %0 : i1 to i32
    %c0_i32_0 = arith.constant 0 : i32
    %2 = arith.cmpi ne, %1, %c0_i32_0 : i32
    scf.if %2 {
      %cst_9 = arith.constant 0.000000e+00 : f32
      %12 = vector.broadcast %cst_9 : f32 to vector<16x256xf32>
      %c0_10 = arith.constant 0 : index
      %c0_11 = arith.constant 0 : index
      %13 = vector.load %arg7[%c0_10, %c0_11] : memref<16x256xf32, #tpu.memory_space<vmem>>, vector<16x256xf32>
      tpu.vector_store %arg7[%c0_10, %c0_11], %12 {strides = array<i32>} : memref<16x256xf32, #tpu.memory_space<vmem>>, vector<16x256xf32>,
    } else {
    }
    %c0 = arith.constant 0 : index
    %c0_1 = arith.constant 0 : index
    %3 = vector.load %arg7[%c0, %c0_1] : memref<16x256xf32, #tpu.memory_space<vmem>>, vector<16x256xf32>
    %c0_2 = arith.constant 0 : index
    %c0_3 = arith.constant 0 : index
    %4 = vector.load %arg3[%c0_2, %c0_3] : memref<16x256xbf16, #tpu.memory_space<vmem>>, vector<16x256xbf16>
    %c0_4 = arith.constant 0 : index
    %c0_5 = arith.constant 0 : index
    %5 = vector.load %arg4[%c0_4, %c0_5] : memref<256x256xbf16, #tpu.memory_space<vmem>>, vector<256x256xbf16>
    %cst = arith.constant dense<0.000000e+00> : vector<16x256xf32>
    %6 = tpu.matmul %4, %5, %cst {dimension_numbers = #tpu.dot_dimension_numbers<[1], [0], [0], [1], [0, 0, 1, 1], [], []>} : vector<16x256xbf16>, vector<256x256xbf16>, vector<16x256xf32> -> vector<16x256xf32>
    %7 = arith.addf %3, %6 : vector<16x256xf32>
    %c0_6 = arith.constant 0 : index
    %c0_7 = arith.constant 0 : index
    %8 = vector.load %arg7[%c0_6, %c0_7] : memref<16x256xf32, #tpu.memory_space<vmem>>, vector<16x256xf32>
    tpu.vector_store %arg7[%c0_6, %c0_7], %7 {strides = array<i32>} : memref<16x256xf32, #tpu.memory_space<vmem>>, vector<16x256xf32>,
    %c2_i32 = arith.constant 2 : i32
    %9 = arith.cmpi eq, %arg2, %c2_i32 : i32
    %10 = arith.extui %9 : i1 to i32
    %c0_i32_8 = arith.constant 0 : i32
    %11 = arith.cmpi ne, %10, %c0_i32_8 : i32
    scf.if %11 {
      %c0_9 = arith.constant 0 : index
      %c0_10 = arith.constant 0 : index
      %12 = vector.load %arg7[%c0_9, %c0_10] : memref<16x256xf32, #tpu.memory_space<vmem>>, vector<16x256xf32>
      %c0_11 = arith.constant 0 : index
      %c0_12 = arith.constant 0 : index
      %13 = vector.load %arg5[%c0_11, %c0_12] : memref<1x256xf32, #tpu.memory_space<vmem>>, vector<1x256xf32>
      %14 = vector.broadcast %13 : vector<1x256xf32> to vector<16x256xf32>
      %15 = arith.addf %12, %14 : vector<16x256xf32>
      %cst_13 = arith.constant 0.000000e+00 : f32
      %16 = vector.broadcast %cst_13 : f32 to vector<16x256xf32>
      %17 = arith.maximumf %15, %16 : vector<16x256xf32>
      %18 = arith.truncf %17 : vector<16x256xf32> to vector<16x256xbf16>
      %c0_14 = arith.constant 0 : index
      %c0_15 = arith.constant 0 : index
      %19 = vector.load %arg6[%c0_14, %c0_15] : memref<16x256xbf16, #tpu.memory_space<vmem>>, vector<16x256xbf16>
      tpu.vector_store %arg6[%c0_14, %c0_15], %18 {strides = array<i32>} : memref<16x256xbf16, #tpu.memory_space<vmem>>, vector<16x256xbf16>,
    } else {
    }
    return
  }
  func.func @transform_0(%arg0: i32, %arg1: i32, %arg2: i32) -> (i32, i32) {
    %c0_i32 = arith.constant 0 : i32
    return %arg0, %arg2 : i32, i32
  }
  func.func @transform_1(%arg0: i32, %arg1: i32, %arg2: i32) -> (i32, i32) {
    %c0_i32 = arith.constant 0 : i32
    return %arg2, %arg1 : i32, i32
  }
  func.func @transform_2(%arg0: i32, %arg1: i32, %arg2: i32) -> (i32, i32) {
    %c0_i32 = arith.constant 0 : i32
    %c0_i32_0 = arith.constant 0 : i32
    return %c0_i32, %arg1 : i32, i32
  }
  func.func @transform_3(%arg0: i32, %arg1: i32, %arg2: i32) -> (i32, i32) {
    %c0_i32 = arith.constant 0 : i32
    return %arg0, %arg1 : i32, i32
  }
}

module attributes {stable_mosaic.version = 11 : i64} {
  func.func @_linear_kernel(%arg0: i32, %arg1: i32, %arg2: i32, %arg3: memref<16x256xbf16, #tpu.memory_space<vmem>>, %arg4: memref<256x256xbf16, #tpu.memory_space<vmem>>, %arg5: memref<1x256xf32, #tpu.memory_space<vmem>>, %arg6: memref<16x256xbf16, #tpu.memory_space<vmem>>, %arg7: memref<16x256xf32, #tpu.memory_space<vmem>>) attributes {dimension_semantics = [#tpu.dimension_semantics<parallel>, #tpu.dimension_semantics<parallel>, #tpu.dimension_semantics<arbitrary>], iteration_bounds = array<i64: 1, 9, 3>, scalar_prefetch = 0 : i64, scratch_operands = 1 : i64, tpu.core_type = #tpu.core_type<tc>, window_params = [{transform_indices = @transform_0, window_bounds = array<i64: 16, 256>}, {transform_indices = @transform_1, window_bounds = array<i64: 256, 256>}, {transform_indices = @transform_2, window_bounds = array<i64: 1, 256>}, {transform_indices = @transform_3, window_bounds = array<i64: 16, 256>}]} {
    %c0_i32 = arith.constant 0 : i32
    %0 = arith.cmpi eq, %arg2, %c0_i32 : i32
    %1 = arith.extui %0 : i1 to i32
    %c0_i32_0 = arith.constant 0 : i32
    %2 = arith.cmpi ne, %1, %c0_i32_0 : i32
    scf.if %2 {
      %cst_9 = arith.constant 0.000000e+00 : f32
      %12 = vector.broadcast %cst_9 : f32 to vector<16x256xf32>
      %c0_10 = arith.constant 0 : index
      %c0_11 = arith.constant 0 : index
      %13 = vector.load %arg7[%c0_10, %c0_11] : memref<16x256xf32, #tpu.memory_space<vmem>>, vector<16x256xf32>
      tpu.vector_store %arg7[%c0_10, %c0_11], %12 {strides = array<i32>} : memref<16x256xf32, #tpu.memory_space<vmem>>, vector<16x256xf32>,
    } else {
    }
    %c0 = arith.constant 0 : index
    %c0_1 = arith.constant 0 : index
    %3 = vector.load %arg7[%c0, %c0_1] : memref<16x256xf32, #tpu.memory_space<vmem>>, vector<16x256xf32>
    %c0_2 = arith.constant 0 : index
    %c0_3 = arith.constant 0 : index
    %4 = vector.load %arg3[%c0_2, %c0_3] : memref<16x256xbf16, #tpu.memory_space<vmem>>, vector<16x256xbf16>
    %c0_4 = arith.constant 0 : index
    %c0_5 = arith.constant 0 : index
    %5 = vector.load %arg4[%c0_4, %c0_5] : memref<256x256xbf16, #tpu.memory_space<vmem>>, vector<256x256xbf16>
    %cst = arith.constant dense<0.000000e+00> : vector<16x256xf32>
    %6 = tpu.matmul %4, %5, %cst {dimension_numbers = #tpu.dot_dimension_numbers<[1], [0], [0], [1], [0, 0, 1, 1], [], []>} : vector<16x256xbf16>, vector<256x256xbf16>, vector<16x256xf32> -> vector<16x256xf32>
    %7 = arith.addf %3, %6 : vector<16x256xf32>
    %c0_6 = arith.constant 0 : index
    %c0_7 = arith.constant 0 : index
    %8 = vector.load %arg7[%c0_6, %c0_7] : memref<16x256xf32, #tpu.memory_space<vmem>>, vector<16x256xf32>
    tpu.vector_store %arg7[%c0_6, %c0_7], %7 {strides = array<i32>} : memref<16x256xf32, #tpu.memory_space<vmem>>, vector<16x256xf32>,
    %c2_i32 = arith.constant 2 : i32
    %9 = arith.cmpi eq, %arg2, %c2_i32 : i32
    %10 = arith.extui %9 : i1 to i32
    %c0_i32_8 = arith.constant 0 : i32
    %11 = arith.cmpi ne, %10, %c0_i32_8 : i32
    scf.if %11 {
      %c0_9 = arith.constant 0 : index
      %c0_10 = arith.constant 0 : index
      %12 = vector.load %arg7[%c0_9, %c0_10] : memref<16x256xf32, #tpu.memory_space<vmem>>, vector<16x256xf32>
      %c0_11 = arith.constant 0 : index
      %c0_12 = arith.constant 0 : index
      %13 = vector.load %arg5[%c0_11, %c0_12] : memref<1x256xf32, #tpu.memory_space<vmem>>, vector<1x256xf32>
      %14 = vector.broadcast %13 : vector<1x256xf32> to vector<16x256xf32>
      %15 = arith.addf %12, %14 : vector<16x256xf32>
      %16 = arith.truncf %15 : vector<16x256xf32> to vector<16x256xbf16>
      %c0_13 = arith.constant 0 : index
      %c0_14 = arith.constant 0 : index
      %17 = vector.load %arg6[%c0_13, %c0_14] : memref<16x256xbf16, #tpu.memory_space<vmem>>, vector<16x256xbf16>
      tpu.vector_store %arg6[%c0_13, %c0_14], %16 {strides = array<i32>} : memref<16x256xbf16, #tpu.memory_space<vmem>>, vector<16x256xbf16>,
    } else {
    }
    return
  }
  func.func @transform_0(%arg0: i32, %arg1: i32, %arg2: i32) -> (i32, i32) {
    %c0_i32 = arith.constant 0 : i32
    return %arg0, %arg2 : i32, i32
  }
  func.func @transform_1(%arg0: i32, %arg1: i32, %arg2: i32) -> (i32, i32) {
    %c0_i32 = arith.constant 0 : i32
    return %arg2, %arg1 : i32, i32
  }
  func.func @transform_2(%arg0: i32, %arg1: i32, %arg2: i32) -> (i32, i32) {
    %c0_i32 = arith.constant 0 : i32
    %c0_i32_0 = arith.constant 0 : i32
    return %c0_i32, %arg1 : i32, i32
  }
  func.func @transform_3(%arg0: i32, %arg1: i32, %arg2: i32) -> (i32, i32) {
    %c0_i32 = arith.constant 0 : i32
    return %arg0, %arg1 : i32, i32
  }
}

module attributes {stable_mosaic.version = 11 : i64} {
  func.func @_linear_kernel(%arg0: i32, %arg1: i32, %arg2: i32, %arg3: memref<16x256xbf16, #tpu.memory_space<vmem>>, %arg4: memref<256x128xbf16, #tpu.memory_space<vmem>>, %arg5: memref<1x128xf32, #tpu.memory_space<vmem>>, %arg6: memref<16x128xf32, #tpu.memory_space<vmem>>, %arg7: memref<16x128xf32, #tpu.memory_space<vmem>>) attributes {dimension_semantics = [#tpu.dimension_semantics<parallel>, #tpu.dimension_semantics<parallel>, #tpu.dimension_semantics<arbitrary>], iteration_bounds = array<i64: 1, 1, 3>, scalar_prefetch = 0 : i64, scratch_operands = 1 : i64, tpu.core_type = #tpu.core_type<tc>, window_params = [{transform_indices = @transform_0, window_bounds = array<i64: 16, 256>}, {transform_indices = @transform_1, window_bounds = array<i64: 256, 128>}, {transform_indices = @transform_2, window_bounds = array<i64: 1, 128>}, {transform_indices = @transform_3, window_bounds = array<i64: 16, 128>}]} {
    %c0_i32 = arith.constant 0 : i32
    %0 = arith.cmpi eq, %arg2, %c0_i32 : i32
    %1 = arith.extui %0 : i1 to i32
    %c0_i32_0 = arith.constant 0 : i32
    %2 = arith.cmpi ne, %1, %c0_i32_0 : i32
    scf.if %2 {
      %cst_9 = arith.constant 0.000000e+00 : f32
      %12 = vector.broadcast %cst_9 : f32 to vector<16x128xf32>
      %c0_10 = arith.constant 0 : index
      %c0_11 = arith.constant 0 : index
      %13 = vector.load %arg7[%c0_10, %c0_11] : memref<16x128xf32, #tpu.memory_space<vmem>>, vector<16x128xf32>
      tpu.vector_store %arg7[%c0_10, %c0_11], %12 {strides = array<i32>} : memref<16x128xf32, #tpu.memory_space<vmem>>, vector<16x128xf32>,
    } else {
    }
    %c0 = arith.constant 0 : index
    %c0_1 = arith.constant 0 : index
    %3 = vector.load %arg7[%c0, %c0_1] : memref<16x128xf32, #tpu.memory_space<vmem>>, vector<16x128xf32>
    %c0_2 = arith.constant 0 : index
    %c0_3 = arith.constant 0 : index
    %4 = vector.load %arg3[%c0_2, %c0_3] : memref<16x256xbf16, #tpu.memory_space<vmem>>, vector<16x256xbf16>
    %c0_4 = arith.constant 0 : index
    %c0_5 = arith.constant 0 : index
    %5 = vector.load %arg4[%c0_4, %c0_5] : memref<256x128xbf16, #tpu.memory_space<vmem>>, vector<256x128xbf16>
    %cst = arith.constant dense<0.000000e+00> : vector<16x128xf32>
    %6 = tpu.matmul %4, %5, %cst {dimension_numbers = #tpu.dot_dimension_numbers<[1], [0], [0], [1], [0, 0, 1, 1], [], []>} : vector<16x256xbf16>, vector<256x128xbf16>, vector<16x128xf32> -> vector<16x128xf32>
    %7 = arith.addf %3, %6 : vector<16x128xf32>
    %c0_6 = arith.constant 0 : index
    %c0_7 = arith.constant 0 : index
    %8 = vector.load %arg7[%c0_6, %c0_7] : memref<16x128xf32, #tpu.memory_space<vmem>>, vector<16x128xf32>
    tpu.vector_store %arg7[%c0_6, %c0_7], %7 {strides = array<i32>} : memref<16x128xf32, #tpu.memory_space<vmem>>, vector<16x128xf32>,
    %c2_i32 = arith.constant 2 : i32
    %9 = arith.cmpi eq, %arg2, %c2_i32 : i32
    %10 = arith.extui %9 : i1 to i32
    %c0_i32_8 = arith.constant 0 : i32
    %11 = arith.cmpi ne, %10, %c0_i32_8 : i32
    scf.if %11 {
      %c0_9 = arith.constant 0 : index
      %c0_10 = arith.constant 0 : index
      %12 = vector.load %arg7[%c0_9, %c0_10] : memref<16x128xf32, #tpu.memory_space<vmem>>, vector<16x128xf32>
      %c0_11 = arith.constant 0 : index
      %c0_12 = arith.constant 0 : index
      %13 = vector.load %arg5[%c0_11, %c0_12] : memref<1x128xf32, #tpu.memory_space<vmem>>, vector<1x128xf32>
      %14 = vector.broadcast %13 : vector<1x128xf32> to vector<16x128xf32>
      %15 = arith.addf %12, %14 : vector<16x128xf32>
      %c0_13 = arith.constant 0 : index
      %c0_14 = arith.constant 0 : index
      %16 = vector.load %arg6[%c0_13, %c0_14] : memref<16x128xf32, #tpu.memory_space<vmem>>, vector<16x128xf32>
      tpu.vector_store %arg6[%c0_13, %c0_14], %15 {strides = array<i32>} : memref<16x128xf32, #tpu.memory_space<vmem>>, vector<16x128xf32>,
    } else {
    }
    return
  }
  func.func @transform_0(%arg0: i32, %arg1: i32, %arg2: i32) -> (i32, i32) {
    %c0_i32 = arith.constant 0 : i32
    return %arg0, %arg2 : i32, i32
  }
  func.func @transform_1(%arg0: i32, %arg1: i32, %arg2: i32) -> (i32, i32) {
    %c0_i32 = arith.constant 0 : i32
    return %arg2, %arg1 : i32, i32
  }
  func.func @transform_2(%arg0: i32, %arg1: i32, %arg2: i32) -> (i32, i32) {
    %c0_i32 = arith.constant 0 : i32
    %c0_i32_0 = arith.constant 0 : i32
    return %c0_i32, %arg1 : i32, i32
  }
  func.func @transform_3(%arg0: i32, %arg1: i32, %arg2: i32) -> (i32, i32) {
    %c0_i32 = arith.constant 0 : i32
    return %arg0, %arg1 : i32, i32
  }
}

</mosaic_0001>

<bundles_post_ra>
// kernel: bert_ner_forward.18
= control target key start
LH: loop header
LB: loop body
LE: loop exit
PB: predicated region body
PF: predicated region fallthrough
CT: control target
= control target key end

     0   :  { %8 = vsyncpa [#allocation5], 0  ;;  %s1404_s0 = inlined_call_operand.vmem [shape: bf16[16,768], index: 0, kind: input, shape index: {}]   ;;  %s1405_s1 = inlined_call_operand.hbm [shape: bf16[768,2304], index: 1, kind: input, shape index: {}]   ;;  %s1406_s2 = inlined_call_operand.vmem [shape: f32[1,2304], index: 2, kind: input, shape index: {}]   ;;  %s1407_s3 = inlined_call_operand.vmem [shape: bf16[16,2304], index: 3, kind: output, shape index: {}]  }
   0x1   :  { %10 = vsyncpa [#allocation5 + $0x1], 0  ;;  %s1137_s12 = smov 0   ;;  %s1139_s13 = smov 0  }
   0x2   :  { %s1141_s14 = smov 0   ;;  %s1143_s15 = smov 0  }
   0x3   :  { %s1145_s16 = smov 0   ;;  %s1147_s17 = smov 0  }
   0x4   :  { %s1149_s18 = smov 0   ;;  %s1151_s19 = smov 0  }
   0x5   :  { %s1153_s20 = smov 0   ;;  %s1155_s21 = smov 0  }
   0x6   :  { %s1157_s22 = smov 0   ;;  %s1159_s23 = smov 0  }
   0x7 LB: > { %1411 = sst [smem:[#allocation8_spill]] %s1090_s18  ;;  %s766_s24 = sadd.s32 4294967295, %s1110_s23   ;;  %s1110_s23 = sphi %s1159_s23, %s16_s23   ;;  %s1106_s22 = sphi %s1157_s22, %s1434_s22   ;;  %s1102_s21 = sphi %s1155_s21, %s1433_s21   ;;  %s1098_s20 = sphi %s1153_s20, %s1432_s20   ;;  %s1094_s19 = sphi %s1151_s19, %s1431_s19   ;;  %s1090_s18 = sphi %s1149_s18, %s1423_s18   ;;  %s1086_s17 = sphi %s1147_s17, %s1422_s17   ;;  %s1082_s16 = sphi %s1145_s16, %s1430_s16   ;;  %s1078_s15 = sphi %s1143_s15, %s1429_s15   ;;  %s1074_s14 = sphi %s1141_s14, %s1428_s14   ;;  %s1070_s13 = sphi %s1139_s13, %s1427_s13   ;;  %s1066_s12 = sphi %s1137_s12, %s1426_s12  }
   0x8   : > { %s28_s25 = sadd.s32 1, %s1102_s21  ;;  %s31_s26 = sadd.s32 1, %s1106_s22 }
   0x9   : > { %p29_p0 = scmp.ge.s32.totalorder %s28_s25, 3  ;;  %s44_s27 = sadd.s32 1, %s1090_s18 }
   0xa   : > { %p51_p1 = scmp.ne.s32.totalorder %s1090_s18, %s1086_s17  ;;  %p52_p2 = scmp.eq.s32.totalorder %s1110_s23, 0 }
   0xb   : > { %s1436_s25 = smov (%p29_p0, %s28_s25), 0  ;;  %s1438_s26 = smov (!%p29_p0, %s31_s26), %s1106_s22 }
   0xc   : > { %1412 = sst [smem:[#allocation9_spill]] %s1436_s25  ;;  %s40_s28 = ssub.s32 %s1102_s21, %s1436_s25 }
   0xd   : > { %p33_p3 = scmp.ge.s32.totalorder %s1438_s26, 9  ;;  %p42_p4 = scmp.eq.s32.totalorder %s40_s28, 0 }
   0xe   : > { %p1209_p5 = por %p52_p2, %p51_p1  ;;  %s72_s30 = sadd.s32 1, %s1082_s16 }
   0xf   : > { %s1440_s26 = smov (%p33_p3, %s1438_s26), 0  ;;  %p79_p6 = scmp.ne.s32.totalorder %s1082_s16, %s1078_s15 }
  0x10   : > { %1414 = sst [smem:[#allocation10_spill]] %s1440_s26  ;;  %s68_s5 = ssub.s32 %s1106_s22, %s1440_s26 }
  0x11   : > { %s1217_s4 = scalar_select %p42_p4, %s1090_s18, %s44_s27  }
  0x12   : > { %s69_s6 = sor.u32 %s68_s5, %s40_s28  ;;  %p85_p7 = scmp.ne.s32.totalorder %s1078_s15, %s1074_s14 }
  0x13   : > { %1415 = sst [smem:[#allocation11_spill]] %s1217_s4  ;;  %p70_p8 = scmp.eq.s32.totalorder %s69_s6, 0 }
  0x14   : > { %p1225_p9 = por %p79_p6, %p52_p2  ;;  %p86_p10 = scmp.eq.s32.totalorder %s766_s24, 0 }
  0x15   : > { %p124_p11 = scmp.eq.s32.totalorder %s68_s5, 0  ;;  %s126_s10 = sadd.s32 1, %s1070_s13 }
  0x16   : > { %s1232_s8 = scalar_select %p70_p8, %s1082_s16, %s72_s30  }
  0x17   : > { %p1234_p12 = por %p86_p10, %p85_p7  ;;  %p136_p13 = scmp.ne.s32.totalorder %s1070_s13, %s1066_s12 }
  0x18   : > { %1417 = sst [smem:[#allocation12_spill]] %s1232_s8  ;;  %p137_p0 = scmp.eq.s32.totalorder %s766_s24, 26 }
  0x19   : > { %s1240_s11 = scalar_select %p124_p11, %s1070_s13, %s126_s10  }
  0x1a   : > { %p1246_p1 = por %p137_p0, %p136_p13  ;;  %p769_p2 = scmp.ge.s32.totalorder %s1110_s23, 27 }
  0x1c   : > { %s1419_s14 = scalar_select %p1246_p1, 1, 0 }
  0x1d   : > { %159 = sbr.rel (%p769_p2) target bundleno = 72 (0x48), region = 16 }
  0x24   : > { %162 = sbr.rel (!%p1209_p5) target bundleno = 43 (0x2b), region = 20  ;;  %s164_s27 = sand.u32 (%p1209_p5), 1, %s1090_s18  }
  0x25   : > { %s826_s28 = sshll.u32 (%p1209_p5), %s1102_s21, 3  ;;  %s770_s30 = sshll.u32 (%p1209_p5), %s164_s27, 4 }
  0x26   : > { %s172_s10 = scalar_lea.vmem (%p1209_p5), %s1404_s0, %s826_s28  ;;  %s166_s24 = scalar_lea.vmem (%p1209_p5), [#allocation3], %s770_s30 }
  0x27   : > { %v202_v0 = vld [vmem:[%s172_s10] sm:$0xff] (%p1209_p5)  ;;  %v204_v1 = vld [vmem:[%s172_s10 + $0x18] sm:$0xff] (%p1209_p5) }
  0x28   : > { %203 = vst [vmem:[%s166_s24] sm:$0xff] (%p1209_p5), %v202_v0  ;;  %205 = vst [vmem:[%s166_s24 + $0x8] sm:$0xff] (%p1209_p5), %v204_v1 }
  0x2b PF: > { %s212_s29 = sand.u32 1, %s1082_s16   ;;  %s775_s26 = sshll.u32 %s1106_s22, 1 }
  0x2c   : > { %s773_s25 = sshll.u32 %s212_s29, 8  ;;  %s830_s4 = smul.u32 576, %s1102_s21 }
  0x2d   : > { %s216_s18 = scalar_lea.vmem [#allocation4], %s773_s25  ;;  %s1268_s10 = scalar_lea.sflag [#allocation5], %s212_s29 }
  0x2e   : > { %s226_s27 = sshll.u32 %s216_s18, 4  ;;  %s223_s8 = sadd.s32 %s830_s4, %s775_s26  ;;  %s1261_s27 = int_to_ptr.vmem [resolvable:$true] %s226_s27 }
  0x2f   : > { %s777_s28 = sshll.u32 %s223_s8, 6  ;;  %s988_s26 = scalar_lea.hbm %s1405_s1, 110592 }
  0x30   : > { %s1266_s30 = scalar_lea.hbm %s1405_s1, %s777_s28 }
  0x31   : > { %s984_s24 = scalar_lea.hbm %s1266_s30, 4096  ;;  %p989_p6 = scmp.lt.u32.totalorder %s1266_s30, %s1405_s1 }
  0x32   : > { %p985_p3 = scmp.ne.s32.totalorder %s1266_s30, %s984_s24  ;;  %p990_p7 = scmp.lt.u32.totalorder %s988_s26, %s984_s24 }
  0x33   : > { %p992_p10 = scmp.lt.u32.totalorder %s984_s24, %s1266_s30 }
  0x34   : > { %p986_p4 = pnand %p985_p3, %p1225_p9  ;;  %p991_p8 = por %p990_p7, %p989_p6 }
  0x36   : > { %p987_p5 = pneg %p986_p4  ;;  %p993_p11 = por %p992_p10, %p991_p8 }
  0x38   : > { %p994_p13 = pnand %p993_p11, %p987_p5 }
  0x3a   : > { %997 = shalt.err (!%p994_p13)
}
  0x3b   : > { %s998_s29 = scalar_lea.vmem %s1261_s27, 4096  ;;  %s1112_s28 = smov [#allocation4]  }
  0x3c   : > { %p999_p0 = scmp.ne.s32.totalorder %s1261_s27, %s998_s29  ;;  %s1002_s5 = sshll.u32 %s1112_s28, 4  ;;  %s1003_s5 = int_to_ptr.vmem [resolvable:$false] %s1002_s5 }
  0x3d   : > { %s1004_s6 = scalar_lea.vmem %s1003_s5, 8192  ;;  %p1005_p4 = scmp.lt.s32.totalorder %s1261_s27, %s1003_s5 }
  0x3e   : > { %p1000_p2 = pnand %p999_p0, %p1225_p9  ;;  %p1006_p1 = scmp.lt.s32.totalorder %s1004_s6, %s998_s29 }
  0x40   : > { %p1001_p3 = pneg %p1000_p2  ;;  %p1007_p6 = por %p1006_p1, %p1005_p4 }
  0x42   : > { %p1008_p7 = pnand %p1007_p6, %p1001_p3 }
  0x44   : > { %1011 = shalt.err (!%p1008_p7)
}
  0x45   : > { %s1113_s24 = smov 1152   ;;  %s1114_s18 = smov 128  }
  0x46   : > { %s1115_s25 = smov 8  }
  0x47   : > { %831 = dma.hbm_to_vmem [thread:$0]  (%p1225_p9), %s1266_s30, 4096, %s1261_s27, %s1268_s10, %s1113_s24, %s1114_s18, %s1115_s25  }
  0x48 PF: > { %p778_p5 = scmp.ge.s32.totalorder %s1110_s23, 1  ;;  %p242_p8 = scmp.lt.s32.totalorder %s1110_s23, 28 }
  0x4a   : > { %p243_p10 = pnand %p778_p5, %p242_p8 }
  0x4b   : > { %s249_s26 = sand.u32 (!%p243_p10), 1, %s1086_s17   ;;  %s255_s4 = sand.u32 (!%p243_p10), 1, %s1078_s15  }
  0x4c   : > { %246 = sbr.rel (%p243_p10) target bundleno = 399 (0x18f), region = 66  ;;  %s1296_s8 = sshll.u32 (!%p243_p10), %s249_s26, 4 }
  0x4d   : > { %s780_s29 = sshll.u32 (!%p243_p10), %s255_s4, 8  ;;  %s251_s28 = scalar_lea.vmem (!%p243_p10), [#allocation3], %s1296_s8 }
  0x4e   : > { %s256_s5 = scalar_lea.sflag (!%p243_p10), [#allocation5], %s255_s4  ;;  %s1299_s7 = scalar_lea.vmem (!%p243_p10), [#allocation4], %s780_s29 }
  0x53   : > { %1061 = dma.done.wait (%p1234_p12), %s256_s5, 4096  }
  0x54   : > { %1063 = vsyncadd (%p1234_p12), %s256_s5, 4294963200  ;;  %s286_s27 = sand.u32 1, %s1066_s12   ;;  %s782_s30 = sshll.u32 %s1098_s20, 1 }
  0x55   : > { %s781_s10 = sshll.u32 %s286_s27, 4  ;;  %p294_p9 = scmp.lt.s32.totalorder %s782_s30, 17 }
  0x56   : > { %s1313_s18 = scalar_lea.vmem [#allocation6], %s781_s10  ;;  %p783_p1 = scmp.ne.s32.totalorder %s1094_s19, 0 }
  0x57   : > { %s1442_s30 = smov (!%p294_p9, %s782_s30), 17  ;;  %v1116_v2 = vmov (!%p783_p1), 0.0  }
  0x58   : > { %s296_s24 = scalar_lea.vmem %s1406_s2, %s1442_s30  ;;  %303 = sbr.rel (%p783_p1) target bundleno = 95 (0x5f), region = 78  ;;  %304 = vst [vmem:[#allocation2] sm:$0xff] (!%p783_p1), %v1116_v2  ;;  %305 = vst [vmem:[#allocation2 + $0x8] sm:$0xff] (!%p783_p1), %v1116_v2 }
  0x59   : > { %306 = vst [vmem:[#allocation2 + $0x10] sm:$0xff] (!%p783_p1), %v1116_v2  ;;  %307 = vst [vmem:[#allocation2 + $0x18] sm:$0xff] (!%p783_p1), %v1116_v2 }
  0x5f PF: > { %v933_v3 = vld [vmem:[%s1299_s7 + $0x4] ss:$8 sps:$4 sm:$0xff]   ;;  %v935_v4 = vld [vmem:[%s1299_s7] ss:$8 sps:$4 sm:$0xff]   ;;  %v936_v5 = vld [vmem:[%s1299_s7 + $0x14] ss:$8 sps:$4 sm:$0xff]  }
  0x60   : > { %516 = vmatprep.subr.bf16.mxu0 %v933_v3  ;;  %v938_v6 = vld [vmem:[%s1299_s7 + $0x10] ss:$8 sps:$4 sm:$0xff]   ;;  %v939_v7 = vld [vmem:[%s1299_s7 + $0x24] ss:$8 sps:$4 sm:$0xff]   ;;  %v941_v8 = vld [vmem:[%s1299_s7 + $0x20] ss:$8 sps:$4 sm:$0xff]  }
  0x61   : > { %517 = vmatpush1.bf16.msra.mxu0 %v935_v4  ;;  %v942_v9 = vld [vmem:[%s1299_s7 + $0x34] ss:$8 sps:$4 sm:$0xff]   ;;  %v944_v10 = vld [vmem:[%s1299_s7 + $0x30] ss:$8 sps:$4 sm:$0xff]   ;;  %v945_v11 = vld [vmem:[%s1299_s7 + $0x44] ss:$8 sps:$4 sm:$0xff]  }
  0x62   : > { %518 = vmatprep.subr.bf16.mxu0 %v936_v5  ;;  %v947_v12 = vld [vmem:[%s1299_s7 + $0x40] ss:$8 sps:$4 sm:$0xff]   ;;  %v948_v13 = vld [vmem:[%s1299_s7 + $0x54] ss:$8 sps:$4 sm:$0xff]   ;;  %v950_v14 = vld [vmem:[%s1299_s7 + $0x50] ss:$8 sps:$4 sm:$0xff]  }
  0x63   : > { %v951_v15 = vld [vmem:[%s1299_s7 + $0x64] ss:$8 sps:$4 sm:$0xff]   ;;  %v953_v17 = vld [vmem:[%s1299_s7 + $0x60] ss:$8 sps:$4 sm:$0xff]   ;;  %v954_v18 = vld [vmem:[%s1299_s7 + $0x74] ss:$8 sps:$4 sm:$0xff]  }
  0x64   : > { %v983_v16 = vld [vmem:[%s251_s28 + $0x4] ss:$8 sps:$4 sm:$0xff]   ;;  %v956_v19 = vld [vmem:[%s1299_s7 + $0x70] ss:$8 sps:$4 sm:$0xff]   ;;  %v959_v21 = vld [vmem:[%s1299_s7 + $0x80] ss:$8 sps:$4 sm:$0xff]  }
  0x65   : > { %519 = vmatpush1.bf16.msra.mxu0 %v938_v6  ;;  %548 = vmatprep.mubr.bf16.mxu0 %v983_v16  ;;  %v957_v20 = vld [vmem:[%s1299_s7 + $0x84] ss:$8 sps:$4 sm:$0xff]   ;;  %v960_v22 = vld [vmem:[%s1299_s7 + $0x94] ss:$8 sps:$4 sm:$0xff]   ;;  %v962_v23 = vld [vmem:[%s1299_s7 + $0x90] ss:$8 sps:$4 sm:$0xff]  }
  0x66   : > { %520 = vmatprep.subr.bf16.mxu0 %v939_v7  ;;  %v963_v24 = vld [vmem:[%s1299_s7 + $0xa4] ss:$8 sps:$4 sm:$0xff]   ;;  %v965_v25 = vld [vmem:[%s1299_s7 + $0xa0] ss:$8 sps:$4 sm:$0xff]   ;;  %v966_v26 = vld [vmem:[%s1299_s7 + $0xb4] ss:$8 sps:$4 sm:$0xff]  }
  0x67   : > { %v968_v27 = vld [vmem:[%s1299_s7 + $0xb0] ss:$8 sps:$4 sm:$0xff]   ;;  %v969_v28 = vld [vmem:[%s1299_s7 + $0xc4] ss:$8 sps:$4 sm:$0xff]   ;;  %v971_v29 = vld [vmem:[%s1299_s7 + $0xc0] ss:$8 sps:$4 sm:$0xff]  }
  0x68   : > { %v972_v30 = vld [vmem:[%s1299_s7 + $0xd4] ss:$8 sps:$4 sm:$0xff]   ;;  %v974_v31 = vld [vmem:[%s1299_s7 + $0xd0] ss:$8 sps:$4 sm:$0xff]   ;;  %v975_v32 = vld [vmem:[%s1299_s7 + $0xe4] ss:$8 sps:$4 sm:$0xff]  }
  0x69   : > { %521 = vmatpush1.bf16.msra.mxu0 %v941_v8  ;;  %v977_v33 = vld [vmem:[%s1299_s7 + $0xe0] ss:$8 sps:$4 sm:$0xff]   ;;  %v978_v34 = vld [vmem:[%s1299_s7 + $0xf4] ss:$8 sps:$4 sm:$0xff]   ;;  %v980_v35 = vld [vmem:[%s1299_s7 + $0xf0] ss:$8 sps:$4 sm:$0xff]  }
  0x6a   : > { %522 = vmatprep.subr.bf16.mxu0 %v942_v9  ;;  %v981_v36 = vld [vmem:[%s251_s28] ss:$8 sps:$4 sm:$0xff]   ;;  %p818_p12 = scmp.ne.s32.totalorder %s1094_s19, 2 }
  0x6b   : > { %v308_v37 = vld [vmem:[#allocation2] sm:$0xff]  ;;  %v309_v38 = vld [vmem:[#allocation2 + $0x8] sm:$0xff]  ;;  %v310_v40 = vld [vmem:[#allocation2 + $0x10] sm:$0xff]  ;;  %v577_v49 = vlaneseq (!%p818_p12) }
  0x6c   : > { %v311_v43 = vld [vmem:[#allocation2 + $0x18] sm:$0xff]  ;;  %v575_v51 = vld [vmem:[%s296_s24] sm:$0x3] (!%p818_p12) }
  0x6d   : > { %523 = vmatpush1.bf16.msra.mxu0 %v944_v10  ;;  %v578_v50 = vshrl.u32 (!%p818_p12), %v577_v49, 7 }
  0x6e   : > { %524 = vmatprep.subr.bf16.mxu0 %v945_v11 }
  0x6f   : > { %v579_v53 = vsub.s32 (!%p818_p12), 0, %v578_v50  ;;  %v583_v54 = vsub.s32 (!%p818_p12), 1, %v578_v50 }
  0x71   : > { %525 = vmatpush1.bf16.msra.mxu0 %v947_v12  ;;  %v580_v58 = vrot.slane (!%p818_p12), %v575_v51, %v579_v53  ;;  %v584_v59 = vrot.slane (!%p818_p12), %v575_v51, %v583_v54 }
  0x72   : > { %526 = vmatprep.subr.bf16.mxu0 %v948_v13 }
  0x75   : > { %527 = vmatpush1.bf16.msra.mxu0 %v950_v14 }
  0x76   : > { %528 = vmatprep.subr.bf16.mxu0 %v951_v15 }
  0x79   : > { %529 = vmatpush1.bf16.msra.mxu0 %v953_v17 }
  0x7a   : > { %530 = vmatprep.subr.bf16.mxu0 %v954_v18 }
  0x7d   : > { %531 = vmatpush1.bf16.msra.mxu0 %v956_v19 }
  0x7e   : > { %532 = vmatprep.subr.bf16.mxu0 %v957_v20 }
  0x81   : > { %533 = vmatpush1.bf16.msra.mxu0 %v959_v21 }
  0x82   : > { %534 = vmatprep.subr.bf16.mxu0 %v960_v22 }
  0x85   : > { %535 = vmatpush1.bf16.msra.mxu0 %v962_v23 }
  0x86   : > { %536 = vmatprep.subr.bf16.mxu0 %v963_v24 }
  0x89   : > { %537 = vmatpush1.bf16.msra.mxu0 %v965_v25 }
  0x8a   : > { %538 = vmatprep.subr.bf16.mxu0 %v966_v26 }
  0x8d   : > { %539 = vmatpush1.bf16.msra.mxu0 %v968_v27 }
  0x8e   : > { %540 = vmatprep.subr.bf16.mxu0 %v969_v28 }
  0x91   : > { %541 = vmatpush1.bf16.msra.mxu0 %v971_v29 }
  0x92   : > { %542 = vmatprep.subr.bf16.mxu0 %v972_v30 }
  0x95   : > { %543 = vmatpush1.bf16.msra.mxu0 %v974_v31 }
  0x96   : > { %544 = vmatprep.subr.bf16.mxu0 %v975_v32 }
  0x99   : > { %545 = vmatpush1.bf16.msra.mxu0 %v977_v33 }
  0x9a   : > { %546 = vmatprep.subr.bf16.mxu0 %v978_v34 }
  0x9d   : > { %547 = vmatpush1.bf16.msra.mxu0 %v980_v35 }
  0xa0   : > { %549 = vmatmul.mubr.bf16.vlgmr.msra.gmra.mrb[0].mxu0 %v981_v36 }
 0x173   : > { %v550_v39 = vpop.f32.mrb[0].mxu0  ;;  %570 = sbr.rel (%p818_p12) target bundleno = 390 (0x186), region = 82 }
 0x174   : > { %v559_v41 = vadd.f32 %v550_v39, %v308_v37  ;;  %v552_v42 = vpop.f32.mrb[1].mxu0 }
 0x175   : > { %v560_v44 = vadd.f32 %v552_v42, %v309_v38  ;;  %v554_v45 = vpop.f32.mrb[2].mxu0 }
 0x176   : > { %563 = vst [vmem:[#allocation2] sm:$0xff] %v559_v41  ;;  %v561_v46 = vadd.f32 %v554_v45, %v310_v40  ;;  %v556_v47 = vpop.f32.mrb[3].mxu0 }
 0x177   : > { %564 = vst [vmem:[#allocation2 + $0x8] sm:$0xff] %v560_v44  ;;  %v562_v48 = vadd.f32 %v556_v47, %v311_v43 }
 0x178   : > { %565 = vst [vmem:[#allocation2 + $0x10] sm:$0xff] %v561_v46 }
 0x179   : > { %566 = vst [vmem:[#allocation2 + $0x18] sm:$0xff] %v562_v48 }
 0x17d   : > { %v571_v52 = vld [vmem:[#allocation2] sm:$0xff] }
 0x17e   : > { %v572_v55 = vld [vmem:[#allocation2 + $0x8] sm:$0xff]  ;;  %v587_v60 = vadd.f32 %v580_v58, %v571_v52 }
 0x17f   : > { %v573_v56 = vld [vmem:[#allocation2 + $0x10] sm:$0xff]  ;;  %v588_v61 = vadd.f32 %v584_v59, %v572_v55 }
 0x180   : > { %v574_v57 = vld [vmem:[#allocation2 + $0x18] sm:$0xff]  ;;  %v589_v62 = vadd.f32 %v580_v58, %v573_v56 }
 0x181   : > { %v590_v63 = vadd.f32 %v584_v59, %v574_v57  ;;  %v827_v0 = vpack.c.bf16 %v588_v61, %v587_v60 }
 0x183   : > { %v828_v1 = vpack.c.bf16 %v590_v63, %v589_v62  ;;  %603 = vst [vmem:[%s1313_s18] sm:$0xff] %v827_v0 }
 0x185   : > { %604 = vst [vmem:[%s1313_s18 + $0x8] sm:$0xff] %v828_v1 }
 0x186 PF: > { %p1420_p11 = scmp.ne.s32.totalorder %s1419_s14, 0 }
 0x187   : > { %s829_s19 = sshll.u32 (%p1420_p11), %s1098_s20, 3 }
 0x188   : > { %611 = sbr.rel (!%p1420_p11) target bundleno = 399 (0x18f), region = 86  ;;  %s617_s4 = scalar_lea.vmem (%p1420_p11), %s1407_s3, %s829_s19 }
 0x18a   : > { %v647_v2 = vld [vmem:[%s1313_s18] sm:$0xff] (%p1420_p11) }
 0x18b   : > { %648 = vst [vmem:[%s617_s4] sm:$0xff] (%p1420_p11), %v647_v2 }
 0x18c   : > { %v649_v3 = vld [vmem:[%s1313_s18 + $0x8] sm:$0xff] (%p1420_p11) }
 0x18d   : > { %650 = vst [vmem:[%s617_s4 + $0x48] sm:$0xff] (%p1420_p11), %v649_v3 }
 0x18f PF: > { %s16_s23 = sadd.s32 1, %s1110_s23   ;;  %s1421_s8 = sld [smem:[#allocation12_spill]] }
 0x190   : > { %p13_p13 = scmp.ge.s32.totalorder %s16_s23, 29   ;;  %s1422_s17 = sld [smem:[#allocation8_spill]] }
 0x191   : > { %s1423_s18 = sld [smem:[#allocation11_spill]]  ;;  %s1424_s29 = sld [smem:[#allocation9_spill]] }
 0x192   : > { %s1425_s28 = sld [smem:[#allocation10_spill]]  ;;  %s1426_s12 = smov %s1070_s13 }
 0x193   : > { %s1427_s13 = smov %s1240_s11  ;;  %s1428_s14 = smov %s1078_s15 }
 0x194   : > { %s1429_s15 = smov %s1082_s16  ;;  %s1431_s19 = smov %s1102_s21 }
 0x195   : > { %s1430_s16 = smov %s1421_s8  ;;  %s1432_s20 = smov %s1106_s22 }
 0x196   :  { %15 = sbr.rel (!%p13_p13) target bundleno = 7 (0x7), region = 167 }
 0x197   : > { %s1433_s21 = smov %s1424_s29 }
 0x198   : > { %s1434_s22 = smov %s1425_s28 }
 0x19d   :  { %666 = vsyncpa [#allocation5], 1 }
 0x19e   :  { %668 = vsyncpa [#allocation5 + $0x1], 1 }

// kernel: bert_ner_forward.17
= control target key start
LH: loop header
LB: loop body
LE: loop exit
PB: predicated region body
PF: predicated region fallthrough
CT: control target
= control target key end

     0   :  { %v101_v61 = vlaneseq  ;;  %s384_s0 = inlined_call_operand.vmem [shape: f32[16,768], index: 0, kind: input, shape index: {}]   ;;  %s385_s1 = inlined_call_operand.vmem [shape: f32[1,768], index: 1, kind: input, shape index: {}]   ;;  %s386_s2 = inlined_call_operand.vmem [shape: f32[1,768], index: 2, kind: input, shape index: {}]   ;;  %s387_s3 = inlined_call_operand.vmem [shape: bf16[16,768], index: 3, kind: output, shape index: {}]  }
   0x1   :  { %v14_v0 = vld [vmem:[%s384_s0] sm:$0xff]  ;;  %v15_v1 = vld [vmem:[%s384_s0 + $0x8] sm:$0xff]  ;;  %v16_v2 = vld [vmem:[%s384_s0 + $0x10] sm:$0xff] }
   0x2   :  { %v17_v3 = vld [vmem:[%s384_s0 + $0x18] sm:$0xff]  ;;  %v26_v4 = vadd.f32 %v15_v1, %v14_v0  ;;  %v20_v5 = vld [vmem:[%s384_s0 + $0x30] sm:$0xff]  ;;  %v22_v7 = vld [vmem:[%s384_s0 + $0x40] sm:$0xff] }
   0x3   :  { %v21_v6 = vld [vmem:[%s384_s0 + $0x38] sm:$0xff]  ;;  %v18_v10 = vld [vmem:[%s384_s0 + $0x20] sm:$0xff]  ;;  %v23_v11 = vld [vmem:[%s384_s0 + $0x48] sm:$0xff] }
   0x4   :  { %v27_v8 = vadd.f32 %v26_v4, %v16_v2  ;;  %v33_v9 = vadd.f32 %v21_v6, %v20_v5  ;;  %v19_v14 = vld [vmem:[%s384_s0 + $0x28] sm:$0xff]  ;;  %v24_v15 = vld [vmem:[%s384_s0 + $0x50] sm:$0xff]  ;;  %v25_v18 = vld [vmem:[%s384_s0 + $0x58] sm:$0xff] }
   0x6   :  { %v28_v12 = vadd.f32 %v27_v8, %v17_v3  ;;  %v34_v13 = vadd.f32 %v33_v9, %v22_v7 }
   0x8   :  { %v29_v16 = vadd.f32 %v28_v12, %v18_v10  ;;  %v35_v17 = vadd.f32 %v34_v13, %v23_v11 }
   0xa   :  { %v30_v19 = vadd.f32 %v29_v16, %v19_v14  ;;  %v36_v20 = vadd.f32 %v35_v17, %v24_v15 }
   0xc   :  { %31 = vadd.xlane.f32.xlu0 %v30_v19  ;;  %v37_v21 = vadd.f32 %v36_v20, %v25_v18 }
  0x10   :  { %38 = vadd.xlane.f32.xlu0 %v37_v21 }
  0x99   :  { %v32_v22 = vpop.xlane.xlu0 %31 }
  0x9a   :  { %v41_v23 = vmul.f32 0.0013020834, %v32_v22 }
  0x9c   :  { %v305_v24 = vsub.f32 %v14_v0, %v41_v23  ;;  %v307_v25 = vsub.f32 %v15_v1, %v41_v23  ;;  %v309_v26 = vsub.f32 %v16_v2, %v41_v23  ;;  %v311_v28 = vsub.f32 %v17_v3, %v41_v23 }
  0x9d   :  { %v39_v27 = vpop.xlane.xlu0 %38  ;;  %v317_v32 = vsub.f32 %v18_v10, %v41_v23  ;;  %v48_v38 = vsub.f32 %v19_v14, %v41_v23  ;;  %v102_v1 = vshrl.u32 %v101_v61, 7 }
  0x9e   :  { %v42_v29 = vmul.f32 0.0013020834, %v39_v27  ;;  %v55_v30 = vmul.f32 %v305_v24, %v305_v24  ;;  %v56_v31 = vmul.f32 %v307_v25, %v307_v25  ;;  %v57_v33 = vmul.f32 %v309_v26, %v309_v26 }
  0x9f   :  { %v58_v39 = vmul.f32 %v311_v28, %v311_v28  ;;  %v59_v44 = vmul.f32 %v317_v32, %v317_v32  ;;  %v60_v49 = vmul.f32 %v48_v38, %v48_v38  ;;  %v103_v4 = vsub.s32 0, %v102_v1 }
  0xa0   :  { %v67_v34 = vadd.f32 %v56_v31, %v55_v30  ;;  %v321_v35 = vsub.f32 %v20_v5, %v42_v29  ;;  %v323_v36 = vsub.f32 %v21_v6, %v42_v29  ;;  %v325_v37 = vsub.f32 %v22_v7, %v42_v29  ;;  %v99_v6 = vld [vmem:[%s385_s1] sm:$0x3f] }
  0xa1   :  { %v329_v41 = vsub.f32 %v23_v11, %v42_v29  ;;  %v337_v46 = vsub.f32 %v24_v15, %v42_v29  ;;  %v341_v51 = vsub.f32 %v25_v18, %v42_v29  ;;  %v107_v5 = vsub.s32 1, %v102_v1  ;;  %v143_v11 = vld [vmem:[%s386_s2] sm:$0x3f] }
  0xa2   :  { %v68_v40 = vadd.f32 %v67_v34, %v57_v33  ;;  %v61_v42 = vmul.f32 %v321_v35, %v321_v35  ;;  %v62_v43 = vmul.f32 %v323_v36, %v323_v36  ;;  %v63_v47 = vmul.f32 %v325_v37, %v325_v37 }
  0xa3   :  { %v64_v52 = vmul.f32 %v329_v41, %v329_v41  ;;  %v65_v55 = vmul.f32 %v337_v46, %v337_v46  ;;  %v66_v57 = vmul.f32 %v341_v51, %v341_v51  ;;  %v111_v7 = vsub.s32 2, %v102_v1 }
  0xa4   :  { %v69_v45 = vadd.f32 %v68_v40, %v58_v39  ;;  %v74_v48 = vadd.f32 %v62_v43, %v61_v42  ;;  %v115_v8 = vsub.s32 3, %v102_v1  ;;  %v119_v9 = vsub.s32 4, %v102_v1 }
  0xa5   :  { %v123_v10 = vsub.s32 5, %v102_v1  ;;  %v104_v12 = vrot.slane %v99_v6, %v103_v4  ;;  %v108_v13 = vrot.slane %v99_v6, %v107_v5  ;;  %v112_v14 = vrot.slane %v99_v6, %v111_v7 }
  0xa6   :  { %v70_v50 = vadd.f32 %v69_v45, %v59_v44  ;;  %v75_v53 = vadd.f32 %v74_v48, %v63_v47  ;;  %v116_v15 = vrot.slane %v99_v6, %v115_v8  ;;  %v120_v16 = vrot.slane %v99_v6, %v119_v9 }
  0xa7   :  { %v124_v17 = vrot.slane %v99_v6, %v123_v10  ;;  %v148_v19 = vrot.slane %v143_v11, %v103_v4  ;;  %v152_v20 = vrot.slane %v143_v11, %v107_v5  ;;  %v156_v21 = vrot.slane %v143_v11, %v111_v7 }
  0xa8   :  { %v71_v54 = vadd.f32 %v70_v50, %v60_v49  ;;  %v76_v56 = vadd.f32 %v75_v53, %v64_v52  ;;  %v160_v22 = vrot.slane %v143_v11, %v115_v8  ;;  %v164_v31 = vrot.slane %v143_v11, %v119_v9 }
  0xa9   :  { %v168_v33 = vrot.slane %v143_v11, %v123_v10 }
  0xaa   :  { %72 = vadd.xlane.f32.xlu1 %v71_v54  ;;  %v77_v58 = vadd.f32 %v76_v56, %v65_v55 }
  0xac   :  { %v78_v59 = vadd.f32 %v77_v58, %v66_v57 }
  0xae   :  { %79 = vadd.xlane.f32.xlu1 %v78_v59 }
 0x137   :  { %v73_v60 = vpop.xlane.xlu1 %72 }
 0x138   :  { %v81_v62 = vmul.f32 0.0013020834, %v73_v60 }
 0x13a   :  { %v83_v63 = vadd.f32 1e-12, %v81_v62 }
 0x13b   :  { %v80_v0 = vpop.xlane.xlu1 %79 }
 0x13c   :  { %245 = vrsqrt.f32 %v83_v63  ;;  %v82_v2 = vmul.f32 0.0013020834, %v80_v0 }
 0x13e   :  { %v84_v3 = vadd.f32 1e-12, %v82_v2 }
 0x140   :  { %247 = vrsqrt.f32 %v84_v3 }
 0x146   :  { %v246_v18 = vpop.eup %245 }
 0x147   :  { %v87_v23 = vmul.f32 %v246_v18, %v305_v24  ;;  %v88_v27 = vmul.f32 %v246_v18, %v307_v25  ;;  %v89_v29 = vmul.f32 %v246_v18, %v309_v26  ;;  %v90_v30 = vmul.f32 %v246_v18, %v311_v28 }
 0x148   :  { %v91_v34 = vmul.f32 %v246_v18, %v317_v32  ;;  %v92_v39 = vmul.f32 %v246_v18, %v48_v38 }
 0x149   :  { %v131_v40 = vmul.f32 %v104_v12, %v87_v23  ;;  %v132_v42 = vmul.f32 %v108_v13, %v88_v27  ;;  %v133_v43 = vmul.f32 %v112_v14, %v89_v29  ;;  %v134_v44 = vmul.f32 %v116_v15, %v90_v30 }
 0x14a   :  { %v248_v45 = vpop.eup %247  ;;  %v135_v47 = vmul.f32 %v120_v16, %v91_v34  ;;  %v136_v48 = vmul.f32 %v124_v17, %v92_v39 }
 0x14b   :  { %v175_v49 = vadd.f32 %v148_v19, %v131_v40  ;;  %v176_v24 = vadd.f32 %v152_v20, %v132_v42  ;;  %v177_v50 = vadd.f32 %v156_v21, %v133_v43  ;;  %v178_v25 = vadd.f32 %v160_v22, %v134_v44 }
 0x14c   :  { %v179_v52 = vadd.f32 %v164_v31, %v135_v47  ;;  %v180_v26 = vadd.f32 %v168_v33, %v136_v48  ;;  %v93_v28 = vmul.f32 %v248_v45, %v321_v35  ;;  %v94_v53 = vmul.f32 %v248_v45, %v323_v36 }
 0x14d   :  { %v239_v54 = vpack.c.bf16 %v176_v24, %v175_v49  ;;  %v240_v32 = vpack.c.bf16 %v178_v25, %v177_v50  ;;  %v95_v38 = vmul.f32 %v248_v45, %v325_v37  ;;  %v96_v55 = vmul.f32 %v248_v45, %v329_v41 }
 0x14e   :  { %v241_v56 = vpack.c.bf16 %v180_v26, %v179_v52  ;;  %v97_v57 = vmul.f32 %v248_v45, %v337_v46  ;;  %v98_v58 = vmul.f32 %v248_v45, %v341_v51  ;;  %v137_v59 = vmul.f32 %v104_v12, %v93_v28 }
 0x14f   :  { %223 = vst [vmem:[%s387_s3] sm:$0xff] %v239_v54  ;;  %224 = vst [vmem:[%s387_s3 + $0x8] sm:$0xff] %v240_v32  ;;  %v138_v35 = vmul.f32 %v108_v13, %v94_v53  ;;  %v139_v36 = vmul.f32 %v112_v14, %v95_v38  ;;  %v140_v60 = vmul.f32 %v116_v15, %v96_v55 }
 0x150   :  { %225 = vst [vmem:[%s387_s3 + $0x10] sm:$0xff] %v241_v56  ;;  %v141_v37 = vmul.f32 %v120_v16, %v97_v57  ;;  %v142_v41 = vmul.f32 %v124_v17, %v98_v58  ;;  %v181_v46 = vadd.f32 %v148_v19, %v137_v59 }
 0x151   :  { %v182_v51 = vadd.f32 %v152_v20, %v138_v35  ;;  %v183_v61 = vadd.f32 %v156_v21, %v139_v36  ;;  %v184_v62 = vadd.f32 %v160_v22, %v140_v60 }
 0x152   :  { %v185_v63 = vadd.f32 %v164_v31, %v141_v37  ;;  %v186_v0 = vadd.f32 %v168_v33, %v142_v41 }
 0x153   :  { %v242_v1 = vpack.c.bf16 %v182_v51, %v181_v46  ;;  %v243_v2 = vpack.c.bf16 %v184_v62, %v183_v61 }
 0x154   :  { %v244_v3 = vpack.c.bf16 %v186_v0, %v185_v63 }
 0x155   :  { %226 = vst [vmem:[%s387_s3 + $0x18] sm:$0xff] %v242_v1  ;;  %227 = vst [vmem:[%s387_s3 + $0x20] sm:$0xff] %v243_v2 }
 0x156   :  { %228 = vst [vmem:[%s387_s3 + $0x28] sm:$0xff] %v244_v3 }

// kernel: bert_ner_forward.19
= control target key start
LH: loop header
LB: loop body
LE: loop exit
PB: predicated region body
PF: predicated region fallthrough
CT: control target
= control target key end

     0   :  { %s873_s15 = smov 0   ;;  %s875_s16 = smov 0   ;;  %s980_s0 = inlined_call_operand.vmem [shape: bf16[16,2304], index: 0, kind: input, shape index: {}, may-alias: {0,1,2}]   ;;  %s981_s1 = inlined_call_operand.vmem [shape: bf16[16,2304], index: 1, kind: input, shape index: {}, may-alias: {0,1,2}]   ;;  %s982_s2 = inlined_call_operand.vmem [shape: bf16[16,2304], index: 2, kind: input, shape index: {}, may-alias: {0,1,2}]   ;;  %s983_s3 = inlined_call_operand.vmem [shape: f32[2,1,8], index: 3, kind: input, shape index: {}]   ;;  %s984_s4 = inlined_call_operand.vmem [shape: bf16[16,768], index: 4, kind: output, shape index: {}]  }
   0x1   :  { %s877_s17 = smov 0   ;;  %s879_s18 = smov 0  }
   0x2   :  { %s881_s19 = smov 0  }
   0x3 LB: > { %s23_s20 = sadd.s32 1, %s835_s17  ;;  %s26_s21 = sadd.s32 1, %s839_s18  ;;  %s843_s19 = sphi %s881_s19, %s14_s19   ;;  %s839_s18 = sphi %s879_s18, %s988_s18   ;;  %s835_s17 = sphi %s877_s17, %s987_s17   ;;  %s831_s16 = sphi %s875_s16, %s986_s16   ;;  %s827_s15 = sphi %s873_s15, %s985_s15  }
   0x4   : > { %p24_p0 = scmp.ge.s32.totalorder %s23_s20, 6  ;;  %p702_p1 = scmp.ge.s32.totalorder %s843_s19, 1 }
   0x5   : > { %p227_p2 = scmp.lt.s32.totalorder %s843_s19, 13 }
   0x6   : > { %s990_s20 = smov (%p24_p0, %s23_s20), 0  ;;  %s992_s21 = smov (!%p24_p0, %s26_s21), %s839_s18 }
   0x7   : > { %p228_p3 = pnand %p702_p1, %p227_p2  ;;  %p28_p4 = scmp.ge.s32.totalorder %s992_s21, 2 }
   0x8   : > { %p280_p5 = scmp.lt.s32.totalorder (!%p228_p3), %s831_s16, 1  ;;  %s288_s22 = sadd.s32 (!%p228_p3), 6, %s827_s15  ;;  %v845_v0 = vmov (!%p228_p3), 0.0   ;;  %vm846_vm0 = vmmov (!%p228_p3), 0   ;;  %vm324_vm1 = vcmask (!%p228_p3), 523264   ;;  %vm379_vm2 = vcmask (!%p228_p3), 64512  }
   0x9   : > { %s994_s21 = smov (%p28_p4, %s992_s21), 0  ;;  %231 = sbr.rel (%p228_p3) target bundleno = 1434 (0x59a), region = 36 }
   0xa   : > { %725 = vmatprep.subr.bf16.mxu0 (!%p228_p3), %v845_v0  ;;  %p291_p6 = scmp.lt.s32.totalorder (!%p228_p3), %s288_s22, 17  ;;  %727 = vmatprep.mubr.msk.bf16.mxu0 (!%p228_p3), %vm846_vm0, %v845_v0  ;;  %p282_p7 = scmp.lt.s32.totalorder (!%p228_p3), %s827_s15, 17  ;;  %vm395_vm3 = vcmask (!%p228_p3), 1043456  }
   0xb   : > { %731 = vmatprep.subr.bf16.mxu1 (!%p228_p3), %v845_v0  ;;  %733 = vmatprep.mubr.msk.bf16.mxu1 (!%p228_p3), %vm846_vm0, %v845_v0  ;;  %s847_s12 = smov (!%p228_p3), 64   ;;  %s298_s13 = sadd.s32 (!%p228_p3), 12, %s827_s15 }
   0xc   : > { %p301_p8 = scmp.lt.s32.totalorder (!%p228_p3), %s298_s13, 17  ;;  %p313_p9 = scmp.lt.s32.totalorder (!%p228_p3), %s827_s15, 5 }
  0x10   : > { %s996_s16 = smov (!%p280_p5, %s831_s16), 1  ;;  %s998_s22 = smov (!%p291_p6, %s288_s22), 17 }
  0x11   : > { %s916_s23 = smul.u32 18, %s996_s16  ;;  %s310_s11 = scalar_lea.vmem %s983_s3, %s996_s16 }
  0x12   : > { %s283_s24 = scalar_select %p282_p7, %s827_s15, 17  ;;  %v708_v5 = vld [vmem:[%s310_s11] ss:$0 sm:$0xff] }
  0x13   : > { %s294_s25 = sadd.s32 %s916_s23, %s998_s22  ;;  %s1000_s13 = smov (!%p301_p8, %s298_s13), 17 }
  0x14   : > { %s704_s26 = sshll.u32 %s294_s25, 2  ;;  %s285_s27 = sadd.s32 %s916_s23, %s283_s24 }
  0x15   : > { %s296_s30 = scalar_lea.vmem %s981_s1, %s704_s26  ;;  %s703_s5 = sshll.u32 %s285_s27, 2 }
  0x16   : > { %v322_v1 = vld [vmem:[%s296_s30] sm:$0xf]  ;;  %s287_s8 = scalar_lea.vmem %s980_s0, %s703_s5  ;;  %s304_s14 = sadd.s32 %s916_s23, %s1000_s13 }
  0x17   : > { %v329_v2 = vsel %vm324_vm1, %v322_v1, 0  ;;  %v321_v3 = vld [vmem:[%s287_s8] sm:$0xf]  ;;  %v711_v12 = vcombine.low %v322_v1, %v322_v1  ;;  %s705_s22 = sshll.u32 %s304_s14, 2  ;;  %s750_s23 = smul.u32 6, %s996_s16 }
  0x18   : > { %726 = vmatpush3.bf16.xpose.msra.mxu0 %v329_v2  ;;  %v710_v13 = vcombine.low %v321_v3, %v321_v3  ;;  %s306_s26 = scalar_lea.vmem %s982_s2, %s705_s22  ;;  %s1002_s15 = smov (!%p313_p9, %s827_s15), 5 }
  0x19   : > { %743 = vmatprep.subr.bf16.mxu0 %v845_v0  ;;  %447 = vrot.lane.b32.xlu1 %v711_v12, %s847_s12  ;;  %v323_v19 = vld [vmem:[%s306_s26] sm:$0xf]  ;;  %s316_s27 = sadd.s32 %s750_s23, %s1002_s15 }
  0x1a   : > { %v397_v20 = vsel %vm395_vm3, %v323_v19, 0  ;;  %v713_v39 = vcombine.low %v323_v19, %v323_v19  ;;  %s706_s28 = sshll.u32 %s316_s27, 2 }
  0x1b   : > { %732 = vmatpush3.bf16.msra.mxu1 %v397_v20  ;;  %s318_s5 = scalar_lea.vmem %s984_s4, %s706_s28 }
  0x1c   : > { %737 = vmatprep.subr.bf16.mxu1 %v845_v0 }
  0x1d   : > { %442 = vrot.lane.b32.xlu1 %v710_v13, %s847_s12 }
  0x1f   : > { %728 = vmatmul.mubr.msk.bf16.vlgmr.msra.gmra.mrb[0].mxu0 %vm324_vm1, %v321_v3 }
  0x20   : > { %745 = vmatprep.mubr.msk.bf16.mxu0 %vm846_vm0, %v845_v0 }
  0x8b   : > { %v448_v23 = vpop.permute.xlu1 %447 }
  0x8c   : > { %v453_v25 = vsel %vm324_vm1, %v448_v23, 0 }
  0x8f   : > { %v443_v27 = vpop.permute.xlu1 %442 }
  0xf2   : > { %v365_v4 = vpop.f32.mrb[0].mxu0 }
  0xf3   : > { %v371_v6 = vmul.f32 0.125, %v365_v4  ;;  %v729_v7 = vpop.f32.mrb[1].mxu0 }
  0xf4   : > { %v368_v8 = vpop.f32.mrb[2].mxu0 }
  0xf5   : > { %v730_v9 = vpop.f32.mrb[3].mxu0  ;;  %v378_v10 = vadd.f32 %v708_v5, %v371_v6 }
  0xf7   : > { %v380_v11 = vsel %vm379_vm2, %v378_v10, -inf }
  0xf8   : > { %381 = vmax.xlane.f32.xlu0 %v380_v11 }
 0x185   : > { %v382_v14 = vpop.xlane.xlu0 %381 }
 0x186   : > { %v383_v15 = vsub.f32 %v378_v10, %v382_v14 }
 0x188   : > { %v384_v16 = vmul.f32 1.442695, %v383_v15 }
 0x18a   : > { %797 = vpow2.f32 %v384_v16 }
 0x194   : > { %v798_v17 = vpop.eup %797 }
 0x195   : > { %v386_v18 = vsel %vm379_vm2, %v798_v17, 0.0 }
 0x196   : > { %387 = vadd.xlane.f32.xlu0 %v386_v18 }
 0x223   : > { %v388_v21 = vpop.xlane.xlu0 %387 }
 0x224   : > { %799 = vrcp.f32 %v388_v21 }
 0x22e   : > { %v800_v22 = vpop.eup %799 }
 0x22f   : > { %v390_v24 = vmul.f32 %v800_v22, %v798_v17 }
 0x231   : > { %v391_v26 = vpack.c.bf16 %v390_v24, %v390_v24 }
 0x233   : > { %734 = vmatmul.mubr.msk.bf16.vlgmr.msra.gmra.mrb[0].mxu1 %vm379_vm2, %v391_v26 }
 0x234   : > { %738 = vmatpush3.bf16.xpose.msra.mxu1 %v453_v25  ;;  %739 = vmatprep.mubr.msk.bf16.mxu1 %vm846_vm0, %v845_v0 }
 0x23b   : > { %740 = vmatmul.mubr.msk.bf16.vlgmr.msra.gmra.mrb[4].mxu1 %vm324_vm1, %v443_v27 }
 0x306   : > { %v433_v28 = vpop.f32.mrb[0].mxu1 }
 0x307   : > { %v735_v29 = vpop.f32.mrb[1].mxu1 }
 0x308   : > { %v436_v30 = vpop.f32.mrb[2].mxu1 }
 0x309   : > { %v736_v31 = vpop.f32.mrb[3].mxu1 }
 0x30e   : > { %v489_v32 = vpop.f32.mrb[4].mxu1 }
 0x30f   : > { %v495_v33 = vmul.f32 0.125, %v489_v32  ;;  %v741_v34 = vpop.f32.mrb[5].mxu1 }
 0x310   : > { %v492_v35 = vpop.f32.mrb[6].mxu1 }
 0x311   : > { %v742_v36 = vpop.f32.mrb[7].mxu1  ;;  %v496_v37 = vadd.f32 %v708_v5, %v495_v33 }
 0x313   : > { %v497_v38 = vsel %vm379_vm2, %v496_v37, -inf }
 0x314   : > { %498 = vmax.xlane.f32.xlu0 %v497_v38 }
 0x32a   : > { %512 = vrot.lane.b32.xlu0 %v713_v39, %s847_s12 }
 0x3a1   : > { %v499_v40 = vpop.xlane.xlu0 %498 }
 0x3a2   : > { %v500_v41 = vsub.f32 %v496_v37, %v499_v40 }
 0x3a4   : > { %v501_v42 = vmul.f32 1.442695, %v500_v41 }
 0x3a5   : > { %v513_v45 = vpop.permute.xlu0 %512 }
 0x3a6   : > { %801 = vpow2.f32 %v501_v42  ;;  %v518_v46 = vsel %vm395_vm3, %v513_v45, 0 }
 0x3a7   : > { %744 = vmatpush3.bf16.msra.mxu0 %v518_v46 }
 0x3b0   : > { %v802_v43 = vpop.eup %801 }
 0x3b1   : > { %v503_v44 = vsel %vm379_vm2, %v802_v43, 0.0 }
 0x3b2   : > { %504 = vadd.xlane.f32.xlu1 %v503_v44 }
 0x43f   : > { %v505_v47 = vpop.xlane.xlu1 %504 }
 0x440   : > { %803 = vrcp.f32 %v505_v47 }
 0x44a   : > { %v804_v48 = vpop.eup %803 }
 0x44b   : > { %v507_v49 = vmul.f32 %v804_v48, %v802_v43 }
 0x44d   : > { %v508_v50 = vpack.c.bf16 %v507_v49, %v507_v49 }
 0x44f   : > { %746 = vmatmul.mubr.msk.bf16.vlgmr.msra.gmra.mrb[4].mxu0 %vm379_vm2, %v508_v50 }
 0x522   : > { %v554_v51 = vpop.f32.mrb[4].mxu0 }
 0x523   : > { %561 = vrot.lane.b32.xlu0 %v554_v51, %s847_s12  ;;  %v747_v52 = vpop.f32.mrb[5].mxu0 }
 0x524   : > { %v557_v53 = vpop.f32.mrb[6].mxu0 }
 0x525   : > { %v748_v54 = vpop.f32.mrb[7].mxu0 }
 0x595   : > { %v562_v55 = vpop.permute.xlu0 %561 }
 0x596   : > { %v564_v56 = vsel %vm324_vm1, %v433_v28, %v562_v55 }
 0x597   : > { %v565_v57 = vpack.c.bf16 %v564_v56, %v564_v56 }
 0x599   : > { %566 = vst [vmem:[%s318_s5] sm:$0xf] %v565_v57 }
 0x59a PF: > { %s14_s19 = sadd.s32 1, %s843_s19   ;;  %s985_s15 = smov %s835_s17 }
 0x59b   : > { %p11_p10 = scmp.ge.s32.totalorder %s14_s19, 14   ;;  %s986_s16 = smov %s839_s18 }
 0x59c   : > { %s987_s17 = smov %s990_s20  ;;  %s988_s18 = smov %s994_s21 }
 0x59d   :  { %13 = sbr.rel (!%p11_p10) target bundleno = 3 (0x3), region = 75 }

// kernel: bert_ner_forward.20
= control target key start
LH: loop header
LB: loop body
LE: loop exit
PB: predicated region body
PF: predicated region fallthrough
CT: control target
= control target key end

     0   :  { %s1214_s12 = smov 0   ;;  %s1216_s13 = smov 0   ;;  %s1501_s0 = inlined_call_operand.vmem [shape: bf16[16,768], index: 0, kind: input, shape index: {}]   ;;  %s1502_s1 = inlined_call_operand.vmem [shape: bf16[768,768], index: 1, kind: input, shape index: {}]   ;;  %s1503_s2 = inlined_call_operand.vmem [shape: f32[1,768], index: 2, kind: input, shape index: {}]   ;;  %s1504_s3 = inlined_call_operand.vmem [shape: bf16[16,768], index: 3, kind: output, shape index: {}]  }
   0x1   :  { %s1218_s14 = smov 0   ;;  %s1220_s15 = smov 0  }
   0x2   :  { %s1222_s16 = smov 0   ;;  %s1224_s17 = smov 0  }
   0x3   :  { %s1226_s18 = smov 0   ;;  %s1228_s19 = smov 0  }
   0x4   :  { %s1230_s20 = smov 0   ;;  %s1232_s21 = smov 0  }
   0x5   :  { %s1234_s22 = smov 0  }
   0x6 LB: > { %s900_s23 = sadd.s32 4294967295, %s1191_s22   ;;  %s25_s24 = sadd.s32 1, %s1183_s20  ;;  %s1191_s22 = sphi %s1234_s22, %s13_s22   ;;  %s1187_s21 = sphi %s1232_s21, %s1525_s21   ;;  %s1183_s20 = sphi %s1230_s20, %s1524_s20   ;;  %s1179_s19 = sphi %s1228_s19, %s1523_s19   ;;  %s1175_s18 = sphi %s1226_s18, %s1522_s18   ;;  %s1171_s17 = sphi %s1224_s17, %s1521_s17   ;;  %s1167_s16 = sphi %s1222_s16, %s1520_s16   ;;  %s1163_s15 = sphi %s1220_s15, %s1519_s15   ;;  %s1159_s14 = sphi %s1218_s14, %s1518_s14   ;;  %s1155_s13 = sphi %s1216_s13, %s1517_s13   ;;  %s1151_s12 = sphi %s1214_s12, %s1516_s12  }
   0x7   : > { %p26_p0 = scmp.ge.s32.totalorder %s25_s24, 3  ;;  %s28_s25 = sadd.s32 1, %s1187_s21 }
   0x8   : > { %s41_s26 = sadd.s32 1, %s1171_s17  ;;  %p48_p1 = scmp.ne.s32.totalorder %s1171_s17, %s1167_s16 }
   0x9   : > { %s1527_s24 = smov (%p26_p0, %s25_s24), 0  ;;  %s1529_s25 = smov (!%p26_p0, %s28_s25), %s1187_s21 }
   0xa   : > { %1507 = sst [smem:[#allocation6_spill]] %s1527_s24  ;;  %s37_s27 = ssub.s32 %s1183_s20, %s1527_s24 }
   0xb   : > { %p49_p2 = scmp.eq.s32.totalorder %s1191_s22, 0  ;;  %p30_p3 = scmp.ge.s32.totalorder %s1529_s25, 3 }
   0xc   : > { %p39_p4 = scmp.eq.s32.totalorder %s37_s27, 0  ;;  %s69_s29 = sadd.s32 1, %s1163_s15 }
   0xd   : > { %p1281_p5 = por %p49_p2, %p48_p1  ;;  %s1531_s25 = smov (%p30_p3, %s1529_s25), 0 }
   0xe   : > { %1509 = sst [smem:[#allocation7_spill]] %s1531_s25  ;;  %s65_s4 = ssub.s32 %s1187_s21, %s1531_s25 }
   0xf   : > { %s1289_s30 = scalar_select %p39_p4, %s1171_s17, %s41_s26  }
  0x10   : > { %p76_p6 = scmp.ne.s32.totalorder %s1163_s15, %s1159_s14  ;;  %s66_s5 = sor.u32 %s65_s4, %s37_s27 }
  0x11   : > { %1510 = sst [smem:[#allocation8_spill]] %s1289_s30  ;;  %p121_p7 = scmp.eq.s32.totalorder %s65_s4, 0 }
  0x12   : > { %p67_p8 = scmp.eq.s32.totalorder %s66_s5, 0  ;;  %p1295_p9 = por %p76_p6, %p49_p2 }
  0x13   : > { %s123_s7 = sadd.s32 1, %s1155_s13  ;;  %p133_p10 = scmp.ne.s32.totalorder %s1155_s13, %s1151_s12 }
  0x14   : > { %s1303_s8 = scalar_select %p67_p8, %s1163_s15, %s69_s29  }
  0x15   : > { %s1306_s9 = scalar_select %p121_p7, %s1155_s13, %s123_s7  }
  0x16   : > { %p134_p11 = scmp.eq.s32.totalorder %s900_s23, 8  ;;  %p903_p13 = scmp.ge.s32.totalorder %s1191_s22, 9 }
  0x18   : > { %p1308_p12 = por %p134_p11, %p133_p10  ;;  %156 = sbr.rel (%p903_p13) target bundleno = 62 (0x3e), region = 16 }
  0x1f   : > { %159 = sbr.rel (!%p1281_p5) target bundleno = 38 (0x26), region = 20  ;;  %s161_s11 = sand.u32 (%p1281_p5), 1, %s1171_s17  }
  0x20   : > { %s960_s26 = sshll.u32 (%p1281_p5), %s1183_s20, 3  ;;  %s904_s27 = sshll.u32 (%p1281_p5), %s161_s11, 4 }
  0x21   : > { %s169_s5 = scalar_lea.vmem (%p1281_p5), %s1501_s0, %s960_s26  ;;  %s163_s23 = scalar_lea.vmem (%p1281_p5), [#allocation3], %s904_s27 }
  0x22   : > { %v199_v0 = vld [vmem:[%s169_s5] sm:$0xff] (%p1281_p5)  ;;  %v201_v1 = vld [vmem:[%s169_s5 + $0x18] sm:$0xff] (%p1281_p5) }
  0x23   : > { %200 = vst [vmem:[%s163_s23] sm:$0xff] (%p1281_p5), %v199_v0  ;;  %202 = vst [vmem:[%s163_s23 + $0x8] sm:$0xff] (%p1281_p5), %v201_v1 }
  0x26 PF: > { %208 = sbr.rel (!%p1295_p9) target bundleno = 62 (0x3e), region = 58  ;;  %s210_s28 = sand.u32 (%p1295_p9), 1, %s1163_s15  }
  0x27   : > { %s909_s7 = sshll.u32 (%p1295_p9), %s1187_s21, 1  ;;  %s907_s25 = sshll.u32 (%p1295_p9), %s210_s28, 8 }
  0x28   : > { %s964_s11 = smul.u32 (%p1295_p9), 192, %s1183_s20  ;;  %s1333_s6 = scalar_lea.vmem (%p1295_p9), [#allocation4], %s907_s25 }
  0x2a   : > { %s216_s24 = sadd.s32 (%p1295_p9), %s964_s11, %s909_s7 }
  0x2b   : > { %s911_s30 = sshll.u32 (%p1295_p9), %s216_s24, 2 }
  0x2c   : > { %s1328_s4 = scalar_lea.vmem (%p1295_p9), %s1502_s1, %s911_s30 }
  0x2d   : > { %v308_v2 = vld [vmem:[%s1328_s4] sm:$0xff]  ;;  %v310_v3 = vld [vmem:[%s1328_s4 + $0x18] sm:$0xff]  ;;  %v312_v4 = vld [vmem:[%s1328_s4 + $0x30] sm:$0xff] }
  0x2e   : > { %309 = vst [vmem:[%s1333_s6] sm:$0xff] %v308_v2  ;;  %311 = vst [vmem:[%s1333_s6 + $0x8] sm:$0xff] %v310_v3  ;;  %v314_v5 = vld [vmem:[%s1328_s4 + $0x48] sm:$0xff]  ;;  %v316_v6 = vld [vmem:[%s1328_s4 + $0x60] sm:$0xff] }
  0x2f   : > { %313 = vst [vmem:[%s1333_s6 + $0x10] sm:$0xff] %v312_v4  ;;  %v318_v7 = vld [vmem:[%s1328_s4 + $0x78] sm:$0xff]  ;;  %315 = vst [vmem:[%s1333_s6 + $0x18] sm:$0xff] %v314_v5  ;;  %v320_v8 = vld [vmem:[%s1328_s4 + $0x90] sm:$0xff] }
  0x30   : > { %317 = vst [vmem:[%s1333_s6 + $0x20] sm:$0xff] %v316_v6  ;;  %319 = vst [vmem:[%s1333_s6 + $0x28] sm:$0xff] %v318_v7  ;;  %v322_v9 = vld [vmem:[%s1328_s4 + $0xa8] sm:$0xff]  ;;  %v324_v10 = vld [vmem:[%s1328_s4 + $0xc0] sm:$0xff] }
  0x31   : > { %321 = vst [vmem:[%s1333_s6 + $0x30] sm:$0xff] %v320_v8  ;;  %323 = vst [vmem:[%s1333_s6 + $0x38] sm:$0xff] %v322_v9  ;;  %v326_v11 = vld [vmem:[%s1328_s4 + $0xd8] sm:$0xff]  ;;  %v328_v12 = vld [vmem:[%s1328_s4 + $0xf0] sm:$0xff] }
  0x32   : > { %325 = vst [vmem:[%s1333_s6 + $0x40] sm:$0xff] %v324_v10  ;;  %v330_v13 = vld [vmem:[%s1328_s4 + $0x108] sm:$0xff]  ;;  %327 = vst [vmem:[%s1333_s6 + $0x48] sm:$0xff] %v326_v11  ;;  %v332_v14 = vld [vmem:[%s1328_s4 + $0x120] sm:$0xff] }
  0x33   : > { %329 = vst [vmem:[%s1333_s6 + $0x50] sm:$0xff] %v328_v12  ;;  %331 = vst [vmem:[%s1333_s6 + $0x58] sm:$0xff] %v330_v13  ;;  %v334_v15 = vld [vmem:[%s1328_s4 + $0x138] sm:$0xff]  ;;  %v336_v16 = vld [vmem:[%s1328_s4 + $0x150] sm:$0xff] }
  0x34   : > { %333 = vst [vmem:[%s1333_s6 + $0x60] sm:$0xff] %v332_v14  ;;  %335 = vst [vmem:[%s1333_s6 + $0x68] sm:$0xff] %v334_v15  ;;  %v338_v17 = vld [vmem:[%s1328_s4 + $0x168] sm:$0xff]  ;;  %v340_v18 = vld [vmem:[%s1328_s4 + $0x180] sm:$0xff] }
  0x35   : > { %337 = vst [vmem:[%s1333_s6 + $0x70] sm:$0xff] %v336_v16  ;;  %v342_v19 = vld [vmem:[%s1328_s4 + $0x198] sm:$0xff]  ;;  %339 = vst [vmem:[%s1333_s6 + $0x78] sm:$0xff] %v338_v17  ;;  %v344_v20 = vld [vmem:[%s1328_s4 + $0x1b0] sm:$0xff] }
  0x36   : > { %341 = vst [vmem:[%s1333_s6 + $0x80] sm:$0xff] %v340_v18  ;;  %343 = vst [vmem:[%s1333_s6 + $0x88] sm:$0xff] %v342_v19  ;;  %v346_v21 = vld [vmem:[%s1328_s4 + $0x1c8] sm:$0xff]  ;;  %v348_v22 = vld [vmem:[%s1328_s4 + $0x1e0] sm:$0xff] }
  0x37   : > { %345 = vst [vmem:[%s1333_s6 + $0x90] sm:$0xff] %v344_v20  ;;  %347 = vst [vmem:[%s1333_s6 + $0x98] sm:$0xff] %v346_v21  ;;  %v350_v23 = vld [vmem:[%s1328_s4 + $0x1f8] sm:$0xff]  ;;  %v352_v24 = vld [vmem:[%s1328_s4 + $0x210] sm:$0xff] }
  0x38   : > { %349 = vst [vmem:[%s1333_s6 + $0xa0] sm:$0xff] %v348_v22  ;;  %v354_v25 = vld [vmem:[%s1328_s4 + $0x228] sm:$0xff]  ;;  %351 = vst [vmem:[%s1333_s6 + $0xa8] sm:$0xff] %v350_v23  ;;  %v356_v26 = vld [vmem:[%s1328_s4 + $0x240] sm:$0xff] }
  0x39   : > { %353 = vst [vmem:[%s1333_s6 + $0xb0] sm:$0xff] %v352_v24  ;;  %355 = vst [vmem:[%s1333_s6 + $0xb8] sm:$0xff] %v354_v25  ;;  %v358_v27 = vld [vmem:[%s1328_s4 + $0x258] sm:$0xff]  ;;  %v360_v28 = vld [vmem:[%s1328_s4 + $0x270] sm:$0xff] }
  0x3a   : > { %357 = vst [vmem:[%s1333_s6 + $0xc0] sm:$0xff] %v356_v26  ;;  %359 = vst [vmem:[%s1333_s6 + $0xc8] sm:$0xff] %v358_v27  ;;  %v362_v29 = vld [vmem:[%s1328_s4 + $0x288] sm:$0xff]  ;;  %v364_v30 = vld [vmem:[%s1328_s4 + $0x2a0] sm:$0xff] }
  0x3b   : > { %361 = vst [vmem:[%s1333_s6 + $0xd0] sm:$0xff] %v360_v28  ;;  %v366_v31 = vld [vmem:[%s1328_s4 + $0x2b8] sm:$0xff]  ;;  %363 = vst [vmem:[%s1333_s6 + $0xd8] sm:$0xff] %v362_v29  ;;  %v368_v32 = vld [vmem:[%s1328_s4 + $0x2d0] sm:$0xff] }
  0x3c   : > { %365 = vst [vmem:[%s1333_s6 + $0xe0] sm:$0xff] %v364_v30  ;;  %367 = vst [vmem:[%s1333_s6 + $0xe8] sm:$0xff] %v366_v31  ;;  %v370_v33 = vld [vmem:[%s1328_s4 + $0x2e8] sm:$0xff] }
  0x3d   : > { %369 = vst [vmem:[%s1333_s6 + $0xf0] sm:$0xff] %v368_v32  ;;  %371 = vst [vmem:[%s1333_s6 + $0xf8] sm:$0xff] %v370_v33 }
  0x3e PF: > { %p912_p0 = scmp.ge.s32.totalorder %s1191_s22, 1  ;;  %p384_p1 = scmp.lt.s32.totalorder %s1191_s22, 10 }
  0x40   : > { %p385_p2 = pnand %p912_p0, %p384_p1 }
  0x41   : > { %s391_s24 = sand.u32 (!%p385_p2), 1, %s1167_s16   ;;  %s398_s25 = sand.u32 (!%p385_p2), 1, %s1159_s14  }
  0x42   : > { %388 = sbr.rel (%p385_p2) target bundleno = 383 (0x17f), region = 100  ;;  %s1400_s30 = sshll.u32 (!%p385_p2), %s391_s24, 4 }
  0x43   : > { %s914_s27 = sshll.u32 (!%p385_p2), %s398_s25, 8  ;;  %s425_s5 = sand.u32 (!%p385_p2), 1, %s1151_s12  }
  0x44   : > { %s916_s23 = sshll.u32 (!%p385_p2), %s1179_s19, 1  ;;  %s915_s28 = sshll.u32 (!%p385_p2), %s425_s5, 4 }
  0x45   : > { %p433_p3 = scmp.lt.s32.totalorder (!%p385_p2), %s916_s23, 5  ;;  %s393_s26 = scalar_lea.vmem (!%p385_p2), [#allocation3], %s1400_s30 }
  0x46   : > { %s1411_s4 = scalar_lea.vmem (!%p385_p2), [#allocation4], %s914_s27  ;;  %s1413_s16 = scalar_lea.vmem (!%p385_p2), [#allocation5], %s915_s28 }
  0x47   : > { %p917_p4 = scmp.ne.s32.totalorder (!%p385_p2), %s1175_s18, 0 }
  0x49   : > { %s1533_s23 = smov (!%p433_p3, %s916_s23), 5  ;;  %442 = sbr.rel (%p917_p4) target bundleno = 80 (0x50), region = 112 }
  0x4a   : > { %s435_s29 = scalar_lea.vmem %s1503_s2, %s1533_s23  ;;  %v1193_v34 = vmov (!%p917_p4), 0.0  }
  0x4b   : > { %443 = vst [vmem:[#allocation2] sm:$0xff] (!%p917_p4), %v1193_v34  ;;  %444 = vst [vmem:[#allocation2 + $0x8] sm:$0xff] (!%p917_p4), %v1193_v34 }
  0x4c   : > { %445 = vst [vmem:[#allocation2 + $0x10] sm:$0xff] (!%p917_p4), %v1193_v34  ;;  %446 = vst [vmem:[#allocation2 + $0x18] sm:$0xff] (!%p917_p4), %v1193_v34 }
  0x50 PF: > { %v1054_v35 = vld [vmem:[%s1411_s4 + $0x4] ss:$8 sps:$4 sm:$0xff]   ;;  %v1056_v36 = vld [vmem:[%s1411_s4] ss:$8 sps:$4 sm:$0xff]   ;;  %v1057_v37 = vld [vmem:[%s1411_s4 + $0x14] ss:$8 sps:$4 sm:$0xff]  }
  0x51   : > { %655 = vmatprep.subr.bf16.mxu0 %v1054_v35  ;;  %v1059_v38 = vld [vmem:[%s1411_s4 + $0x10] ss:$8 sps:$4 sm:$0xff]   ;;  %v1060_v39 = vld [vmem:[%s1411_s4 + $0x24] ss:$8 sps:$4 sm:$0xff]   ;;  %v1062_v40 = vld [vmem:[%s1411_s4 + $0x20] ss:$8 sps:$4 sm:$0xff]  }
  0x52   : > { %656 = vmatpush1.bf16.msra.mxu0 %v1056_v36  ;;  %v1063_v41 = vld [vmem:[%s1411_s4 + $0x34] ss:$8 sps:$4 sm:$0xff]   ;;  %v1065_v42 = vld [vmem:[%s1411_s4 + $0x30] ss:$8 sps:$4 sm:$0xff]   ;;  %v1066_v43 = vld [vmem:[%s1411_s4 + $0x44] ss:$8 sps:$4 sm:$0xff]  }
  0x53   : > { %657 = vmatprep.subr.bf16.mxu0 %v1057_v37  ;;  %v1068_v44 = vld [vmem:[%s1411_s4 + $0x40] ss:$8 sps:$4 sm:$0xff]   ;;  %v1069_v45 = vld [vmem:[%s1411_s4 + $0x54] ss:$8 sps:$4 sm:$0xff]   ;;  %v1071_v46 = vld [vmem:[%s1411_s4 + $0x50] ss:$8 sps:$4 sm:$0xff]  }
  0x54   : > { %v1072_v47 = vld [vmem:[%s1411_s4 + $0x64] ss:$8 sps:$4 sm:$0xff]   ;;  %v1074_v49 = vld [vmem:[%s1411_s4 + $0x60] ss:$8 sps:$4 sm:$0xff]   ;;  %v1075_v50 = vld [vmem:[%s1411_s4 + $0x74] ss:$8 sps:$4 sm:$0xff]  }
  0x55   : > { %v1104_v48 = vld [vmem:[%s393_s26 + $0x4] ss:$8 sps:$4 sm:$0xff]   ;;  %v1077_v51 = vld [vmem:[%s1411_s4 + $0x70] ss:$8 sps:$4 sm:$0xff]   ;;  %v1080_v53 = vld [vmem:[%s1411_s4 + $0x80] ss:$8 sps:$4 sm:$0xff]  }
  0x56   : > { %658 = vmatpush1.bf16.msra.mxu0 %v1059_v38  ;;  %687 = vmatprep.mubr.bf16.mxu0 %v1104_v48  ;;  %v1078_v52 = vld [vmem:[%s1411_s4 + $0x84] ss:$8 sps:$4 sm:$0xff]   ;;  %v1081_v54 = vld [vmem:[%s1411_s4 + $0x94] ss:$8 sps:$4 sm:$0xff]   ;;  %v1083_v55 = vld [vmem:[%s1411_s4 + $0x90] ss:$8 sps:$4 sm:$0xff]  }
  0x57   : > { %659 = vmatprep.subr.bf16.mxu0 %v1060_v39  ;;  %v1084_v56 = vld [vmem:[%s1411_s4 + $0xa4] ss:$8 sps:$4 sm:$0xff]   ;;  %v1086_v57 = vld [vmem:[%s1411_s4 + $0xa0] ss:$8 sps:$4 sm:$0xff]   ;;  %v1087_v58 = vld [vmem:[%s1411_s4 + $0xb4] ss:$8 sps:$4 sm:$0xff]  }
  0x58   : > { %v1089_v59 = vld [vmem:[%s1411_s4 + $0xb0] ss:$8 sps:$4 sm:$0xff]   ;;  %v1090_v60 = vld [vmem:[%s1411_s4 + $0xc4] ss:$8 sps:$4 sm:$0xff]   ;;  %v1092_v61 = vld [vmem:[%s1411_s4 + $0xc0] ss:$8 sps:$4 sm:$0xff]  }
  0x59   : > { %v1093_v62 = vld [vmem:[%s1411_s4 + $0xd4] ss:$8 sps:$4 sm:$0xff]   ;;  %v1095_v63 = vld [vmem:[%s1411_s4 + $0xd0] ss:$8 sps:$4 sm:$0xff]   ;;  %v1096_v0 = vld [vmem:[%s1411_s4 + $0xe4] ss:$8 sps:$4 sm:$0xff]  }
  0x5a   : > { %660 = vmatpush1.bf16.msra.mxu0 %v1062_v40  ;;  %v1098_v1 = vld [vmem:[%s1411_s4 + $0xe0] ss:$8 sps:$4 sm:$0xff]   ;;  %v1099_v2 = vld [vmem:[%s1411_s4 + $0xf4] ss:$8 sps:$4 sm:$0xff]   ;;  %v1101_v3 = vld [vmem:[%s1411_s4 + $0xf0] ss:$8 sps:$4 sm:$0xff]  }
  0x5b   : > { %661 = vmatprep.subr.bf16.mxu0 %v1063_v41  ;;  %v1102_v4 = vld [vmem:[%s393_s26] ss:$8 sps:$4 sm:$0xff]   ;;  %p952_p5 = scmp.ne.s32.totalorder %s1175_s18, 2 }
  0x5c   : > { %v447_v5 = vld [vmem:[#allocation2] sm:$0xff]  ;;  %v448_v6 = vld [vmem:[#allocation2 + $0x8] sm:$0xff]  ;;  %v449_v8 = vld [vmem:[#allocation2 + $0x10] sm:$0xff]  ;;  %v716_v17 = vlaneseq (!%p952_p5) }
  0x5d   : > { %v450_v11 = vld [vmem:[#allocation2 + $0x18] sm:$0xff]  ;;  %v714_v19 = vld [vmem:[%s435_s29] sm:$0x3] (!%p952_p5) }
  0x5e   : > { %662 = vmatpush1.bf16.msra.mxu0 %v1065_v42  ;;  %v717_v18 = vshrl.u32 (!%p952_p5), %v716_v17, 7 }
  0x5f   : > { %663 = vmatprep.subr.bf16.mxu0 %v1066_v43 }
  0x60   : > { %v718_v21 = vsub.s32 (!%p952_p5), 0, %v717_v18  ;;  %v722_v22 = vsub.s32 (!%p952_p5), 1, %v717_v18 }
  0x62   : > { %664 = vmatpush1.bf16.msra.mxu0 %v1068_v44  ;;  %v719_v26 = vrot.slane (!%p952_p5), %v714_v19, %v718_v21  ;;  %v723_v27 = vrot.slane (!%p952_p5), %v714_v19, %v722_v22 }
  0x63   : > { %665 = vmatprep.subr.bf16.mxu0 %v1069_v45 }
  0x66   : > { %666 = vmatpush1.bf16.msra.mxu0 %v1071_v46 }
  0x67   : > { %667 = vmatprep.subr.bf16.mxu0 %v1072_v47 }
  0x6a   : > { %668 = vmatpush1.bf16.msra.mxu0 %v1074_v49 }
  0x6b   : > { %669 = vmatprep.subr.bf16.mxu0 %v1075_v50 }
  0x6e   : > { %670 = vmatpush1.bf16.msra.mxu0 %v1077_v51 }
  0x6f   : > { %671 = vmatprep.subr.bf16.mxu0 %v1078_v52 }
  0x72   : > { %672 = vmatpush1.bf16.msra.mxu0 %v1080_v53 }
  0x73   : > { %673 = vmatprep.subr.bf16.mxu0 %v1081_v54 }
  0x76   : > { %674 = vmatpush1.bf16.msra.mxu0 %v1083_v55 }
  0x77   : > { %675 = vmatprep.subr.bf16.mxu0 %v1084_v56 }
  0x7a   : > { %676 = vmatpush1.bf16.msra.mxu0 %v1086_v57 }
  0x7b   : > { %677 = vmatprep.subr.bf16.mxu0 %v1087_v58 }
  0x7e   : > { %678 = vmatpush1.bf16.msra.mxu0 %v1089_v59 }
  0x7f   : > { %679 = vmatprep.subr.bf16.mxu0 %v1090_v60 }
  0x82   : > { %680 = vmatpush1.bf16.msra.mxu0 %v1092_v61 }
  0x83   : > { %681 = vmatprep.subr.bf16.mxu0 %v1093_v62 }
  0x86   : > { %682 = vmatpush1.bf16.msra.mxu0 %v1095_v63 }
  0x87   : > { %683 = vmatprep.subr.bf16.mxu0 %v1096_v0 }
  0x8a   : > { %684 = vmatpush1.bf16.msra.mxu0 %v1098_v1 }
  0x8b   : > { %685 = vmatprep.subr.bf16.mxu0 %v1099_v2 }
  0x8e   : > { %686 = vmatpush1.bf16.msra.mxu0 %v1101_v3 }
  0x91   : > { %688 = vmatmul.mubr.bf16.vlgmr.msra.gmra.mrb[0].mxu0 %v1102_v4 }
 0x164   : > { %v689_v7 = vpop.f32.mrb[0].mxu0  ;;  %709 = sbr.rel (%p952_p5) target bundleno = 375 (0x177), region = 116 }
 0x165   : > { %v698_v9 = vadd.f32 %v689_v7, %v447_v5  ;;  %v691_v10 = vpop.f32.mrb[1].mxu0 }
 0x166   : > { %v699_v12 = vadd.f32 %v691_v10, %v448_v6  ;;  %v693_v13 = vpop.f32.mrb[2].mxu0 }
 0x167   : > { %702 = vst [vmem:[#allocation2] sm:$0xff] %v698_v9  ;;  %v700_v14 = vadd.f32 %v693_v13, %v449_v8  ;;  %v695_v15 = vpop.f32.mrb[3].mxu0 }
 0x168   : > { %703 = vst [vmem:[#allocation2 + $0x8] sm:$0xff] %v699_v12  ;;  %v701_v16 = vadd.f32 %v695_v15, %v450_v11 }
 0x169   : > { %704 = vst [vmem:[#allocation2 + $0x10] sm:$0xff] %v700_v14 }
 0x16a   : > { %705 = vst [vmem:[#allocation2 + $0x18] sm:$0xff] %v701_v16 }
 0x16e   : > { %v710_v20 = vld [vmem:[#allocation2] sm:$0xff] }
 0x16f   : > { %v711_v23 = vld [vmem:[#allocation2 + $0x8] sm:$0xff]  ;;  %v726_v28 = vadd.f32 %v719_v26, %v710_v20 }
 0x170   : > { %v712_v24 = vld [vmem:[#allocation2 + $0x10] sm:$0xff]  ;;  %v727_v29 = vadd.f32 %v723_v27, %v711_v23 }
 0x171   : > { %v713_v25 = vld [vmem:[#allocation2 + $0x18] sm:$0xff]  ;;  %v728_v30 = vadd.f32 %v719_v26, %v712_v24 }
 0x172   : > { %v729_v31 = vadd.f32 %v723_v27, %v713_v25  ;;  %v961_v32 = vpack.c.bf16 %v727_v29, %v726_v28 }
 0x174   : > { %v962_v33 = vpack.c.bf16 %v729_v31, %v728_v30  ;;  %742 = vst [vmem:[%s1413_s16] sm:$0xff] %v961_v32 }
 0x176   : > { %743 = vst [vmem:[%s1413_s16 + $0x8] sm:$0xff] %v962_v33 }
 0x177 PF: > { %750 = sbr.rel (!%p1308_p12) target bundleno = 383 (0x17f), region = 120  ;;  %s963_s18 = sshll.u32 (%p1308_p12), %s1179_s19, 3 }
 0x178   : > { %s756_s25 = scalar_lea.vmem (%p1308_p12), %s1504_s3, %s963_s18 }
 0x17b   : > { %v786_v34 = vld [vmem:[%s1413_s16] sm:$0xff] (%p1308_p12) }
 0x17c   : > { %787 = vst [vmem:[%s756_s25] sm:$0xff] (%p1308_p12), %v786_v34 }
 0x17d   : > { %v788_v35 = vld [vmem:[%s1413_s16 + $0x8] sm:$0xff] (%p1308_p12) }
 0x17e   : > { %789 = vst [vmem:[%s756_s25 + $0x18] sm:$0xff] %v788_v35 }
 0x17f PF: > { %s13_s22 = sadd.s32 1, %s1191_s22   ;;  %s1513_s10 = sld [smem:[#allocation8_spill]] }
 0x180   : > { %p10_p6 = scmp.ge.s32.totalorder %s13_s22, 11   ;;  %s1514_s30 = sld [smem:[#allocation6_spill]] }
 0x181   : > { %s1515_s27 = sld [smem:[#allocation7_spill]]  ;;  %s1516_s12 = smov %s1155_s13 }
 0x182   : > { %s1517_s13 = smov %s1306_s9  ;;  %s1518_s14 = smov %s1163_s15 }
 0x183   : > { %s1519_s15 = smov %s1303_s8  ;;  %s1520_s16 = smov %s1171_s17 }
 0x184   : > { %s1522_s18 = smov %s1183_s20  ;;  %s1523_s19 = smov %s1187_s21 }
 0x185   : > { %s1521_s17 = smov %s1513_s10  ;;  %12 = sbr.rel (!%p10_p6) target bundleno = 6 (0x6), region = 200 }
 0x186   : > { %s1524_s20 = smov %s1514_s30 }
 0x187   : > { %s1525_s21 = smov %s1515_s27 }

// kernel: bert_ner_forward.21
= control target key start
LH: loop header
LB: loop body
LE: loop exit
PB: predicated region body
PF: predicated region fallthrough
CT: control target
= control target key end

     0   :  { %s428_s0 = inlined_call_operand.vmem [shape: bf16[16,768], index: 0, kind: input, shape index: {}]   ;;  %s429_s1 = inlined_call_operand.vmem [shape: bf16[16,768], index: 1, kind: input, shape index: {}]   ;;  %s430_s2 = inlined_call_operand.vmem [shape: f32[1,768], index: 2, kind: input, shape index: {}]   ;;  %s431_s3 = inlined_call_operand.vmem [shape: f32[1,768], index: 3, kind: input, shape index: {}]   ;;  %s432_s4 = inlined_call_operand.vmem [shape: bf16[16,768], index: 4, kind: output, shape index: {}]  }
   0x1   :  { %v17_v0 = vld [vmem:[%s428_s0] sm:$0xff]  ;;  %v18_v1 = vld [vmem:[%s428_s0 + $0x8] sm:$0xff]  ;;  %v19_v2 = vld [vmem:[%s428_s0 + $0x10] sm:$0xff] }
   0x2   :  { %v23_v3 = vunpack.c.l.bf16 %v17_v0  ;;  %v24_v4 = vunpack.c.h.bf16 %v17_v0  ;;  %v25_v5 = vunpack.c.l.bf16 %v18_v1  ;;  %v35_v6 = vld [vmem:[%s429_s1] sm:$0xff]  ;;  %v36_v7 = vld [vmem:[%s429_s1 + $0x8] sm:$0xff]  ;;  %v37_v8 = vld [vmem:[%s429_s1 + $0x10] sm:$0xff]  ;;  %v26_v9 = vunpack.c.h.bf16 %v18_v1 }
   0x3   :  { %v41_v10 = vunpack.c.l.bf16 %v35_v6  ;;  %v42_v11 = vunpack.c.h.bf16 %v35_v6  ;;  %v20_v12 = vld [vmem:[%s428_s0 + $0x18] sm:$0xff]  ;;  %v43_v13 = vunpack.c.l.bf16 %v36_v7  ;;  %v44_v14 = vunpack.c.h.bf16 %v36_v7  ;;  %v21_v15 = vld [vmem:[%s428_s0 + $0x20] sm:$0xff]  ;;  %v22_v24 = vld [vmem:[%s428_s0 + $0x28] sm:$0xff] }
   0x4   :  { %v27_v16 = vunpack.c.l.bf16 %v19_v2  ;;  %v45_v17 = vunpack.c.l.bf16 %v37_v8  ;;  %v38_v20 = vld [vmem:[%s429_s1 + $0x18] sm:$0xff]  ;;  %v39_v21 = vld [vmem:[%s429_s1 + $0x20] sm:$0xff]  ;;  %v28_v22 = vunpack.c.h.bf16 %v19_v2  ;;  %v29_v25 = vunpack.c.l.bf16 %v20_v12  ;;  %v40_v31 = vld [vmem:[%s429_s1 + $0x28] sm:$0xff] }
   0x5   :  { %v53_v18 = vadd.f32 %v41_v10, %v23_v3  ;;  %v54_v19 = vadd.f32 %v42_v11, %v24_v4  ;;  %v55_v23 = vadd.f32 %v43_v13, %v25_v5  ;;  %v30_v26 = vunpack.c.h.bf16 %v20_v12 }
   0x6   :  { %v46_v27 = vunpack.c.h.bf16 %v37_v8  ;;  %v56_v28 = vadd.f32 %v44_v14, %v26_v9  ;;  %v31_v30 = vunpack.c.l.bf16 %v21_v15  ;;  %v32_v32 = vunpack.c.h.bf16 %v21_v15 }
   0x7   :  { %v65_v29 = vadd.f32 %v54_v19, %v53_v18  ;;  %v47_v33 = vunpack.c.l.bf16 %v38_v20  ;;  %v48_v34 = vunpack.c.h.bf16 %v38_v20  ;;  %v49_v35 = vunpack.c.l.bf16 %v39_v21 }
   0x8   :  { %v57_v36 = vadd.f32 %v45_v17, %v27_v16  ;;  %v33_v38 = vunpack.c.l.bf16 %v22_v24  ;;  %v50_v39 = vunpack.c.h.bf16 %v39_v21  ;;  %v51_v40 = vunpack.c.l.bf16 %v40_v31 }
   0x9   :  { %v66_v37 = vadd.f32 %v65_v29, %v55_v23  ;;  %v59_v41 = vadd.f32 %v47_v33, %v29_v25  ;;  %v60_v42 = vadd.f32 %v48_v34, %v30_v26  ;;  %v61_v43 = vadd.f32 %v49_v35, %v31_v30 }
   0xa   :  { %v58_v44 = vadd.f32 %v46_v27, %v28_v22  ;;  %v34_v46 = vunpack.c.h.bf16 %v22_v24  ;;  %v52_v47 = vunpack.c.h.bf16 %v40_v31  ;;  %v62_v48 = vadd.f32 %v50_v39, %v32_v32 }
   0xb   :  { %v67_v45 = vadd.f32 %v66_v37, %v56_v28  ;;  %v72_v49 = vadd.f32 %v60_v42, %v59_v41  ;;  %v63_v51 = vadd.f32 %v51_v40, %v33_v38  ;;  %v140_v33 = vlaneseq }
   0xc   :  { %v64_v54 = vadd.f32 %v52_v47, %v34_v46  ;;  %v182_v47 = vld [vmem:[%s431_s3] sm:$0x3f] }
   0xd   :  { %v68_v50 = vadd.f32 %v67_v45, %v57_v36  ;;  %v73_v52 = vadd.f32 %v72_v49, %v61_v43 }
   0xf   :  { %v69_v53 = vadd.f32 %v68_v50, %v58_v44  ;;  %v74_v55 = vadd.f32 %v73_v52, %v62_v48 }
  0x11   :  { %70 = vadd.xlane.f32.xlu0 %v69_v53  ;;  %v75_v56 = vadd.f32 %v74_v55, %v63_v51 }
  0x13   :  { %v76_v57 = vadd.f32 %v75_v56, %v64_v54 }
  0x15   :  { %77 = vadd.xlane.f32.xlu0 %v76_v57 }
  0x9e   :  { %v71_v58 = vpop.xlane.xlu0 %70 }
  0x9f   :  { %v80_v59 = vmul.f32 0.0013020834, %v71_v58 }
  0xa1   :  { %v349_v60 = vsub.f32 %v53_v18, %v80_v59  ;;  %v351_v61 = vsub.f32 %v54_v19, %v80_v59  ;;  %v353_v62 = vsub.f32 %v55_v23, %v80_v59  ;;  %v355_v0 = vsub.f32 %v56_v28, %v80_v59 }
  0xa2   :  { %v78_v63 = vpop.xlane.xlu0 %77  ;;  %v361_v4 = vsub.f32 %v57_v36, %v80_v59  ;;  %v87_v10 = vsub.f32 %v58_v44, %v80_v59  ;;  %v141_v36 = vshrl.u32 %v140_v33, 7 }
  0xa3   :  { %v94_v1 = vmul.f32 %v349_v60, %v349_v60  ;;  %v95_v2 = vmul.f32 %v351_v61, %v351_v61  ;;  %v81_v3 = vmul.f32 0.0013020834, %v78_v63  ;;  %v96_v5 = vmul.f32 %v353_v62, %v353_v62 }
  0xa4   :  { %v97_v11 = vmul.f32 %v355_v0, %v355_v0  ;;  %v98_v16 = vmul.f32 %v361_v4, %v361_v4  ;;  %v99_v21 = vmul.f32 %v87_v10, %v87_v10  ;;  %v142_v40 = vsub.s32 0, %v141_v36 }
  0xa5   :  { %v106_v6 = vadd.f32 %v95_v2, %v94_v1  ;;  %v365_v7 = vsub.f32 %v59_v41, %v81_v3  ;;  %v367_v8 = vsub.f32 %v60_v42, %v81_v3  ;;  %v369_v9 = vsub.f32 %v61_v43, %v81_v3  ;;  %v138_v43 = vld [vmem:[%s430_s2] sm:$0x3f] }
  0xa6   :  { %v373_v13 = vsub.f32 %v62_v48, %v81_v3  ;;  %v381_v18 = vsub.f32 %v63_v51, %v81_v3  ;;  %v385_v23 = vsub.f32 %v64_v54, %v81_v3  ;;  %v146_v41 = vsub.s32 1, %v141_v36 }
  0xa7   :  { %v107_v12 = vadd.f32 %v106_v6, %v96_v5  ;;  %v100_v14 = vmul.f32 %v365_v7, %v365_v7  ;;  %v101_v15 = vmul.f32 %v367_v8, %v367_v8  ;;  %v102_v19 = vmul.f32 %v369_v9, %v369_v9 }
  0xa8   :  { %v103_v24 = vmul.f32 %v373_v13, %v373_v13  ;;  %v104_v27 = vmul.f32 %v381_v18, %v381_v18  ;;  %v105_v29 = vmul.f32 %v385_v23, %v385_v23  ;;  %v150_v42 = vsub.s32 2, %v141_v36 }
  0xa9   :  { %v108_v17 = vadd.f32 %v107_v12, %v97_v11  ;;  %v113_v20 = vadd.f32 %v101_v15, %v100_v14  ;;  %v154_v44 = vsub.s32 3, %v141_v36  ;;  %v158_v45 = vsub.s32 4, %v141_v36 }
  0xaa   :  { %v162_v46 = vsub.s32 5, %v141_v36  ;;  %v143_v48 = vrot.slane %v138_v43, %v142_v40  ;;  %v147_v49 = vrot.slane %v138_v43, %v146_v41  ;;  %v151_v50 = vrot.slane %v138_v43, %v150_v42 }
  0xab   :  { %v109_v22 = vadd.f32 %v108_v17, %v98_v16  ;;  %v114_v25 = vadd.f32 %v113_v20, %v102_v19  ;;  %v155_v51 = vrot.slane %v138_v43, %v154_v44  ;;  %v159_v52 = vrot.slane %v138_v43, %v158_v45 }
  0xac   :  { %v163_v53 = vrot.slane %v138_v43, %v162_v46  ;;  %v187_v55 = vrot.slane %v182_v47, %v142_v40  ;;  %v191_v56 = vrot.slane %v182_v47, %v146_v41  ;;  %v195_v57 = vrot.slane %v182_v47, %v150_v42 }
  0xad   :  { %v110_v26 = vadd.f32 %v109_v22, %v99_v21  ;;  %v115_v28 = vadd.f32 %v114_v25, %v103_v24  ;;  %v199_v58 = vrot.slane %v182_v47, %v154_v44  ;;  %v203_v3 = vrot.slane %v182_v47, %v158_v45 }
  0xae   :  { %v207_v5 = vrot.slane %v182_v47, %v162_v46 }
  0xaf   :  { %111 = vadd.xlane.f32.xlu1 %v110_v26  ;;  %v116_v30 = vadd.f32 %v115_v28, %v104_v27 }
  0xb1   :  { %v117_v31 = vadd.f32 %v116_v30, %v105_v29 }
  0xb3   :  { %118 = vadd.xlane.f32.xlu1 %v117_v31 }
 0x13c   :  { %v112_v32 = vpop.xlane.xlu1 %111 }
 0x13d   :  { %v120_v34 = vmul.f32 0.0013020834, %v112_v32 }
 0x13f   :  { %v122_v35 = vadd.f32 1e-12, %v120_v34 }
 0x140   :  { %v119_v37 = vpop.xlane.xlu1 %118 }
 0x141   :  { %284 = vrsqrt.f32 %v122_v35  ;;  %v121_v38 = vmul.f32 0.0013020834, %v119_v37 }
 0x143   :  { %v123_v39 = vadd.f32 1e-12, %v121_v38 }
 0x145   :  { %286 = vrsqrt.f32 %v123_v39 }
 0x14b   :  { %v285_v54 = vpop.eup %284 }
 0x14c   :  { %v126_v59 = vmul.f32 %v285_v54, %v349_v60  ;;  %v127_v63 = vmul.f32 %v285_v54, %v351_v61  ;;  %v128_v1 = vmul.f32 %v285_v54, %v353_v62  ;;  %v129_v2 = vmul.f32 %v285_v54, %v355_v0 }
 0x14d   :  { %v130_v6 = vmul.f32 %v285_v54, %v361_v4  ;;  %v131_v11 = vmul.f32 %v285_v54, %v87_v10 }
 0x14e   :  { %v170_v12 = vmul.f32 %v143_v48, %v126_v59  ;;  %v171_v14 = vmul.f32 %v147_v49, %v127_v63  ;;  %v172_v15 = vmul.f32 %v151_v50, %v128_v1  ;;  %v173_v16 = vmul.f32 %v155_v51, %v129_v2 }
 0x14f   :  { %v174_v17 = vmul.f32 %v159_v52, %v130_v6  ;;  %v175_v19 = vmul.f32 %v163_v53, %v131_v11  ;;  %v287_v20 = vpop.eup %286 }
 0x150   :  { %v214_v21 = vadd.f32 %v187_v55, %v170_v12  ;;  %v215_v60 = vadd.f32 %v191_v56, %v171_v14  ;;  %v216_v22 = vadd.f32 %v195_v57, %v172_v15  ;;  %v217_v61 = vadd.f32 %v199_v58, %v173_v16 }
 0x151   :  { %v218_v24 = vadd.f32 %v203_v3, %v174_v17  ;;  %v219_v62 = vadd.f32 %v207_v5, %v175_v19  ;;  %v132_v0 = vmul.f32 %v287_v20, %v365_v7  ;;  %v133_v25 = vmul.f32 %v287_v20, %v367_v8 }
 0x152   :  { %v278_v26 = vpack.c.bf16 %v215_v60, %v214_v21  ;;  %v279_v4 = vpack.c.bf16 %v217_v61, %v216_v22  ;;  %v134_v10 = vmul.f32 %v287_v20, %v369_v9  ;;  %v135_v27 = vmul.f32 %v287_v20, %v373_v13 }
 0x153   :  { %v280_v28 = vpack.c.bf16 %v219_v62, %v218_v24  ;;  %v136_v29 = vmul.f32 %v287_v20, %v381_v18  ;;  %v137_v30 = vmul.f32 %v287_v20, %v385_v23  ;;  %v176_v31 = vmul.f32 %v143_v48, %v132_v0 }
 0x154   :  { %262 = vst [vmem:[%s432_s4] sm:$0xff] %v278_v26  ;;  %263 = vst [vmem:[%s432_s4 + $0x8] sm:$0xff] %v279_v4  ;;  %v177_v7 = vmul.f32 %v147_v49, %v133_v25  ;;  %v178_v8 = vmul.f32 %v151_v50, %v134_v10  ;;  %v179_v32 = vmul.f32 %v155_v51, %v135_v27 }
 0x155   :  { %264 = vst [vmem:[%s432_s4 + $0x10] sm:$0xff] %v280_v28  ;;  %v180_v9 = vmul.f32 %v159_v52, %v136_v29  ;;  %v181_v13 = vmul.f32 %v163_v53, %v137_v30  ;;  %v220_v18 = vadd.f32 %v187_v55, %v176_v31 }
 0x156   :  { %v221_v23 = vadd.f32 %v191_v56, %v177_v7  ;;  %v222_v33 = vadd.f32 %v195_v57, %v178_v8  ;;  %v223_v34 = vadd.f32 %v199_v58, %v179_v32 }
 0x157   :  { %v224_v35 = vadd.f32 %v203_v3, %v180_v9  ;;  %v225_v36 = vadd.f32 %v207_v5, %v181_v13 }
 0x158   :  { %v281_v37 = vpack.c.bf16 %v221_v23, %v220_v18  ;;  %v282_v38 = vpack.c.bf16 %v223_v34, %v222_v33 }
 0x159   :  { %v283_v39 = vpack.c.bf16 %v225_v36, %v224_v35 }
 0x15a   :  { %265 = vst [vmem:[%s432_s4 + $0x18] sm:$0xff] %v281_v37  ;;  %266 = vst [vmem:[%s432_s4 + $0x20] sm:$0xff] %v282_v38 }
 0x15b   :  { %267 = vst [vmem:[%s432_s4 + $0x28] sm:$0xff] %v283_v39 }

// kernel: bert_ner_forward.22
= control target key start
LH: loop header
LB: loop body
LE: loop exit
PB: predicated region body
PF: predicated region fallthrough
CT: control target
= control target key end

     0   :  { %s1258_s12 = smov 0   ;;  %s1260_s13 = smov 0   ;;  %s1545_s0 = inlined_call_operand.vmem [shape: bf16[16,768], index: 0, kind: input, shape index: {}]   ;;  %s1546_s1 = inlined_call_operand.vmem [shape: bf16[768,3072], index: 1, kind: input, shape index: {}]   ;;  %s1547_s2 = inlined_call_operand.vmem [shape: f32[1,3072], index: 2, kind: input, shape index: {}]   ;;  %s1548_s3 = inlined_call_operand.vmem [shape: bf16[16,3072], index: 3, kind: output, shape index: {}]  }
   0x1   :  { %s1262_s14 = smov 0   ;;  %s1264_s15 = smov 0  }
   0x2   :  { %s1266_s16 = smov 0   ;;  %s1268_s17 = smov 0  }
   0x3   :  { %s1270_s18 = smov 0   ;;  %s1272_s19 = smov 0  }
   0x4   :  { %s1274_s20 = smov 0   ;;  %s1276_s21 = smov 0  }
   0x5   :  { %s1278_s22 = smov 0  }
   0x6 LB: > { %s936_s23 = sadd.s32 4294967295, %s1235_s22   ;;  %s25_s24 = sadd.s32 1, %s1227_s20  ;;  %s1235_s22 = sphi %s1278_s22, %s13_s22   ;;  %s1231_s21 = sphi %s1276_s21, %s1569_s21   ;;  %s1227_s20 = sphi %s1274_s20, %s1568_s20   ;;  %s1223_s19 = sphi %s1272_s19, %s1567_s19   ;;  %s1219_s18 = sphi %s1270_s18, %s1566_s18   ;;  %s1215_s17 = sphi %s1268_s17, %s1565_s17   ;;  %s1211_s16 = sphi %s1266_s16, %s1564_s16   ;;  %s1207_s15 = sphi %s1264_s15, %s1563_s15   ;;  %s1203_s14 = sphi %s1262_s14, %s1562_s14   ;;  %s1199_s13 = sphi %s1260_s13, %s1561_s13   ;;  %s1195_s12 = sphi %s1258_s12, %s1560_s12  }
   0x7   : > { %p26_p0 = scmp.ge.s32.totalorder %s25_s24, 3  ;;  %s28_s25 = sadd.s32 1, %s1231_s21 }
   0x8   : > { %s41_s26 = sadd.s32 1, %s1215_s17  ;;  %p48_p1 = scmp.ne.s32.totalorder %s1215_s17, %s1211_s16 }
   0x9   : > { %s1571_s24 = smov (%p26_p0, %s25_s24), 0  ;;  %s1573_s25 = smov (!%p26_p0, %s28_s25), %s1231_s21 }
   0xa   : > { %1551 = sst [smem:[#allocation6_spill]] %s1571_s24  ;;  %s37_s27 = ssub.s32 %s1227_s20, %s1571_s24 }
   0xb   : > { %p49_p2 = scmp.eq.s32.totalorder %s1235_s22, 0  ;;  %p30_p3 = scmp.ge.s32.totalorder %s1573_s25, 12 }
   0xc   : > { %p39_p4 = scmp.eq.s32.totalorder %s37_s27, 0  ;;  %s69_s29 = sadd.s32 1, %s1207_s15 }
   0xd   : > { %p1325_p5 = por %p49_p2, %p48_p1  ;;  %s1575_s25 = smov (%p30_p3, %s1573_s25), 0 }
   0xe   : > { %1553 = sst [smem:[#allocation7_spill]] %s1575_s25  ;;  %s65_s4 = ssub.s32 %s1231_s21, %s1575_s25 }
   0xf   : > { %s1333_s30 = scalar_select %p39_p4, %s1215_s17, %s41_s26  }
  0x10   : > { %p76_p6 = scmp.ne.s32.totalorder %s1207_s15, %s1203_s14  ;;  %s66_s5 = sor.u32 %s65_s4, %s37_s27 }
  0x11   : > { %1554 = sst [smem:[#allocation8_spill]] %s1333_s30  ;;  %p121_p7 = scmp.eq.s32.totalorder %s65_s4, 0 }
  0x12   : > { %p67_p8 = scmp.eq.s32.totalorder %s66_s5, 0  ;;  %p1339_p9 = por %p76_p6, %p49_p2 }
  0x13   : > { %s123_s7 = sadd.s32 1, %s1199_s13  ;;  %p133_p10 = scmp.ne.s32.totalorder %s1199_s13, %s1195_s12 }
  0x14   : > { %s1347_s8 = scalar_select %p67_p8, %s1207_s15, %s69_s29  }
  0x15   : > { %s1350_s9 = scalar_select %p121_p7, %s1199_s13, %s123_s7  }
  0x16   : > { %p134_p11 = scmp.eq.s32.totalorder %s936_s23, 35  ;;  %p939_p13 = scmp.ge.s32.totalorder %s1235_s22, 36 }
  0x18   : > { %p1352_p12 = por %p134_p11, %p133_p10  ;;  %156 = sbr.rel (%p939_p13) target bundleno = 78 (0x4e), region = 16 }
  0x1f   : > { %159 = sbr.rel (!%p1325_p5) target bundleno = 38 (0x26), region = 20  ;;  %s161_s11 = sand.u32 (%p1325_p5), 1, %s1215_s17  }
  0x20   : > { %s996_s26 = sshll.u32 (%p1325_p5), %s1227_s20, 3  ;;  %s940_s27 = sshll.u32 (%p1325_p5), %s161_s11, 4 }
  0x21   : > { %s169_s5 = scalar_lea.vmem (%p1325_p5), %s1545_s0, %s996_s26  ;;  %s163_s23 = scalar_lea.vmem (%p1325_p5), [#allocation3], %s940_s27 }
  0x22   : > { %v199_v0 = vld [vmem:[%s169_s5] sm:$0xff] (%p1325_p5)  ;;  %v201_v1 = vld [vmem:[%s169_s5 + $0x18] sm:$0xff] (%p1325_p5) }
  0x23   : > { %200 = vst [vmem:[%s163_s23] sm:$0xff] (%p1325_p5), %v199_v0  ;;  %202 = vst [vmem:[%s163_s23 + $0x8] sm:$0xff] (%p1325_p5), %v201_v1 }
  0x26 PF: > { %208 = sbr.rel (!%p1339_p9) target bundleno = 78 (0x4e), region = 58  ;;  %s210_s28 = sand.u32 (%p1339_p9), 1, %s1207_s15  }
  0x27   : > { %s945_s7 = sshll.u32 (%p1339_p9), %s1231_s21, 1  ;;  %s943_s25 = sshll.u32 (%p1339_p9), %s210_s28, 8 }
  0x28   : > { %s1000_s11 = smul.u32 (%p1339_p9), 768, %s1227_s20  ;;  %s1377_s6 = scalar_lea.vmem (%p1339_p9), [#allocation4], %s943_s25 }
  0x2a   : > { %s216_s24 = sadd.s32 (%p1339_p9), %s1000_s11, %s945_s7 }
  0x2b   : > { %s947_s30 = sshll.u32 (%p1339_p9), %s216_s24, 2 }
  0x2c   : > { %s1372_s4 = scalar_lea.vmem (%p1339_p9), %s1546_s1, %s947_s30 }
  0x2d   : > { %v308_v2 = vld [vmem:[%s1372_s4] sm:$0xff] }
  0x2e   : > { %v310_v3 = vld [vmem:[%s1372_s4 + $0x60] sm:$0xff]  ;;  %309 = vst [vmem:[%s1377_s6] sm:$0xff] %v308_v2 }
  0x2f   : > { %v312_v4 = vld [vmem:[%s1372_s4 + $0xc0] sm:$0xff]  ;;  %311 = vst [vmem:[%s1377_s6 + $0x8] sm:$0xff] %v310_v3 }
  0x30   : > { %313 = vst [vmem:[%s1377_s6 + $0x10] sm:$0xff] %v312_v4  ;;  %v314_v5 = vld [vmem:[%s1372_s4 + $0x120] sm:$0xff] }
  0x31   : > { %v316_v6 = vld [vmem:[%s1372_s4 + $0x180] sm:$0xff]  ;;  %315 = vst [vmem:[%s1377_s6 + $0x18] sm:$0xff] %v314_v5 }
  0x32   : > { %v318_v7 = vld [vmem:[%s1372_s4 + $0x1e0] sm:$0xff]  ;;  %317 = vst [vmem:[%s1377_s6 + $0x20] sm:$0xff] %v316_v6 }
  0x33   : > { %319 = vst [vmem:[%s1377_s6 + $0x28] sm:$0xff] %v318_v7  ;;  %v320_v8 = vld [vmem:[%s1372_s4 + $0x240] sm:$0xff] }
  0x34   : > { %v322_v9 = vld [vmem:[%s1372_s4 + $0x2a0] sm:$0xff]  ;;  %321 = vst [vmem:[%s1377_s6 + $0x30] sm:$0xff] %v320_v8 }
  0x35   : > { %v324_v10 = vld [vmem:[%s1372_s4 + $0x300] sm:$0xff]  ;;  %323 = vst [vmem:[%s1377_s6 + $0x38] sm:$0xff] %v322_v9 }
  0x36   : > { %325 = vst [vmem:[%s1377_s6 + $0x40] sm:$0xff] %v324_v10  ;;  %v326_v11 = vld [vmem:[%s1372_s4 + $0x360] sm:$0xff] }
  0x37   : > { %v328_v12 = vld [vmem:[%s1372_s4 + $0x3c0] sm:$0xff]  ;;  %327 = vst [vmem:[%s1377_s6 + $0x48] sm:$0xff] %v326_v11 }
  0x38   : > { %v330_v13 = vld [vmem:[%s1372_s4 + $0x420] sm:$0xff]  ;;  %329 = vst [vmem:[%s1377_s6 + $0x50] sm:$0xff] %v328_v12 }
  0x39   : > { %331 = vst [vmem:[%s1377_s6 + $0x58] sm:$0xff] %v330_v13  ;;  %v332_v14 = vld [vmem:[%s1372_s4 + $0x480] sm:$0xff] }
  0x3a   : > { %v334_v15 = vld [vmem:[%s1372_s4 + $0x4e0] sm:$0xff]  ;;  %333 = vst [vmem:[%s1377_s6 + $0x60] sm:$0xff] %v332_v14 }
  0x3b   : > { %v336_v16 = vld [vmem:[%s1372_s4 + $0x540] sm:$0xff]  ;;  %335 = vst [vmem:[%s1377_s6 + $0x68] sm:$0xff] %v334_v15 }
  0x3c   : > { %337 = vst [vmem:[%s1377_s6 + $0x70] sm:$0xff] %v336_v16  ;;  %v338_v17 = vld [vmem:[%s1372_s4 + $0x5a0] sm:$0xff] }
  0x3d   : > { %v340_v18 = vld [vmem:[%s1372_s4 + $0x600] sm:$0xff]  ;;  %339 = vst [vmem:[%s1377_s6 + $0x78] sm:$0xff] %v338_v17 }
  0x3e   : > { %v342_v19 = vld [vmem:[%s1372_s4 + $0x660] sm:$0xff]  ;;  %341 = vst [vmem:[%s1377_s6 + $0x80] sm:$0xff] %v340_v18 }
  0x3f   : > { %343 = vst [vmem:[%s1377_s6 + $0x88] sm:$0xff] %v342_v19  ;;  %v344_v20 = vld [vmem:[%s1372_s4 + $0x6c0] sm:$0xff] }
  0x40   : > { %v346_v21 = vld [vmem:[%s1372_s4 + $0x720] sm:$0xff]  ;;  %345 = vst [vmem:[%s1377_s6 + $0x90] sm:$0xff] %v344_v20 }
  0x41   : > { %v348_v22 = vld [vmem:[%s1372_s4 + $0x780] sm:$0xff]  ;;  %347 = vst [vmem:[%s1377_s6 + $0x98] sm:$0xff] %v346_v21 }
  0x42   : > { %349 = vst [vmem:[%s1377_s6 + $0xa0] sm:$0xff] %v348_v22  ;;  %v350_v23 = vld [vmem:[%s1372_s4 + $0x7e0] sm:$0xff] }
  0x43   : > { %v352_v24 = vld [vmem:[%s1372_s4 + $0x840] sm:$0xff]  ;;  %351 = vst [vmem:[%s1377_s6 + $0xa8] sm:$0xff] %v350_v23 }
  0x44   : > { %v354_v25 = vld [vmem:[%s1372_s4 + $0x8a0] sm:$0xff]  ;;  %353 = vst [vmem:[%s1377_s6 + $0xb0] sm:$0xff] %v352_v24 }
  0x45   : > { %355 = vst [vmem:[%s1377_s6 + $0xb8] sm:$0xff] %v354_v25  ;;  %v356_v26 = vld [vmem:[%s1372_s4 + $0x900] sm:$0xff] }
  0x46   : > { %v358_v27 = vld [vmem:[%s1372_s4 + $0x960] sm:$0xff]  ;;  %357 = vst [vmem:[%s1377_s6 + $0xc0] sm:$0xff] %v356_v26 }
  0x47   : > { %v360_v28 = vld [vmem:[%s1372_s4 + $0x9c0] sm:$0xff]  ;;  %359 = vst [vmem:[%s1377_s6 + $0xc8] sm:$0xff] %v358_v27 }
  0x48   : > { %361 = vst [vmem:[%s1377_s6 + $0xd0] sm:$0xff] %v360_v28  ;;  %v362_v29 = vld [vmem:[%s1372_s4 + $0xa20] sm:$0xff] }
  0x49   : > { %v364_v30 = vld [vmem:[%s1372_s4 + $0xa80] sm:$0xff]  ;;  %363 = vst [vmem:[%s1377_s6 + $0xd8] sm:$0xff] %v362_v29 }
  0x4a   : > { %v366_v31 = vld [vmem:[%s1372_s4 + $0xae0] sm:$0xff]  ;;  %365 = vst [vmem:[%s1377_s6 + $0xe0] sm:$0xff] %v364_v30 }
  0x4b   : > { %367 = vst [vmem:[%s1377_s6 + $0xe8] sm:$0xff] %v366_v31  ;;  %v368_v32 = vld [vmem:[%s1372_s4 + $0xb40] sm:$0xff] }
  0x4c   : > { %v370_v33 = vld [vmem:[%s1372_s4 + $0xba0] sm:$0xff]  ;;  %369 = vst [vmem:[%s1377_s6 + $0xf0] sm:$0xff] %v368_v32 }
  0x4d   : > { %371 = vst [vmem:[%s1377_s6 + $0xf8] sm:$0xff] %v370_v33 }
  0x4e PF: > { %p948_p0 = scmp.ge.s32.totalorder %s1235_s22, 1  ;;  %p384_p1 = scmp.lt.s32.totalorder %s1235_s22, 37 }
  0x50   : > { %p385_p2 = pnand %p948_p0, %p384_p1 }
  0x51   : > { %s391_s24 = sand.u32 (!%p385_p2), 1, %s1211_s16   ;;  %s398_s25 = sand.u32 (!%p385_p2), 1, %s1203_s14  }
  0x52   : > { %388 = sbr.rel (%p385_p2) target bundleno = 424 (0x1a8), region = 100  ;;  %s1444_s30 = sshll.u32 (!%p385_p2), %s391_s24, 4 }
  0x53   : > { %s950_s27 = sshll.u32 (!%p385_p2), %s398_s25, 8  ;;  %s425_s5 = sand.u32 (!%p385_p2), 1, %s1195_s12  }
  0x54   : > { %s952_s23 = sshll.u32 (!%p385_p2), %s1223_s19, 1  ;;  %s951_s28 = sshll.u32 (!%p385_p2), %s425_s5, 4 }
  0x55   : > { %p433_p3 = scmp.lt.s32.totalorder (!%p385_p2), %s952_s23, 23  ;;  %s393_s26 = scalar_lea.vmem (!%p385_p2), [#allocation3], %s1444_s30 }
  0x56   : > { %s1455_s4 = scalar_lea.vmem (!%p385_p2), [#allocation4], %s950_s27  ;;  %s1457_s16 = scalar_lea.vmem (!%p385_p2), [#allocation5], %s951_s28 }
  0x57   : > { %p953_p4 = scmp.ne.s32.totalorder (!%p385_p2), %s1219_s18, 0 }
  0x59   : > { %s1577_s23 = smov (!%p433_p3, %s952_s23), 23  ;;  %442 = sbr.rel (%p953_p4) target bundleno = 96 (0x60), region = 112 }
  0x5a   : > { %s435_s29 = scalar_lea.vmem %s1547_s2, %s1577_s23  ;;  %v1237_v34 = vmov (!%p953_p4), 0.0  }
  0x5b   : > { %443 = vst [vmem:[#allocation2] sm:$0xff] (!%p953_p4), %v1237_v34  ;;  %444 = vst [vmem:[#allocation2 + $0x8] sm:$0xff] (!%p953_p4), %v1237_v34 }
  0x5c   : > { %445 = vst [vmem:[#allocation2 + $0x10] sm:$0xff] (!%p953_p4), %v1237_v34  ;;  %446 = vst [vmem:[#allocation2 + $0x18] sm:$0xff] (!%p953_p4), %v1237_v34 }
  0x60 PF: > { %v1090_v35 = vld [vmem:[%s1455_s4 + $0x4] ss:$8 sps:$4 sm:$0xff]   ;;  %v1092_v36 = vld [vmem:[%s1455_s4] ss:$8 sps:$4 sm:$0xff]   ;;  %v1093_v37 = vld [vmem:[%s1455_s4 + $0x14] ss:$8 sps:$4 sm:$0xff]  }
  0x61   : > { %655 = vmatprep.subr.bf16.mxu0 %v1090_v35  ;;  %v1095_v38 = vld [vmem:[%s1455_s4 + $0x10] ss:$8 sps:$4 sm:$0xff]   ;;  %v1096_v39 = vld [vmem:[%s1455_s4 + $0x24] ss:$8 sps:$4 sm:$0xff]   ;;  %v1098_v40 = vld [vmem:[%s1455_s4 + $0x20] ss:$8 sps:$4 sm:$0xff]  }
  0x62   : > { %656 = vmatpush1.bf16.msra.mxu0 %v1092_v36  ;;  %v1099_v41 = vld [vmem:[%s1455_s4 + $0x34] ss:$8 sps:$4 sm:$0xff]   ;;  %v1101_v42 = vld [vmem:[%s1455_s4 + $0x30] ss:$8 sps:$4 sm:$0xff]   ;;  %v1102_v43 = vld [vmem:[%s1455_s4 + $0x44] ss:$8 sps:$4 sm:$0xff]  }
  0x63   : > { %657 = vmatprep.subr.bf16.mxu0 %v1093_v37  ;;  %v1104_v44 = vld [vmem:[%s1455_s4 + $0x40] ss:$8 sps:$4 sm:$0xff]   ;;  %v1105_v45 = vld [vmem:[%s1455_s4 + $0x54] ss:$8 sps:$4 sm:$0xff]   ;;  %v1107_v46 = vld [vmem:[%s1455_s4 + $0x50] ss:$8 sps:$4 sm:$0xff]  }
  0x64   : > { %v1108_v47 = vld [vmem:[%s1455_s4 + $0x64] ss:$8 sps:$4 sm:$0xff]   ;;  %v1110_v49 = vld [vmem:[%s1455_s4 + $0x60] ss:$8 sps:$4 sm:$0xff]   ;;  %v1111_v50 = vld [vmem:[%s1455_s4 + $0x74] ss:$8 sps:$4 sm:$0xff]  }
  0x65   : > { %v1140_v48 = vld [vmem:[%s393_s26 + $0x4] ss:$8 sps:$4 sm:$0xff]   ;;  %v1113_v51 = vld [vmem:[%s1455_s4 + $0x70] ss:$8 sps:$4 sm:$0xff]   ;;  %v1116_v53 = vld [vmem:[%s1455_s4 + $0x80] ss:$8 sps:$4 sm:$0xff]  }
  0x66   : > { %658 = vmatpush1.bf16.msra.mxu0 %v1095_v38  ;;  %687 = vmatprep.mubr.bf16.mxu0 %v1140_v48  ;;  %v1114_v52 = vld [vmem:[%s1455_s4 + $0x84] ss:$8 sps:$4 sm:$0xff]   ;;  %v1117_v54 = vld [vmem:[%s1455_s4 + $0x94] ss:$8 sps:$4 sm:$0xff]   ;;  %v1119_v55 = vld [vmem:[%s1455_s4 + $0x90] ss:$8 sps:$4 sm:$0xff]  }
  0x67   : > { %659 = vmatprep.subr.bf16.mxu0 %v1096_v39  ;;  %v1120_v56 = vld [vmem:[%s1455_s4 + $0xa4] ss:$8 sps:$4 sm:$0xff]   ;;  %v1122_v57 = vld [vmem:[%s1455_s4 + $0xa0] ss:$8 sps:$4 sm:$0xff]   ;;  %v1123_v58 = vld [vmem:[%s1455_s4 + $0xb4] ss:$8 sps:$4 sm:$0xff]  }
  0x68   : > { %v1125_v59 = vld [vmem:[%s1455_s4 + $0xb0] ss:$8 sps:$4 sm:$0xff]   ;;  %v1126_v60 = vld [vmem:[%s1455_s4 + $0xc4] ss:$8 sps:$4 sm:$0xff]   ;;  %v1128_v61 = vld [vmem:[%s1455_s4 + $0xc0] ss:$8 sps:$4 sm:$0xff]  }
  0x69   : > { %v1129_v62 = vld [vmem:[%s1455_s4 + $0xd4] ss:$8 sps:$4 sm:$0xff]   ;;  %v1131_v63 = vld [vmem:[%s1455_s4 + $0xd0] ss:$8 sps:$4 sm:$0xff]   ;;  %v1132_v0 = vld [vmem:[%s1455_s4 + $0xe4] ss:$8 sps:$4 sm:$0xff]  }
  0x6a   : > { %660 = vmatpush1.bf16.msra.mxu0 %v1098_v40  ;;  %v1134_v1 = vld [vmem:[%s1455_s4 + $0xe0] ss:$8 sps:$4 sm:$0xff]   ;;  %v1135_v2 = vld [vmem:[%s1455_s4 + $0xf4] ss:$8 sps:$4 sm:$0xff]   ;;  %v1137_v3 = vld [vmem:[%s1455_s4 + $0xf0] ss:$8 sps:$4 sm:$0xff]  }
  0x6b   : > { %661 = vmatprep.subr.bf16.mxu0 %v1099_v41  ;;  %v1138_v4 = vld [vmem:[%s393_s26] ss:$8 sps:$4 sm:$0xff]   ;;  %p988_p5 = scmp.ne.s32.totalorder %s1219_s18, 2 }
  0x6c   : > { %v447_v5 = vld [vmem:[#allocation2] sm:$0xff]  ;;  %v448_v6 = vld [vmem:[#allocation2 + $0x8] sm:$0xff]  ;;  %v449_v8 = vld [vmem:[#allocation2 + $0x10] sm:$0xff]  ;;  %v716_v17 = vlaneseq (!%p988_p5) }
  0x6d   : > { %v450_v11 = vld [vmem:[#allocation2 + $0x18] sm:$0xff]  ;;  %v714_v19 = vld [vmem:[%s435_s29] sm:$0x3] (!%p988_p5) }
  0x6e   : > { %662 = vmatpush1.bf16.msra.mxu0 %v1101_v42  ;;  %v717_v18 = vshrl.u32 (!%p988_p5), %v716_v17, 7 }
  0x6f   : > { %663 = vmatprep.subr.bf16.mxu0 %v1102_v43 }
  0x70   : > { %v718_v21 = vsub.s32 (!%p988_p5), 0, %v717_v18  ;;  %v722_v22 = vsub.s32 (!%p988_p5), 1, %v717_v18 }
  0x72   : > { %664 = vmatpush1.bf16.msra.mxu0 %v1104_v44  ;;  %v719_v26 = vrot.slane (!%p988_p5), %v714_v19, %v718_v21  ;;  %v723_v27 = vrot.slane (!%p988_p5), %v714_v19, %v722_v22 }
  0x73   : > { %665 = vmatprep.subr.bf16.mxu0 %v1105_v45 }
  0x76   : > { %666 = vmatpush1.bf16.msra.mxu0 %v1107_v46 }
  0x77   : > { %667 = vmatprep.subr.bf16.mxu0 %v1108_v47 }
  0x7a   : > { %668 = vmatpush1.bf16.msra.mxu0 %v1110_v49 }
  0x7b   : > { %669 = vmatprep.subr.bf16.mxu0 %v1111_v50 }
  0x7e   : > { %670 = vmatpush1.bf16.msra.mxu0 %v1113_v51 }
  0x7f   : > { %671 = vmatprep.subr.bf16.mxu0 %v1114_v52 }
  0x82   : > { %672 = vmatpush1.bf16.msra.mxu0 %v1116_v53 }
  0x83   : > { %673 = vmatprep.subr.bf16.mxu0 %v1117_v54 }
  0x86   : > { %674 = vmatpush1.bf16.msra.mxu0 %v1119_v55 }
  0x87   : > { %675 = vmatprep.subr.bf16.mxu0 %v1120_v56 }
  0x8a   : > { %676 = vmatpush1.bf16.msra.mxu0 %v1122_v57 }
  0x8b   : > { %677 = vmatprep.subr.bf16.mxu0 %v1123_v58 }
  0x8e   : > { %678 = vmatpush1.bf16.msra.mxu0 %v1125_v59 }
  0x8f   : > { %679 = vmatprep.subr.bf16.mxu0 %v1126_v60 }
  0x92   : > { %680 = vmatpush1.bf16.msra.mxu0 %v1128_v61 }
  0x93   : > { %681 = vmatprep.subr.bf16.mxu0 %v1129_v62 }
  0x96   : > { %682 = vmatpush1.bf16.msra.mxu0 %v1131_v63 }
  0x97   : > { %683 = vmatprep.subr.bf16.mxu0 %v1132_v0 }
  0x9a   : > { %684 = vmatpush1.bf16.msra.mxu0 %v1134_v1 }
  0x9b   : > { %685 = vmatprep.subr.bf16.mxu0 %v1135_v2 }
  0x9e   : > { %686 = vmatpush1.bf16.msra.mxu0 %v1137_v3 }
  0xa1   : > { %688 = vmatmul.mubr.bf16.vlgmr.msra.gmra.mrb[0].mxu0 %v1138_v4 }
 0x174   : > { %v689_v7 = vpop.f32.mrb[0].mxu0  ;;  %709 = sbr.rel (%p988_p5) target bundleno = 416 (0x1a0), region = 116 }
 0x175   : > { %v698_v9 = vadd.f32 %v689_v7, %v447_v5  ;;  %v691_v10 = vpop.f32.mrb[1].mxu0 }
 0x176   : > { %v699_v12 = vadd.f32 %v691_v10, %v448_v6  ;;  %v693_v13 = vpop.f32.mrb[2].mxu0 }
 0x177   : > { %702 = vst [vmem:[#allocation2] sm:$0xff] %v698_v9  ;;  %v700_v14 = vadd.f32 %v693_v13, %v449_v8  ;;  %v695_v15 = vpop.f32.mrb[3].mxu0 }
 0x178   : > { %703 = vst [vmem:[#allocation2 + $0x8] sm:$0xff] %v699_v12  ;;  %v701_v16 = vadd.f32 %v695_v15, %v450_v11 }
 0x179   : > { %704 = vst [vmem:[#allocation2 + $0x10] sm:$0xff] %v700_v14 }
 0x17a   : > { %705 = vst [vmem:[#allocation2 + $0x18] sm:$0xff] %v701_v16 }
 0x17e   : > { %v710_v20 = vld [vmem:[#allocation2] sm:$0xff] }
 0x17f   : > { %v711_v23 = vld [vmem:[#allocation2 + $0x8] sm:$0xff]  ;;  %v726_v28 = vadd.f32 %v719_v26, %v710_v20 }
 0x180   : > { %v712_v24 = vld [vmem:[#allocation2 + $0x10] sm:$0xff]  ;;  %v727_v29 = vadd.f32 %v723_v27, %v711_v23 }
 0x181   : > { %v713_v25 = vld [vmem:[#allocation2 + $0x18] sm:$0xff]  ;;  %v728_v30 = vadd.f32 %v719_v26, %v712_v24  ;;  %v734_v32 = vmul.f32 0.044715, %v726_v28  ;;  %v730_v52 = vmul.f32 0.5, %v726_v28 }
 0x182   : > { %v729_v31 = vadd.f32 %v723_v27, %v713_v25  ;;  %v735_v33 = vmul.f32 0.044715, %v727_v29  ;;  %v731_v54 = vmul.f32 0.5, %v727_v29 }
 0x183   : > { %v736_v34 = vmul.f32 0.044715, %v728_v30  ;;  %v738_v36 = vmul.f32 %v734_v32, %v726_v28  ;;  %v732_v57 = vmul.f32 0.5, %v728_v30 }
 0x184   : > { %v737_v35 = vmul.f32 0.044715, %v729_v31  ;;  %v739_v37 = vmul.f32 %v735_v33, %v727_v29  ;;  %v733_v60 = vmul.f32 0.5, %v729_v31 }
 0x185   : > { %v740_v38 = vmul.f32 %v736_v34, %v728_v30  ;;  %v742_v40 = vmul.f32 %v738_v36, %v726_v28 }
 0x186   : > { %v741_v39 = vmul.f32 %v737_v35, %v729_v31  ;;  %v743_v41 = vmul.f32 %v739_v37, %v727_v29 }
 0x187   : > { %v744_v42 = vmul.f32 %v740_v38, %v728_v30  ;;  %v746_v44 = vadd.f32 %v742_v40, %v726_v28 }
 0x188   : > { %v745_v43 = vmul.f32 %v741_v39, %v729_v31  ;;  %v747_v45 = vadd.f32 %v743_v41, %v727_v29 }
 0x189   : > { %v748_v46 = vadd.f32 %v744_v42, %v728_v30  ;;  %v750_v48 = vmul.f32 0.7978846, %v746_v44 }
 0x18a   : > { %v749_v47 = vadd.f32 %v745_v43, %v729_v31  ;;  %v751_v49 = vmul.f32 0.7978846, %v747_v45 }
 0x18b   : > { %v752_v50 = vmul.f32 0.7978846, %v748_v46  ;;  %1141 = vtanh.f32 %v750_v48 }
 0x18c   : > { %v753_v51 = vmul.f32 0.7978846, %v749_v47  ;;  %1143 = vtanh.f32 %v751_v49 }
 0x18d   : > { %1145 = vtanh.f32 %v752_v50 }
 0x18e   : > { %1147 = vtanh.f32 %v753_v51 }
 0x195   : > { %v1142_v53 = vpop.eup %1141 }
 0x196   : > { %v1144_v55 = vpop.eup %1143  ;;  %v758_v56 = vadd.f32 1.0, %v1142_v53 }
 0x197   : > { %v1146_v58 = vpop.eup %1145  ;;  %v759_v59 = vadd.f32 1.0, %v1144_v55 }
 0x198   : > { %v1148_v61 = vpop.eup %1147  ;;  %v762_v62 = vmul.f32 %v758_v56, %v730_v52  ;;  %v760_v63 = vadd.f32 1.0, %v1146_v58 }
 0x199   : > { %v763_v0 = vmul.f32 %v759_v59, %v731_v54  ;;  %v761_v1 = vadd.f32 1.0, %v1148_v61 }
 0x19a   : > { %v764_v2 = vmul.f32 %v760_v63, %v732_v57 }
 0x19b   : > { %v997_v3 = vpack.c.bf16 %v763_v0, %v762_v62  ;;  %v765_v4 = vmul.f32 %v761_v1, %v733_v60 }
 0x19d   : > { %778 = vst [vmem:[%s1457_s16] sm:$0xff] %v997_v3  ;;  %v998_v5 = vpack.c.bf16 %v765_v4, %v764_v2 }
 0x19f   : > { %779 = vst [vmem:[%s1457_s16 + $0x8] sm:$0xff] %v998_v5 }
 0x1a0 PF: > { %786 = sbr.rel (!%p1352_p12) target bundleno = 424 (0x1a8), region = 120  ;;  %s999_s18 = sshll.u32 (%p1352_p12), %s1223_s19, 3 }
 0x1a1   : > { %s792_s25 = scalar_lea.vmem (%p1352_p12), %s1548_s3, %s999_s18 }
 0x1a4   : > { %v822_v6 = vld [vmem:[%s1457_s16] sm:$0xff] (%p1352_p12) }
 0x1a5   : > { %823 = vst [vmem:[%s792_s25] sm:$0xff] (%p1352_p12), %v822_v6 }
 0x1a6   : > { %v824_v7 = vld [vmem:[%s1457_s16 + $0x8] sm:$0xff] (%p1352_p12) }
 0x1a7   : > { %825 = vst [vmem:[%s792_s25 + $0x60] sm:$0xff] %v824_v7 }
 0x1a8 PF: > { %s13_s22 = sadd.s32 1, %s1235_s22   ;;  %s1557_s10 = sld [smem:[#allocation8_spill]] }
 0x1a9   : > { %p10_p6 = scmp.ge.s32.totalorder %s13_s22, 38   ;;  %s1558_s30 = sld [smem:[#allocation6_spill]] }
 0x1aa   : > { %s1559_s27 = sld [smem:[#allocation7_spill]]  ;;  %s1560_s12 = smov %s1199_s13 }
 0x1ab   : > { %s1561_s13 = smov %s1350_s9  ;;  %s1562_s14 = smov %s1207_s15 }
 0x1ac   : > { %s1563_s15 = smov %s1347_s8  ;;  %s1564_s16 = smov %s1215_s17 }
 0x1ad   : > { %s1566_s18 = smov %s1227_s20  ;;  %s1567_s19 = smov %s1231_s21 }
 0x1ae   : > { %s1565_s17 = smov %s1557_s10  ;;  %12 = sbr.rel (!%p10_p6) target bundleno = 6 (0x6), region = 200 }
 0x1af   : > { %s1568_s20 = smov %s1558_s30 }
 0x1b0   : > { %s1569_s21 = smov %s1559_s27 }

// kernel: bert_ner_forward.23
= control target key start
LH: loop header
LB: loop body
LE: loop exit
PB: predicated region body
PF: predicated region fallthrough
CT: control target
= control target key end

     0   :  { %s1214_s12 = smov 0   ;;  %s1216_s13 = smov 0   ;;  %s1501_s0 = inlined_call_operand.vmem [shape: bf16[16,3072], index: 0, kind: input, shape index: {}]   ;;  %s1502_s1 = inlined_call_operand.vmem [shape: bf16[3072,768], index: 1, kind: input, shape index: {}]   ;;  %s1503_s2 = inlined_call_operand.vmem [shape: f32[1,768], index: 2, kind: input, shape index: {}]   ;;  %s1504_s3 = inlined_call_operand.vmem [shape: bf16[16,768], index: 3, kind: output, shape index: {}]  }
   0x1   :  { %s1218_s14 = smov 0   ;;  %s1220_s15 = smov 0  }
   0x2   :  { %s1222_s16 = smov 0   ;;  %s1224_s17 = smov 0  }
   0x3   :  { %s1226_s18 = smov 0   ;;  %s1228_s19 = smov 0  }
   0x4   :  { %s1230_s20 = smov 0   ;;  %s1232_s21 = smov 0  }
   0x5   :  { %s1234_s22 = smov 0  }
   0x6 LB: > { %s900_s23 = sadd.s32 4294967295, %s1191_s22   ;;  %s25_s24 = sadd.s32 1, %s1183_s20  ;;  %s1191_s22 = sphi %s1234_s22, %s13_s22   ;;  %s1187_s21 = sphi %s1232_s21, %s1525_s21   ;;  %s1183_s20 = sphi %s1230_s20, %s1524_s20   ;;  %s1179_s19 = sphi %s1228_s19, %s1523_s19   ;;  %s1175_s18 = sphi %s1226_s18, %s1522_s18   ;;  %s1171_s17 = sphi %s1224_s17, %s1521_s17   ;;  %s1167_s16 = sphi %s1222_s16, %s1520_s16   ;;  %s1163_s15 = sphi %s1220_s15, %s1519_s15   ;;  %s1159_s14 = sphi %s1218_s14, %s1518_s14   ;;  %s1155_s13 = sphi %s1216_s13, %s1517_s13   ;;  %s1151_s12 = sphi %s1214_s12, %s1516_s12  }
   0x7   : > { %p26_p0 = scmp.ge.s32.totalorder %s25_s24, 12  ;;  %s28_s25 = sadd.s32 1, %s1187_s21 }
   0x8   : > { %s41_s26 = sadd.s32 1, %s1171_s17  ;;  %p48_p1 = scmp.ne.s32.totalorder %s1171_s17, %s1167_s16 }
   0x9   : > { %s1527_s24 = smov (%p26_p0, %s25_s24), 0  ;;  %s1529_s25 = smov (!%p26_p0, %s28_s25), %s1187_s21 }
   0xa   : > { %1507 = sst [smem:[#allocation6_spill]] %s1527_s24  ;;  %s37_s27 = ssub.s32 %s1183_s20, %s1527_s24 }
   0xb   : > { %p49_p2 = scmp.eq.s32.totalorder %s1191_s22, 0  ;;  %p30_p3 = scmp.ge.s32.totalorder %s1529_s25, 3 }
   0xc   : > { %p39_p4 = scmp.eq.s32.totalorder %s37_s27, 0  ;;  %s69_s29 = sadd.s32 1, %s1163_s15 }
   0xd   : > { %p1281_p5 = por %p49_p2, %p48_p1  ;;  %s1531_s25 = smov (%p30_p3, %s1529_s25), 0 }
   0xe   : > { %1509 = sst [smem:[#allocation7_spill]] %s1531_s25  ;;  %s65_s4 = ssub.s32 %s1187_s21, %s1531_s25 }
   0xf   : > { %s1289_s30 = scalar_select %p39_p4, %s1171_s17, %s41_s26  }
  0x10   : > { %p76_p6 = scmp.ne.s32.totalorder %s1163_s15, %s1159_s14  ;;  %s66_s5 = sor.u32 %s65_s4, %s37_s27 }
  0x11   : > { %1510 = sst [smem:[#allocation8_spill]] %s1289_s30  ;;  %p121_p7 = scmp.eq.s32.totalorder %s65_s4, 0 }
  0x12   : > { %p67_p8 = scmp.eq.s32.totalorder %s66_s5, 0  ;;  %p1295_p9 = por %p76_p6, %p49_p2 }
  0x13   : > { %s123_s7 = sadd.s32 1, %s1155_s13  ;;  %p133_p10 = scmp.ne.s32.totalorder %s1155_s13, %s1151_s12 }
  0x14   : > { %s1303_s8 = scalar_select %p67_p8, %s1163_s15, %s69_s29  }
  0x15   : > { %s1306_s9 = scalar_select %p121_p7, %s1155_s13, %s123_s7  }
  0x16   : > { %p134_p11 = scmp.eq.s32.totalorder %s900_s23, 35  ;;  %p903_p13 = scmp.ge.s32.totalorder %s1191_s22, 36 }
  0x18   : > { %p1308_p12 = por %p134_p11, %p133_p10  ;;  %156 = sbr.rel (%p903_p13) target bundleno = 62 (0x3e), region = 16 }
  0x1f   : > { %159 = sbr.rel (!%p1281_p5) target bundleno = 38 (0x26), region = 20  ;;  %s161_s11 = sand.u32 (%p1281_p5), 1, %s1171_s17  }
  0x20   : > { %s960_s26 = sshll.u32 (%p1281_p5), %s1183_s20, 3  ;;  %s904_s27 = sshll.u32 (%p1281_p5), %s161_s11, 4 }
  0x21   : > { %s169_s5 = scalar_lea.vmem (%p1281_p5), %s1501_s0, %s960_s26  ;;  %s163_s23 = scalar_lea.vmem (%p1281_p5), [#allocation3], %s904_s27 }
  0x22   : > { %v199_v0 = vld [vmem:[%s169_s5] sm:$0xff] (%p1281_p5) }
  0x23   : > { %v201_v1 = vld [vmem:[%s169_s5 + $0x60] sm:$0xff] (%p1281_p5)  ;;  %200 = vst [vmem:[%s163_s23] sm:$0xff] (%p1281_p5), %v199_v0 }
  0x24   : > { %202 = vst [vmem:[%s163_s23 + $0x8] sm:$0xff] (%p1281_p5), %v201_v1 }
  0x26 PF: > { %208 = sbr.rel (!%p1295_p9) target bundleno = 62 (0x3e), region = 58  ;;  %s210_s28 = sand.u32 (%p1295_p9), 1, %s1163_s15  }
  0x27   : > { %s909_s7 = sshll.u32 (%p1295_p9), %s1187_s21, 1  ;;  %s907_s25 = sshll.u32 (%p1295_p9), %s210_s28, 8 }
  0x28   : > { %s964_s11 = smul.u32 (%p1295_p9), 192, %s1183_s20  ;;  %s1333_s6 = scalar_lea.vmem (%p1295_p9), [#allocation4], %s907_s25 }
  0x2a   : > { %s216_s24 = sadd.s32 (%p1295_p9), %s964_s11, %s909_s7 }
  0x2b   : > { %s911_s30 = sshll.u32 (%p1295_p9), %s216_s24, 2 }
  0x2c   : > { %s1328_s4 = scalar_lea.vmem (%p1295_p9), %s1502_s1, %s911_s30 }
  0x2d   : > { %v308_v2 = vld [vmem:[%s1328_s4] sm:$0xff]  ;;  %v310_v3 = vld [vmem:[%s1328_s4 + $0x18] sm:$0xff]  ;;  %v312_v4 = vld [vmem:[%s1328_s4 + $0x30] sm:$0xff] }
  0x2e   : > { %309 = vst [vmem:[%s1333_s6] sm:$0xff] %v308_v2  ;;  %311 = vst [vmem:[%s1333_s6 + $0x8] sm:$0xff] %v310_v3  ;;  %v314_v5 = vld [vmem:[%s1328_s4 + $0x48] sm:$0xff]  ;;  %v316_v6 = vld [vmem:[%s1328_s4 + $0x60] sm:$0xff] }
  0x2f   : > { %313 = vst [vmem:[%s1333_s6 + $0x10] sm:$0xff] %v312_v4  ;;  %v318_v7 = vld [vmem:[%s1328_s4 + $0x78] sm:$0xff]  ;;  %315 = vst [vmem:[%s1333_s6 + $0x18] sm:$0xff] %v314_v5  ;;  %v320_v8 = vld [vmem:[%s1328_s4 + $0x90] sm:$0xff] }
  0x30   : > { %317 = vst [vmem:[%s1333_s6 + $0x20] sm:$0xff] %v316_v6  ;;  %319 = vst [vmem:[%s1333_s6 + $0x28] sm:$0xff] %v318_v7  ;;  %v322_v9 = vld [vmem:[%s1328_s4 + $0xa8] sm:$0xff]  ;;  %v324_v10 = vld [vmem:[%s1328_s4 + $0xc0] sm:$0xff] }
  0x31   : > { %321 = vst [vmem:[%s1333_s6 + $0x30] sm:$0xff] %v320_v8  ;;  %323 = vst [vmem:[%s1333_s6 + $0x38] sm:$0xff] %v322_v9  ;;  %v326_v11 = vld [vmem:[%s1328_s4 + $0xd8] sm:$0xff]  ;;  %v328_v12 = vld [vmem:[%s1328_s4 + $0xf0] sm:$0xff] }
  0x32   : > { %325 = vst [vmem:[%s1333_s6 + $0x40] sm:$0xff] %v324_v10  ;;  %v330_v13 = vld [vmem:[%s1328_s4 + $0x108] sm:$0xff]  ;;  %327 = vst [vmem:[%s1333_s6 + $0x48] sm:$0xff] %v326_v11  ;;  %v332_v14 = vld [vmem:[%s1328_s4 + $0x120] sm:$0xff] }
  0x33   : > { %329 = vst [vmem:[%s1333_s6 + $0x50] sm:$0xff] %v328_v12  ;;  %331 = vst [vmem:[%s1333_s6 + $0x58] sm:$0xff] %v330_v13  ;;  %v334_v15 = vld [vmem:[%s1328_s4 + $0x138] sm:$0xff]  ;;  %v336_v16 = vld [vmem:[%s1328_s4 + $0x150] sm:$0xff] }
  0x34   : > { %333 = vst [vmem:[%s1333_s6 + $0x60] sm:$0xff] %v332_v14  ;;  %335 = vst [vmem:[%s1333_s6 + $0x68] sm:$0xff] %v334_v15  ;;  %v338_v17 = vld [vmem:[%s1328_s4 + $0x168] sm:$0xff]  ;;  %v340_v18 = vld [vmem:[%s1328_s4 + $0x180] sm:$0xff] }
  0x35   : > { %337 = vst [vmem:[%s1333_s6 + $0x70] sm:$0xff] %v336_v16  ;;  %v342_v19 = vld [vmem:[%s1328_s4 + $0x198] sm:$0xff]  ;;  %339 = vst [vmem:[%s1333_s6 + $0x78] sm:$0xff] %v338_v17  ;;  %v344_v20 = vld [vmem:[%s1328_s4 + $0x1b0] sm:$0xff] }
  0x36   : > { %341 = vst [vmem:[%s1333_s6 + $0x80] sm:$0xff] %v340_v18  ;;  %343 = vst [vmem:[%s1333_s6 + $0x88] sm:$0xff] %v342_v19  ;;  %v346_v21 = vld [vmem:[%s1328_s4 + $0x1c8] sm:$0xff]  ;;  %v348_v22 = vld [vmem:[%s1328_s4 + $0x1e0] sm:$0xff] }
  0x37   : > { %345 = vst [vmem:[%s1333_s6 + $0x90] sm:$0xff] %v344_v20  ;;  %347 = vst [vmem:[%s1333_s6 + $0x98] sm:$0xff] %v346_v21  ;;  %v350_v23 = vld [vmem:[%s1328_s4 + $0x1f8] sm:$0xff]  ;;  %v352_v24 = vld [vmem:[%s1328_s4 + $0x210] sm:$0xff] }
  0x38   : > { %349 = vst [vmem:[%s1333_s6 + $0xa0] sm:$0xff] %v348_v22  ;;  %v354_v25 = vld [vmem:[%s1328_s4 + $0x228] sm:$0xff]  ;;  %351 = vst [vmem:[%s1333_s6 + $0xa8] sm:$0xff] %v350_v23  ;;  %v356_v26 = vld [vmem:[%s1328_s4 + $0x240] sm:$0xff] }
  0x39   : > { %353 = vst [vmem:[%s1333_s6 + $0xb0] sm:$0xff] %v352_v24  ;;  %355 = vst [vmem:[%s1333_s6 + $0xb8] sm:$0xff] %v354_v25  ;;  %v358_v27 = vld [vmem:[%s1328_s4 + $0x258] sm:$0xff]  ;;  %v360_v28 = vld [vmem:[%s1328_s4 + $0x270] sm:$0xff] }
  0x3a   : > { %357 = vst [vmem:[%s1333_s6 + $0xc0] sm:$0xff] %v356_v26  ;;  %359 = vst [vmem:[%s1333_s6 + $0xc8] sm:$0xff] %v358_v27  ;;  %v362_v29 = vld [vmem:[%s1328_s4 + $0x288] sm:$0xff]  ;;  %v364_v30 = vld [vmem:[%s1328_s4 + $0x2a0] sm:$0xff] }
  0x3b   : > { %361 = vst [vmem:[%s1333_s6 + $0xd0] sm:$0xff] %v360_v28  ;;  %v366_v31 = vld [vmem:[%s1328_s4 + $0x2b8] sm:$0xff]  ;;  %363 = vst [vmem:[%s1333_s6 + $0xd8] sm:$0xff] %v362_v29  ;;  %v368_v32 = vld [vmem:[%s1328_s4 + $0x2d0] sm:$0xff] }
  0x3c   : > { %365 = vst [vmem:[%s1333_s6 + $0xe0] sm:$0xff] %v364_v30  ;;  %367 = vst [vmem:[%s1333_s6 + $0xe8] sm:$0xff] %v366_v31  ;;  %v370_v33 = vld [vmem:[%s1328_s4 + $0x2e8] sm:$0xff] }
  0x3d   : > { %369 = vst [vmem:[%s1333_s6 + $0xf0] sm:$0xff] %v368_v32  ;;  %371 = vst [vmem:[%s1333_s6 + $0xf8] sm:$0xff] %v370_v33 }
  0x3e PF: > { %p912_p0 = scmp.ge.s32.totalorder %s1191_s22, 1  ;;  %p384_p1 = scmp.lt.s32.totalorder %s1191_s22, 37 }
  0x40   : > { %p385_p2 = pnand %p912_p0, %p384_p1 }
  0x41   : > { %s391_s24 = sand.u32 (!%p385_p2), 1, %s1167_s16   ;;  %s398_s25 = sand.u32 (!%p385_p2), 1, %s1159_s14  }
  0x42   : > { %388 = sbr.rel (%p385_p2) target bundleno = 383 (0x17f), region = 100  ;;  %s1400_s30 = sshll.u32 (!%p385_p2), %s391_s24, 4 }
  0x43   : > { %s914_s27 = sshll.u32 (!%p385_p2), %s398_s25, 8  ;;  %s425_s5 = sand.u32 (!%p385_p2), 1, %s1151_s12  }
  0x44   : > { %s916_s23 = sshll.u32 (!%p385_p2), %s1179_s19, 1  ;;  %s915_s28 = sshll.u32 (!%p385_p2), %s425_s5, 4 }
  0x45   : > { %p433_p3 = scmp.lt.s32.totalorder (!%p385_p2), %s916_s23, 5  ;;  %s393_s26 = scalar_lea.vmem (!%p385_p2), [#allocation3], %s1400_s30 }
  0x46   : > { %s1411_s4 = scalar_lea.vmem (!%p385_p2), [#allocation4], %s914_s27  ;;  %s1413_s16 = scalar_lea.vmem (!%p385_p2), [#allocation5], %s915_s28 }
  0x47   : > { %p917_p4 = scmp.ne.s32.totalorder (!%p385_p2), %s1175_s18, 0 }
  0x49   : > { %s1533_s23 = smov (!%p433_p3, %s916_s23), 5  ;;  %442 = sbr.rel (%p917_p4) target bundleno = 80 (0x50), region = 112 }
  0x4a   : > { %s435_s29 = scalar_lea.vmem %s1503_s2, %s1533_s23  ;;  %v1193_v34 = vmov (!%p917_p4), 0.0  }
  0x4b   : > { %443 = vst [vmem:[#allocation2] sm:$0xff] (!%p917_p4), %v1193_v34  ;;  %444 = vst [vmem:[#allocation2 + $0x8] sm:$0xff] (!%p917_p4), %v1193_v34 }
  0x4c   : > { %445 = vst [vmem:[#allocation2 + $0x10] sm:$0xff] (!%p917_p4), %v1193_v34  ;;  %446 = vst [vmem:[#allocation2 + $0x18] sm:$0xff] (!%p917_p4), %v1193_v34 }
  0x50 PF: > { %v1054_v35 = vld [vmem:[%s1411_s4 + $0x4] ss:$8 sps:$4 sm:$0xff]   ;;  %v1056_v36 = vld [vmem:[%s1411_s4] ss:$8 sps:$4 sm:$0xff]   ;;  %v1057_v37 = vld [vmem:[%s1411_s4 + $0x14] ss:$8 sps:$4 sm:$0xff]  }
  0x51   : > { %655 = vmatprep.subr.bf16.mxu0 %v1054_v35  ;;  %v1059_v38 = vld [vmem:[%s1411_s4 + $0x10] ss:$8 sps:$4 sm:$0xff]   ;;  %v1060_v39 = vld [vmem:[%s1411_s4 + $0x24] ss:$8 sps:$4 sm:$0xff]   ;;  %v1062_v40 = vld [vmem:[%s1411_s4 + $0x20] ss:$8 sps:$4 sm:$0xff]  }
  0x52   : > { %656 = vmatpush1.bf16.msra.mxu0 %v1056_v36  ;;  %v1063_v41 = vld [vmem:[%s1411_s4 + $0x34] ss:$8 sps:$4 sm:$0xff]   ;;  %v1065_v42 = vld [vmem:[%s1411_s4 + $0x30] ss:$8 sps:$4 sm:$0xff]   ;;  %v1066_v43 = vld [vmem:[%s1411_s4 + $0x44] ss:$8 sps:$4 sm:$0xff]  }
  0x53   : > { %657 = vmatprep.subr.bf16.mxu0 %v1057_v37  ;;  %v1068_v44 = vld [vmem:[%s1411_s4 + $0x40] ss:$8 sps:$4 sm:$0xff]   ;;  %v1069_v45 = vld [vmem:[%s1411_s4 + $0x54] ss:$8 sps:$4 sm:$0xff]   ;;  %v1071_v46 = vld [vmem:[%s1411_s4 + $0x50] ss:$8 sps:$4 sm:$0xff]  }
  0x54   : > { %v1072_v47 = vld [vmem:[%s1411_s4 + $0x64] ss:$8 sps:$4 sm:$0xff]   ;;  %v1074_v49 = vld [vmem:[%s1411_s4 + $0x60] ss:$8 sps:$4 sm:$0xff]   ;;  %v1075_v50 = vld [vmem:[%s1411_s4 + $0x74] ss:$8 sps:$4 sm:$0xff]  }
  0x55   : > { %v1104_v48 = vld [vmem:[%s393_s26 + $0x4] ss:$8 sps:$4 sm:$0xff]   ;;  %v1077_v51 = vld [vmem:[%s1411_s4 + $0x70] ss:$8 sps:$4 sm:$0xff]   ;;  %v1080_v53 = vld [vmem:[%s1411_s4 + $0x80] ss:$8 sps:$4 sm:$0xff]  }
  0x56   : > { %658 = vmatpush1.bf16.msra.mxu0 %v1059_v38  ;;  %687 = vmatprep.mubr.bf16.mxu0 %v1104_v48  ;;  %v1078_v52 = vld [vmem:[%s1411_s4 + $0x84] ss:$8 sps:$4 sm:$0xff]   ;;  %v1081_v54 = vld [vmem:[%s1411_s4 + $0x94] ss:$8 sps:$4 sm:$0xff]   ;;  %v1083_v55 = vld [vmem:[%s1411_s4 + $0x90] ss:$8 sps:$4 sm:$0xff]  }
  0x57   : > { %659 = vmatprep.subr.bf16.mxu0 %v1060_v39  ;;  %v1084_v56 = vld [vmem:[%s1411_s4 + $0xa4] ss:$8 sps:$4 sm:$0xff]   ;;  %v1086_v57 = vld [vmem:[%s1411_s4 + $0xa0] ss:$8 sps:$4 sm:$0xff]   ;;  %v1087_v58 = vld [vmem:[%s1411_s4 + $0xb4] ss:$8 sps:$4 sm:$0xff]  }
  0x58   : > { %v1089_v59 = vld [vmem:[%s1411_s4 + $0xb0] ss:$8 sps:$4 sm:$0xff]   ;;  %v1090_v60 = vld [vmem:[%s1411_s4 + $0xc4] ss:$8 sps:$4 sm:$0xff]   ;;  %v1092_v61 = vld [vmem:[%s1411_s4 + $0xc0] ss:$8 sps:$4 sm:$0xff]  }
  0x59   : > { %v1093_v62 = vld [vmem:[%s1411_s4 + $0xd4] ss:$8 sps:$4 sm:$0xff]   ;;  %v1095_v63 = vld [vmem:[%s1411_s4 + $0xd0] ss:$8 sps:$4 sm:$0xff]   ;;  %v1096_v0 = vld [vmem:[%s1411_s4 + $0xe4] ss:$8 sps:$4 sm:$0xff]  }
  0x5a   : > { %660 = vmatpush1.bf16.msra.mxu0 %v1062_v40  ;;  %v1098_v1 = vld [vmem:[%s1411_s4 + $0xe0] ss:$8 sps:$4 sm:$0xff]   ;;  %v1099_v2 = vld [vmem:[%s1411_s4 + $0xf4] ss:$8 sps:$4 sm:$0xff]   ;;  %v1101_v3 = vld [vmem:[%s1411_s4 + $0xf0] ss:$8 sps:$4 sm:$0xff]  }
  0x5b   : > { %661 = vmatprep.subr.bf16.mxu0 %v1063_v41  ;;  %v1102_v4 = vld [vmem:[%s393_s26] ss:$8 sps:$4 sm:$0xff]   ;;  %p952_p5 = scmp.ne.s32.totalorder %s1175_s18, 11 }
  0x5c   : > { %v447_v5 = vld [vmem:[#allocation2] sm:$0xff]  ;;  %v448_v6 = vld [vmem:[#allocation2 + $0x8] sm:$0xff]  ;;  %v449_v8 = vld [vmem:[#allocation2 + $0x10] sm:$0xff]  ;;  %v716_v17 = vlaneseq (!%p952_p5) }
  0x5d   : > { %v450_v11 = vld [vmem:[#allocation2 + $0x18] sm:$0xff]  ;;  %v714_v19 = vld [vmem:[%s435_s29] sm:$0x3] (!%p952_p5) }
  0x5e   : > { %662 = vmatpush1.bf16.msra.mxu0 %v1065_v42  ;;  %v717_v18 = vshrl.u32 (!%p952_p5), %v716_v17, 7 }
  0x5f   : > { %663 = vmatprep.subr.bf16.mxu0 %v1066_v43 }
  0x60   : > { %v718_v21 = vsub.s32 (!%p952_p5), 0, %v717_v18  ;;  %v722_v22 = vsub.s32 (!%p952_p5), 1, %v717_v18 }
  0x62   : > { %664 = vmatpush1.bf16.msra.mxu0 %v1068_v44  ;;  %v719_v26 = vrot.slane (!%p952_p5), %v714_v19, %v718_v21  ;;  %v723_v27 = vrot.slane (!%p952_p5), %v714_v19, %v722_v22 }
  0x63   : > { %665 = vmatprep.subr.bf16.mxu0 %v1069_v45 }
  0x66   : > { %666 = vmatpush1.bf16.msra.mxu0 %v1071_v46 }
  0x67   : > { %667 = vmatprep.subr.bf16.mxu0 %v1072_v47 }
  0x6a   : > { %668 = vmatpush1.bf16.msra.mxu0 %v1074_v49 }
  0x6b   : > { %669 = vmatprep.subr.bf16.mxu0 %v1075_v50 }
  0x6e   : > { %670 = vmatpush1.bf16.msra.mxu0 %v1077_v51 }
  0x6f   : > { %671 = vmatprep.subr.bf16.mxu0 %v1078_v52 }
  0x72   : > { %672 = vmatpush1.bf16.msra.mxu0 %v1080_v53 }
  0x73   : > { %673 = vmatprep.subr.bf16.mxu0 %v1081_v54 }
  0x76   : > { %674 = vmatpush1.bf16.msra.mxu0 %v1083_v55 }
  0x77   : > { %675 = vmatprep.subr.bf16.mxu0 %v1084_v56 }
  0x7a   : > { %676 = vmatpush1.bf16.msra.mxu0 %v1086_v57 }
  0x7b   : > { %677 = vmatprep.subr.bf16.mxu0 %v1087_v58 }
  0x7e   : > { %678 = vmatpush1.bf16.msra.mxu0 %v1089_v59 }
  0x7f   : > { %679 = vmatprep.subr.bf16.mxu0 %v1090_v60 }
  0x82   : > { %680 = vmatpush1.bf16.msra.mxu0 %v1092_v61 }
  0x83   : > { %681 = vmatprep.subr.bf16.mxu0 %v1093_v62 }
  0x86   : > { %682 = vmatpush1.bf16.msra.mxu0 %v1095_v63 }
  0x87   : > { %683 = vmatprep.subr.bf16.mxu0 %v1096_v0 }
  0x8a   : > { %684 = vmatpush1.bf16.msra.mxu0 %v1098_v1 }
  0x8b   : > { %685 = vmatprep.subr.bf16.mxu0 %v1099_v2 }
  0x8e   : > { %686 = vmatpush1.bf16.msra.mxu0 %v1101_v3 }
  0x91   : > { %688 = vmatmul.mubr.bf16.vlgmr.msra.gmra.mrb[0].mxu0 %v1102_v4 }
 0x164   : > { %v689_v7 = vpop.f32.mrb[0].mxu0  ;;  %709 = sbr.rel (%p952_p5) target bundleno = 375 (0x177), region = 116 }
 0x165   : > { %v698_v9 = vadd.f32 %v689_v7, %v447_v5  ;;  %v691_v10 = vpop.f32.mrb[1].mxu0 }
 0x166   : > { %v699_v12 = vadd.f32 %v691_v10, %v448_v6  ;;  %v693_v13 = vpop.f32.mrb[2].mxu0 }
 0x167   : > { %702 = vst [vmem:[#allocation2] sm:$0xff] %v698_v9  ;;  %v700_v14 = vadd.f32 %v693_v13, %v449_v8  ;;  %v695_v15 = vpop.f32.mrb[3].mxu0 }
 0x168   : > { %703 = vst [vmem:[#allocation2 + $0x8] sm:$0xff] %v699_v12  ;;  %v701_v16 = vadd.f32 %v695_v15, %v450_v11 }
 0x169   : > { %704 = vst [vmem:[#allocation2 + $0x10] sm:$0xff] %v700_v14 }
 0x16a   : > { %705 = vst [vmem:[#allocation2 + $0x18] sm:$0xff] %v701_v16 }
 0x16e   : > { %v710_v20 = vld [vmem:[#allocation2] sm:$0xff] }
 0x16f   : > { %v711_v23 = vld [vmem:[#allocation2 + $0x8] sm:$0xff]  ;;  %v726_v28 = vadd.f32 %v719_v26, %v710_v20 }
 0x170   : > { %v712_v24 = vld [vmem:[#allocation2 + $0x10] sm:$0xff]  ;;  %v727_v29 = vadd.f32 %v723_v27, %v711_v23 }
 0x171   : > { %v713_v25 = vld [vmem:[#allocation2 + $0x18] sm:$0xff]  ;;  %v728_v30 = vadd.f32 %v719_v26, %v712_v24 }
 0x172   : > { %v729_v31 = vadd.f32 %v723_v27, %v713_v25  ;;  %v961_v32 = vpack.c.bf16 %v727_v29, %v726_v28 }
 0x174   : > { %v962_v33 = vpack.c.bf16 %v729_v31, %v728_v30  ;;  %742 = vst [vmem:[%s1413_s16] sm:$0xff] %v961_v32 }
 0x176   : > { %743 = vst [vmem:[%s1413_s16 + $0x8] sm:$0xff] %v962_v33 }
 0x177 PF: > { %750 = sbr.rel (!%p1308_p12) target bundleno = 383 (0x17f), region = 120  ;;  %s963_s18 = sshll.u32 (%p1308_p12), %s1179_s19, 3 }
 0x178   : > { %s756_s25 = scalar_lea.vmem (%p1308_p12), %s1504_s3, %s963_s18 }
 0x17b   : > { %v786_v34 = vld [vmem:[%s1413_s16] sm:$0xff] (%p1308_p12) }
 0x17c   : > { %787 = vst [vmem:[%s756_s25] sm:$0xff] (%p1308_p12), %v786_v34 }
 0x17d   : > { %v788_v35 = vld [vmem:[%s1413_s16 + $0x8] sm:$0xff] (%p1308_p12) }
 0x17e   : > { %789 = vst [vmem:[%s756_s25 + $0x18] sm:$0xff] %v788_v35 }
 0x17f PF: > { %s13_s22 = sadd.s32 1, %s1191_s22   ;;  %s1513_s10 = sld [smem:[#allocation8_spill]] }
 0x180   : > { %p10_p6 = scmp.ge.s32.totalorder %s13_s22, 38   ;;  %s1514_s30 = sld [smem:[#allocation6_spill]] }
 0x181   : > { %s1515_s27 = sld [smem:[#allocation7_spill]]  ;;  %s1516_s12 = smov %s1155_s13 }
 0x182   : > { %s1517_s13 = smov %s1306_s9  ;;  %s1518_s14 = smov %s1163_s15 }
 0x183   : > { %s1519_s15 = smov %s1303_s8  ;;  %s1520_s16 = smov %s1171_s17 }
 0x184   : > { %s1522_s18 = smov %s1183_s20  ;;  %s1523_s19 = smov %s1187_s21 }
 0x185   : > { %s1521_s17 = smov %s1513_s10  ;;  %12 = sbr.rel (!%p10_p6) target bundleno = 6 (0x6), region = 200 }
 0x186   : > { %s1524_s20 = smov %s1514_s30 }
 0x187   : > { %s1525_s21 = smov %s1515_s27 }

// kernel: bert_ner_forward.25
= control target key start
LH: loop header
LB: loop body
LE: loop exit
PB: predicated region body
PF: predicated region fallthrough
CT: control target
= control target key end

     0   :  { %s1214_s12 = smov 0   ;;  %s1216_s13 = smov 0   ;;  %s1501_s0 = inlined_call_operand.vmem [shape: bf16[16,768], index: 0, kind: input, shape index: {}]   ;;  %s1502_s1 = inlined_call_operand.vmem [shape: bf16[768,2304], index: 1, kind: input, shape index: {}]   ;;  %s1503_s2 = inlined_call_operand.vmem [shape: f32[1,2304], index: 2, kind: input, shape index: {}]   ;;  %s1504_s3 = inlined_call_operand.vmem [shape: bf16[16,2304], index: 3, kind: output, shape index: {}]  }
   0x1   :  { %s1218_s14 = smov 0   ;;  %s1220_s15 = smov 0  }
   0x2   :  { %s1222_s16 = smov 0   ;;  %s1224_s17 = smov 0  }
   0x3   :  { %s1226_s18 = smov 0   ;;  %s1228_s19 = smov 0  }
   0x4   :  { %s1230_s20 = smov 0   ;;  %s1232_s21 = smov 0  }
   0x5   :  { %s1234_s22 = smov 0  }
   0x6 LB: > { %s900_s23 = sadd.s32 4294967295, %s1191_s22   ;;  %s25_s24 = sadd.s32 1, %s1183_s20  ;;  %s1191_s22 = sphi %s1234_s22, %s13_s22   ;;  %s1187_s21 = sphi %s1232_s21, %s1525_s21   ;;  %s1183_s20 = sphi %s1230_s20, %s1524_s20   ;;  %s1179_s19 = sphi %s1228_s19, %s1523_s19   ;;  %s1175_s18 = sphi %s1226_s18, %s1522_s18   ;;  %s1171_s17 = sphi %s1224_s17, %s1521_s17   ;;  %s1167_s16 = sphi %s1222_s16, %s1520_s16   ;;  %s1163_s15 = sphi %s1220_s15, %s1519_s15   ;;  %s1159_s14 = sphi %s1218_s14, %s1518_s14   ;;  %s1155_s13 = sphi %s1216_s13, %s1517_s13   ;;  %s1151_s12 = sphi %s1214_s12, %s1516_s12  }
   0x7   : > { %p26_p0 = scmp.ge.s32.totalorder %s25_s24, 3  ;;  %s28_s25 = sadd.s32 1, %s1187_s21 }
   0x8   : > { %s41_s26 = sadd.s32 1, %s1171_s17  ;;  %p48_p1 = scmp.ne.s32.totalorder %s1171_s17, %s1167_s16 }
   0x9   : > { %s1527_s24 = smov (%p26_p0, %s25_s24), 0  ;;  %s1529_s25 = smov (!%p26_p0, %s28_s25), %s1187_s21 }
   0xa   : > { %1507 = sst [smem:[#allocation6_spill]] %s1527_s24  ;;  %s37_s27 = ssub.s32 %s1183_s20, %s1527_s24 }
   0xb   : > { %p49_p2 = scmp.eq.s32.totalorder %s1191_s22, 0  ;;  %p30_p3 = scmp.ge.s32.totalorder %s1529_s25, 9 }
   0xc   : > { %p39_p4 = scmp.eq.s32.totalorder %s37_s27, 0  ;;  %s69_s29 = sadd.s32 1, %s1163_s15 }
   0xd   : > { %p1281_p5 = por %p49_p2, %p48_p1  ;;  %s1531_s25 = smov (%p30_p3, %s1529_s25), 0 }
   0xe   : > { %1509 = sst [smem:[#allocation7_spill]] %s1531_s25  ;;  %s65_s4 = ssub.s32 %s1187_s21, %s1531_s25 }
   0xf   : > { %s1289_s30 = scalar_select %p39_p4, %s1171_s17, %s41_s26  }
  0x10   : > { %p76_p6 = scmp.ne.s32.totalorder %s1163_s15, %s1159_s14  ;;  %s66_s5 = sor.u32 %s65_s4, %s37_s27 }
  0x11   : > { %1510 = sst [smem:[#allocation8_spill]] %s1289_s30  ;;  %p121_p7 = scmp.eq.s32.totalorder %s65_s4, 0 }
  0x12   : > { %p67_p8 = scmp.eq.s32.totalorder %s66_s5, 0  ;;  %p1295_p9 = por %p76_p6, %p49_p2 }
  0x13   : > { %s123_s7 = sadd.s32 1, %s1155_s13  ;;  %p133_p10 = scmp.ne.s32.totalorder %s1155_s13, %s1151_s12 }
  0x14   : > { %s1303_s8 = scalar_select %p67_p8, %s1163_s15, %s69_s29  }
  0x15   : > { %s1306_s9 = scalar_select %p121_p7, %s1155_s13, %s123_s7  }
  0x16   : > { %p134_p11 = scmp.eq.s32.totalorder %s900_s23, 26  ;;  %p903_p13 = scmp.ge.s32.totalorder %s1191_s22, 27 }
  0x18   : > { %p1308_p12 = por %p134_p11, %p133_p10  ;;  %156 = sbr.rel (%p903_p13) target bundleno = 62 (0x3e), region = 16 }
  0x1f   : > { %159 = sbr.rel (!%p1281_p5) target bundleno = 38 (0x26), region = 20  ;;  %s161_s11 = sand.u32 (%p1281_p5), 1, %s1171_s17  }
  0x20   : > { %s960_s26 = sshll.u32 (%p1281_p5), %s1183_s20, 3  ;;  %s904_s27 = sshll.u32 (%p1281_p5), %s161_s11, 4 }
  0x21   : > { %s169_s5 = scalar_lea.vmem (%p1281_p5), %s1501_s0, %s960_s26  ;;  %s163_s23 = scalar_lea.vmem (%p1281_p5), [#allocation3], %s904_s27 }
  0x22   : > { %v199_v0 = vld [vmem:[%s169_s5] sm:$0xff] (%p1281_p5)  ;;  %v201_v1 = vld [vmem:[%s169_s5 + $0x18] sm:$0xff] (%p1281_p5) }
  0x23   : > { %200 = vst [vmem:[%s163_s23] sm:$0xff] (%p1281_p5), %v199_v0  ;;  %202 = vst [vmem:[%s163_s23 + $0x8] sm:$0xff] (%p1281_p5), %v201_v1 }
  0x26 PF: > { %208 = sbr.rel (!%p1295_p9) target bundleno = 62 (0x3e), region = 58  ;;  %s210_s28 = sand.u32 (%p1295_p9), 1, %s1163_s15  }
  0x27   : > { %s909_s7 = sshll.u32 (%p1295_p9), %s1187_s21, 1  ;;  %s907_s25 = sshll.u32 (%p1295_p9), %s210_s28, 8 }
  0x28   : > { %s964_s11 = smul.u32 (%p1295_p9), 576, %s1183_s20  ;;  %s1333_s6 = scalar_lea.vmem (%p1295_p9), [#allocation4], %s907_s25 }
  0x2a   : > { %s216_s24 = sadd.s32 (%p1295_p9), %s964_s11, %s909_s7 }
  0x2b   : > { %s911_s30 = sshll.u32 (%p1295_p9), %s216_s24, 2 }
  0x2c   : > { %s1328_s4 = scalar_lea.vmem (%p1295_p9), %s1502_s1, %s911_s30 }
  0x2d   : > { %v308_v2 = vld [vmem:[%s1328_s4] sm:$0xff]  ;;  %v310_v3 = vld [vmem:[%s1328_s4 + $0x48] sm:$0xff]  ;;  %v312_v4 = vld [vmem:[%s1328_s4 + $0x90] sm:$0xff] }
  0x2e   : > { %309 = vst [vmem:[%s1333_s6] sm:$0xff] %v308_v2  ;;  %311 = vst [vmem:[%s1333_s6 + $0x8] sm:$0xff] %v310_v3  ;;  %v314_v5 = vld [vmem:[%s1328_s4 + $0xd8] sm:$0xff]  ;;  %v316_v6 = vld [vmem:[%s1328_s4 + $0x120] sm:$0xff] }
  0x2f   : > { %313 = vst [vmem:[%s1333_s6 + $0x10] sm:$0xff] %v312_v4  ;;  %v318_v7 = vld [vmem:[%s1328_s4 + $0x168] sm:$0xff]  ;;  %315 = vst [vmem:[%s1333_s6 + $0x18] sm:$0xff] %v314_v5  ;;  %v320_v8 = vld [vmem:[%s1328_s4 + $0x1b0] sm:$0xff] }
  0x30   : > { %317 = vst [vmem:[%s1333_s6 + $0x20] sm:$0xff] %v316_v6  ;;  %319 = vst [vmem:[%s1333_s6 + $0x28] sm:$0xff] %v318_v7  ;;  %v322_v9 = vld [vmem:[%s1328_s4 + $0x1f8] sm:$0xff]  ;;  %v324_v10 = vld [vmem:[%s1328_s4 + $0x240] sm:$0xff] }
  0x31   : > { %321 = vst [vmem:[%s1333_s6 + $0x30] sm:$0xff] %v320_v8  ;;  %323 = vst [vmem:[%s1333_s6 + $0x38] sm:$0xff] %v322_v9  ;;  %v326_v11 = vld [vmem:[%s1328_s4 + $0x288] sm:$0xff]  ;;  %v328_v12 = vld [vmem:[%s1328_s4 + $0x2d0] sm:$0xff] }
  0x32   : > { %325 = vst [vmem:[%s1333_s6 + $0x40] sm:$0xff] %v324_v10  ;;  %v330_v13 = vld [vmem:[%s1328_s4 + $0x318] sm:$0xff]  ;;  %327 = vst [vmem:[%s1333_s6 + $0x48] sm:$0xff] %v326_v11  ;;  %v332_v14 = vld [vmem:[%s1328_s4 + $0x360] sm:$0xff] }
  0x33   : > { %329 = vst [vmem:[%s1333_s6 + $0x50] sm:$0xff] %v328_v12  ;;  %331 = vst [vmem:[%s1333_s6 + $0x58] sm:$0xff] %v330_v13  ;;  %v334_v15 = vld [vmem:[%s1328_s4 + $0x3a8] sm:$0xff]  ;;  %v336_v16 = vld [vmem:[%s1328_s4 + $0x3f0] sm:$0xff] }
  0x34   : > { %333 = vst [vmem:[%s1333_s6 + $0x60] sm:$0xff] %v332_v14  ;;  %335 = vst [vmem:[%s1333_s6 + $0x68] sm:$0xff] %v334_v15  ;;  %v338_v17 = vld [vmem:[%s1328_s4 + $0x438] sm:$0xff]  ;;  %v340_v18 = vld [vmem:[%s1328_s4 + $0x480] sm:$0xff] }
  0x35   : > { %337 = vst [vmem:[%s1333_s6 + $0x70] sm:$0xff] %v336_v16  ;;  %v342_v19 = vld [vmem:[%s1328_s4 + $0x4c8] sm:$0xff]  ;;  %339 = vst [vmem:[%s1333_s6 + $0x78] sm:$0xff] %v338_v17  ;;  %v344_v20 = vld [vmem:[%s1328_s4 + $0x510] sm:$0xff] }
  0x36   : > { %341 = vst [vmem:[%s1333_s6 + $0x80] sm:$0xff] %v340_v18  ;;  %343 = vst [vmem:[%s1333_s6 + $0x88] sm:$0xff] %v342_v19  ;;  %v346_v21 = vld [vmem:[%s1328_s4 + $0x558] sm:$0xff]  ;;  %v348_v22 = vld [vmem:[%s1328_s4 + $0x5a0] sm:$0xff] }
  0x37   : > { %345 = vst [vmem:[%s1333_s6 + $0x90] sm:$0xff] %v344_v20  ;;  %347 = vst [vmem:[%s1333_s6 + $0x98] sm:$0xff] %v346_v21  ;;  %v350_v23 = vld [vmem:[%s1328_s4 + $0x5e8] sm:$0xff]  ;;  %v352_v24 = vld [vmem:[%s1328_s4 + $0x630] sm:$0xff] }
  0x38   : > { %349 = vst [vmem:[%s1333_s6 + $0xa0] sm:$0xff] %v348_v22  ;;  %v354_v25 = vld [vmem:[%s1328_s4 + $0x678] sm:$0xff]  ;;  %351 = vst [vmem:[%s1333_s6 + $0xa8] sm:$0xff] %v350_v23  ;;  %v356_v26 = vld [vmem:[%s1328_s4 + $0x6c0] sm:$0xff] }
  0x39   : > { %353 = vst [vmem:[%s1333_s6 + $0xb0] sm:$0xff] %v352_v24  ;;  %355 = vst [vmem:[%s1333_s6 + $0xb8] sm:$0xff] %v354_v25  ;;  %v358_v27 = vld [vmem:[%s1328_s4 + $0x708] sm:$0xff]  ;;  %v360_v28 = vld [vmem:[%s1328_s4 + $0x750] sm:$0xff] }
  0x3a   : > { %357 = vst [vmem:[%s1333_s6 + $0xc0] sm:$0xff] %v356_v26  ;;  %359 = vst [vmem:[%s1333_s6 + $0xc8] sm:$0xff] %v358_v27  ;;  %v362_v29 = vld [vmem:[%s1328_s4 + $0x798] sm:$0xff]  ;;  %v364_v30 = vld [vmem:[%s1328_s4 + $0x7e0] sm:$0xff] }
  0x3b   : > { %361 = vst [vmem:[%s1333_s6 + $0xd0] sm:$0xff] %v360_v28  ;;  %v366_v31 = vld [vmem:[%s1328_s4 + $0x828] sm:$0xff]  ;;  %363 = vst [vmem:[%s1333_s6 + $0xd8] sm:$0xff] %v362_v29  ;;  %v368_v32 = vld [vmem:[%s1328_s4 + $0x870] sm:$0xff] }
  0x3c   : > { %365 = vst [vmem:[%s1333_s6 + $0xe0] sm:$0xff] %v364_v30  ;;  %367 = vst [vmem:[%s1333_s6 + $0xe8] sm:$0xff] %v366_v31  ;;  %v370_v33 = vld [vmem:[%s1328_s4 + $0x8b8] sm:$0xff] }
  0x3d   : > { %369 = vst [vmem:[%s1333_s6 + $0xf0] sm:$0xff] %v368_v32  ;;  %371 = vst [vmem:[%s1333_s6 + $0xf8] sm:$0xff] %v370_v33 }
  0x3e PF: > { %p912_p0 = scmp.ge.s32.totalorder %s1191_s22, 1  ;;  %p384_p1 = scmp.lt.s32.totalorder %s1191_s22, 28 }
  0x40   : > { %p385_p2 = pnand %p912_p0, %p384_p1 }
  0x41   : > { %s391_s24 = sand.u32 (!%p385_p2), 1, %s1167_s16   ;;  %s398_s25 = sand.u32 (!%p385_p2), 1, %s1159_s14  }
  0x42   : > { %388 = sbr.rel (%p385_p2) target bundleno = 383 (0x17f), region = 100  ;;  %s1400_s30 = sshll.u32 (!%p385_p2), %s391_s24, 4 }
  0x43   : > { %s914_s27 = sshll.u32 (!%p385_p2), %s398_s25, 8  ;;  %s425_s5 = sand.u32 (!%p385_p2), 1, %s1151_s12  }
  0x44   : > { %s916_s23 = sshll.u32 (!%p385_p2), %s1179_s19, 1  ;;  %s915_s28 = sshll.u32 (!%p385_p2), %s425_s5, 4 }
  0x45   : > { %p433_p3 = scmp.lt.s32.totalorder (!%p385_p2), %s916_s23, 17  ;;  %s393_s26 = scalar_lea.vmem (!%p385_p2), [#allocation3], %s1400_s30 }
  0x46   : > { %s1411_s4 = scalar_lea.vmem (!%p385_p2), [#allocation4], %s914_s27  ;;  %s1413_s16 = scalar_lea.vmem (!%p385_p2), [#allocation5], %s915_s28 }
  0x47   : > { %p917_p4 = scmp.ne.s32.totalorder (!%p385_p2), %s1175_s18, 0 }
  0x49   : > { %s1533_s23 = smov (!%p433_p3, %s916_s23), 17  ;;  %442 = sbr.rel (%p917_p4) target bundleno = 80 (0x50), region = 112 }
  0x4a   : > { %s435_s29 = scalar_lea.vmem %s1503_s2, %s1533_s23  ;;  %v1193_v34 = vmov (!%p917_p4), 0.0  }
  0x4b   : > { %443 = vst [vmem:[#allocation2] sm:$0xff] (!%p917_p4), %v1193_v34  ;;  %444 = vst [vmem:[#allocation2 + $0x8] sm:$0xff] (!%p917_p4), %v1193_v34 }
  0x4c   : > { %445 = vst [vmem:[#allocation2 + $0x10] sm:$0xff] (!%p917_p4), %v1193_v34  ;;  %446 = vst [vmem:[#allocation2 + $0x18] sm:$0xff] (!%p917_p4), %v1193_v34 }
  0x50 PF: > { %v1054_v35 = vld [vmem:[%s1411_s4 + $0x4] ss:$8 sps:$4 sm:$0xff]   ;;  %v1056_v36 = vld [vmem:[%s1411_s4] ss:$8 sps:$4 sm:$0xff]   ;;  %v1057_v37 = vld [vmem:[%s1411_s4 + $0x14] ss:$8 sps:$4 sm:$0xff]  }
  0x51   : > { %655 = vmatprep.subr.bf16.mxu0 %v1054_v35  ;;  %v1059_v38 = vld [vmem:[%s1411_s4 + $0x10] ss:$8 sps:$4 sm:$0xff]   ;;  %v1060_v39 = vld [vmem:[%s1411_s4 + $0x24] ss:$8 sps:$4 sm:$0xff]   ;;  %v1062_v40 = vld [vmem:[%s1411_s4 + $0x20] ss:$8 sps:$4 sm:$0xff]  }
  0x52   : > { %656 = vmatpush1.bf16.msra.mxu0 %v1056_v36  ;;  %v1063_v41 = vld [vmem:[%s1411_s4 + $0x34] ss:$8 sps:$4 sm:$0xff]   ;;  %v1065_v42 = vld [vmem:[%s1411_s4 + $0x30] ss:$8 sps:$4 sm:$0xff]   ;;  %v1066_v43 = vld [vmem:[%s1411_s4 + $0x44] ss:$8 sps:$4 sm:$0xff]  }
  0x53   : > { %657 = vmatprep.subr.bf16.mxu0 %v1057_v37  ;;  %v1068_v44 = vld [vmem:[%s1411_s4 + $0x40] ss:$8 sps:$4 sm:$0xff]   ;;  %v1069_v45 = vld [vmem:[%s1411_s4 + $0x54] ss:$8 sps:$4 sm:$0xff]   ;;  %v1071_v46 = vld [vmem:[%s1411_s4 + $0x50] ss:$8 sps:$4 sm:$0xff]  }
  0x54   : > { %v1072_v47 = vld [vmem:[%s1411_s4 + $0x64] ss:$8 sps:$4 sm:$0xff]   ;;  %v1074_v49 = vld [vmem:[%s1411_s4 + $0x60] ss:$8 sps:$4 sm:$0xff]   ;;  %v1075_v50 = vld [vmem:[%s1411_s4 + $0x74] ss:$8 sps:$4 sm:$0xff]  }
  0x55   : > { %v1104_v48 = vld [vmem:[%s393_s26 + $0x4] ss:$8 sps:$4 sm:$0xff]   ;;  %v1077_v51 = vld [vmem:[%s1411_s4 + $0x70] ss:$8 sps:$4 sm:$0xff]   ;;  %v1080_v53 = vld [vmem:[%s1411_s4 + $0x80] ss:$8 sps:$4 sm:$0xff]  }
  0x56   : > { %658 = vmatpush1.bf16.msra.mxu0 %v1059_v38  ;;  %687 = vmatprep.mubr.bf16.mxu0 %v1104_v48  ;;  %v1078_v52 = vld [vmem:[%s1411_s4 + $0x84] ss:$8 sps:$4 sm:$0xff]   ;;  %v1081_v54 = vld [vmem:[%s1411_s4 + $0x94] ss:$8 sps:$4 sm:$0xff]   ;;  %v1083_v55 = vld [vmem:[%s1411_s4 + $0x90] ss:$8 sps:$4 sm:$0xff]  }
  0x57   : > { %659 = vmatprep.subr.bf16.mxu0 %v1060_v39  ;;  %v1084_v56 = vld [vmem:[%s1411_s4 + $0xa4] ss:$8 sps:$4 sm:$0xff]   ;;  %v1086_v57 = vld [vmem:[%s1411_s4 + $0xa0] ss:$8 sps:$4 sm:$0xff]   ;;  %v1087_v58 = vld [vmem:[%s1411_s4 + $0xb4] ss:$8 sps:$4 sm:$0xff]  }
  0x58   : > { %v1089_v59 = vld [vmem:[%s1411_s4 + $0xb0] ss:$8 sps:$4 sm:$0xff]   ;;  %v1090_v60 = vld [vmem:[%s1411_s4 + $0xc4] ss:$8 sps:$4 sm:$0xff]   ;;  %v1092_v61 = vld [vmem:[%s1411_s4 + $0xc0] ss:$8 sps:$4 sm:$0xff]  }
  0x59   : > { %v1093_v62 = vld [vmem:[%s1411_s4 + $0xd4] ss:$8 sps:$4 sm:$0xff]   ;;  %v1095_v63 = vld [vmem:[%s1411_s4 + $0xd0] ss:$8 sps:$4 sm:$0xff]   ;;  %v1096_v0 = vld [vmem:[%s1411_s4 + $0xe4] ss:$8 sps:$4 sm:$0xff]  }
  0x5a   : > { %660 = vmatpush1.bf16.msra.mxu0 %v1062_v40  ;;  %v1098_v1 = vld [vmem:[%s1411_s4 + $0xe0] ss:$8 sps:$4 sm:$0xff]   ;;  %v1099_v2 = vld [vmem:[%s1411_s4 + $0xf4] ss:$8 sps:$4 sm:$0xff]   ;;  %v1101_v3 = vld [vmem:[%s1411_s4 + $0xf0] ss:$8 sps:$4 sm:$0xff]  }
  0x5b   : > { %661 = vmatprep.subr.bf16.mxu0 %v1063_v41  ;;  %v1102_v4 = vld [vmem:[%s393_s26] ss:$8 sps:$4 sm:$0xff]   ;;  %p952_p5 = scmp.ne.s32.totalorder %s1175_s18, 2 }
  0x5c   : > { %v447_v5 = vld [vmem:[#allocation2] sm:$0xff]  ;;  %v448_v6 = vld [vmem:[#allocation2 + $0x8] sm:$0xff]  ;;  %v449_v8 = vld [vmem:[#allocation2 + $0x10] sm:$0xff]  ;;  %v716_v17 = vlaneseq (!%p952_p5) }
  0x5d   : > { %v450_v11 = vld [vmem:[#allocation2 + $0x18] sm:$0xff]  ;;  %v714_v19 = vld [vmem:[%s435_s29] sm:$0x3] (!%p952_p5) }
  0x5e   : > { %662 = vmatpush1.bf16.msra.mxu0 %v1065_v42  ;;  %v717_v18 = vshrl.u32 (!%p952_p5), %v716_v17, 7 }
  0x5f   : > { %663 = vmatprep.subr.bf16.mxu0 %v1066_v43 }
  0x60   : > { %v718_v21 = vsub.s32 (!%p952_p5), 0, %v717_v18  ;;  %v722_v22 = vsub.s32 (!%p952_p5), 1, %v717_v18 }
  0x62   : > { %664 = vmatpush1.bf16.msra.mxu0 %v1068_v44  ;;  %v719_v26 = vrot.slane (!%p952_p5), %v714_v19, %v718_v21  ;;  %v723_v27 = vrot.slane (!%p952_p5), %v714_v19, %v722_v22 }
  0x63   : > { %665 = vmatprep.subr.bf16.mxu0 %v1069_v45 }
  0x66   : > { %666 = vmatpush1.bf16.msra.mxu0 %v1071_v46 }
  0x67   : > { %667 = vmatprep.subr.bf16.mxu0 %v1072_v47 }
  0x6a   : > { %668 = vmatpush1.bf16.msra.mxu0 %v1074_v49 }
  0x6b   : > { %669 = vmatprep.subr.bf16.mxu0 %v1075_v50 }
  0x6e   : > { %670 = vmatpush1.bf16.msra.mxu0 %v1077_v51 }
  0x6f   : > { %671 = vmatprep.subr.bf16.mxu0 %v1078_v52 }
  0x72   : > { %672 = vmatpush1.bf16.msra.mxu0 %v1080_v53 }
  0x73   : > { %673 = vmatprep.subr.bf16.mxu0 %v1081_v54 }
  0x76   : > { %674 = vmatpush1.bf16.msra.mxu0 %v1083_v55 }
  0x77   : > { %675 = vmatprep.subr.bf16.mxu0 %v1084_v56 }
  0x7a   : > { %676 = vmatpush1.bf16.msra.mxu0 %v1086_v57 }
  0x7b   : > { %677 = vmatprep.subr.bf16.mxu0 %v1087_v58 }
  0x7e   : > { %678 = vmatpush1.bf16.msra.mxu0 %v1089_v59 }
  0x7f   : > { %679 = vmatprep.subr.bf16.mxu0 %v1090_v60 }
  0x82   : > { %680 = vmatpush1.bf16.msra.mxu0 %v1092_v61 }
  0x83   : > { %681 = vmatprep.subr.bf16.mxu0 %v1093_v62 }
  0x86   : > { %682 = vmatpush1.bf16.msra.mxu0 %v1095_v63 }
  0x87   : > { %683 = vmatprep.subr.bf16.mxu0 %v1096_v0 }
  0x8a   : > { %684 = vmatpush1.bf16.msra.mxu0 %v1098_v1 }
  0x8b   : > { %685 = vmatprep.subr.bf16.mxu0 %v1099_v2 }
  0x8e   : > { %686 = vmatpush1.bf16.msra.mxu0 %v1101_v3 }
  0x91   : > { %688 = vmatmul.mubr.bf16.vlgmr.msra.gmra.mrb[0].mxu0 %v1102_v4 }
 0x164   : > { %v689_v7 = vpop.f32.mrb[0].mxu0  ;;  %709 = sbr.rel (%p952_p5) target bundleno = 375 (0x177), region = 116 }
 0x165   : > { %v698_v9 = vadd.f32 %v689_v7, %v447_v5  ;;  %v691_v10 = vpop.f32.mrb[1].mxu0 }
 0x166   : > { %v699_v12 = vadd.f32 %v691_v10, %v448_v6  ;;  %v693_v13 = vpop.f32.mrb[2].mxu0 }
 0x167   : > { %702 = vst [vmem:[#allocation2] sm:$0xff] %v698_v9  ;;  %v700_v14 = vadd.f32 %v693_v13, %v449_v8  ;;  %v695_v15 = vpop.f32.mrb[3].mxu0 }
 0x168   : > { %703 = vst [vmem:[#allocation2 + $0x8] sm:$0xff] %v699_v12  ;;  %v701_v16 = vadd.f32 %v695_v15, %v450_v11 }
 0x169   : > { %704 = vst [vmem:[#allocation2 + $0x10] sm:$0xff] %v700_v14 }
 0x16a   : > { %705 = vst [vmem:[#allocation2 + $0x18] sm:$0xff] %v701_v16 }
 0x16e   : > { %v710_v20 = vld [vmem:[#allocation2] sm:$0xff] }
 0x16f   : > { %v711_v23 = vld [vmem:[#allocation2 + $0x8] sm:$0xff]  ;;  %v726_v28 = vadd.f32 %v719_v26, %v710_v20 }
 0x170   : > { %v712_v24 = vld [vmem:[#allocation2 + $0x10] sm:$0xff]  ;;  %v727_v29 = vadd.f32 %v723_v27, %v711_v23 }
 0x171   : > { %v713_v25 = vld [vmem:[#allocation2 + $0x18] sm:$0xff]  ;;  %v728_v30 = vadd.f32 %v719_v26, %v712_v24 }
 0x172   : > { %v729_v31 = vadd.f32 %v723_v27, %v713_v25  ;;  %v961_v32 = vpack.c.bf16 %v727_v29, %v726_v28 }
 0x174   : > { %v962_v33 = vpack.c.bf16 %v729_v31, %v728_v30  ;;  %742 = vst [vmem:[%s1413_s16] sm:$0xff] %v961_v32 }
 0x176   : > { %743 = vst [vmem:[%s1413_s16 + $0x8] sm:$0xff] %v962_v33 }
 0x177 PF: > { %750 = sbr.rel (!%p1308_p12) target bundleno = 383 (0x17f), region = 120  ;;  %s963_s18 = sshll.u32 (%p1308_p12), %s1179_s19, 3 }
 0x178   : > { %s756_s25 = scalar_lea.vmem (%p1308_p12), %s1504_s3, %s963_s18 }
 0x17b   : > { %v786_v34 = vld [vmem:[%s1413_s16] sm:$0xff] (%p1308_p12) }
 0x17c   : > { %787 = vst [vmem:[%s756_s25] sm:$0xff] (%p1308_p12), %v786_v34 }
 0x17d   : > { %v788_v35 = vld [vmem:[%s1413_s16 + $0x8] sm:$0xff] (%p1308_p12) }
 0x17e   : > { %789 = vst [vmem:[%s756_s25 + $0x48] sm:$0xff] %v788_v35 }
 0x17f PF: > { %s13_s22 = sadd.s32 1, %s1191_s22   ;;  %s1513_s10 = sld [smem:[#allocation8_spill]] }
 0x180   : > { %p10_p6 = scmp.ge.s32.totalorder %s13_s22, 29   ;;  %s1514_s30 = sld [smem:[#allocation6_spill]] }
 0x181   : > { %s1515_s27 = sld [smem:[#allocation7_spill]]  ;;  %s1516_s12 = smov %s1155_s13 }
 0x182   : > { %s1517_s13 = smov %s1306_s9  ;;  %s1518_s14 = smov %s1163_s15 }
 0x183   : > { %s1519_s15 = smov %s1303_s8  ;;  %s1520_s16 = smov %s1171_s17 }
 0x184   : > { %s1522_s18 = smov %s1183_s20  ;;  %s1523_s19 = smov %s1187_s21 }
 0x185   : > { %s1521_s17 = smov %s1513_s10  ;;  %12 = sbr.rel (!%p10_p6) target bundleno = 6 (0x6), region = 200 }
 0x186   : > { %s1524_s20 = smov %s1514_s30 }
 0x187   : > { %s1525_s21 = smov %s1515_s27 }

// kernel: bert_ner_forward.32
= control target key start
LH: loop header
LB: loop body
LE: loop exit
PB: predicated region body
PF: predicated region fallthrough
CT: control target
= control target key end

     0   :  { %s1218_s12 = smov 0   ;;  %s1220_s13 = smov 0   ;;  %s1505_s0 = inlined_call_operand.vmem [shape: bf16[16,768], index: 0, kind: input, shape index: {}]   ;;  %s1506_s1 = inlined_call_operand.vmem [shape: bf16[768,768], index: 1, kind: input, shape index: {}]   ;;  %s1507_s2 = inlined_call_operand.vmem [shape: f32[1,768], index: 2, kind: input, shape index: {}]   ;;  %s1508_s3 = inlined_call_operand.vmem [shape: bf16[16,768], index: 3, kind: output, shape index: {}]  }
   0x1   :  { %s1222_s14 = smov 0   ;;  %s1224_s15 = smov 0  }
   0x2   :  { %s1226_s16 = smov 0   ;;  %s1228_s17 = smov 0  }
   0x3   :  { %s1230_s18 = smov 0   ;;  %s1232_s19 = smov 0  }
   0x4   :  { %s1234_s20 = smov 0   ;;  %s1236_s21 = smov 0  }
   0x5   :  { %s1238_s22 = smov 0  }
   0x6 LB: > { %s904_s23 = sadd.s32 4294967295, %s1195_s22   ;;  %s25_s24 = sadd.s32 1, %s1187_s20  ;;  %s1195_s22 = sphi %s1238_s22, %s13_s22   ;;  %s1191_s21 = sphi %s1236_s21, %s1529_s21   ;;  %s1187_s20 = sphi %s1234_s20, %s1528_s20   ;;  %s1183_s19 = sphi %s1232_s19, %s1527_s19   ;;  %s1179_s18 = sphi %s1230_s18, %s1526_s18   ;;  %s1175_s17 = sphi %s1228_s17, %s1525_s17   ;;  %s1171_s16 = sphi %s1226_s16, %s1524_s16   ;;  %s1167_s15 = sphi %s1224_s15, %s1523_s15   ;;  %s1163_s14 = sphi %s1222_s14, %s1522_s14   ;;  %s1159_s13 = sphi %s1220_s13, %s1521_s13   ;;  %s1155_s12 = sphi %s1218_s12, %s1520_s12  }
   0x7   : > { %p26_p0 = scmp.ge.s32.totalorder %s25_s24, 3  ;;  %s28_s25 = sadd.s32 1, %s1191_s21 }
   0x8   : > { %s41_s26 = sadd.s32 1, %s1175_s17  ;;  %p48_p1 = scmp.ne.s32.totalorder %s1175_s17, %s1171_s16 }
   0x9   : > { %s1531_s24 = smov (%p26_p0, %s25_s24), 0  ;;  %s1533_s25 = smov (!%p26_p0, %s28_s25), %s1191_s21 }
   0xa   : > { %1511 = sst [smem:[#allocation6_spill]] %s1531_s24  ;;  %s37_s27 = ssub.s32 %s1187_s20, %s1531_s24 }
   0xb   : > { %p49_p2 = scmp.eq.s32.totalorder %s1195_s22, 0  ;;  %p30_p3 = scmp.ge.s32.totalorder %s1533_s25, 3 }
   0xc   : > { %p39_p4 = scmp.eq.s32.totalorder %s37_s27, 0  ;;  %s69_s29 = sadd.s32 1, %s1167_s15 }
   0xd   : > { %p1285_p5 = por %p49_p2, %p48_p1  ;;  %s1535_s25 = smov (%p30_p3, %s1533_s25), 0 }
   0xe   : > { %1513 = sst [smem:[#allocation7_spill]] %s1535_s25  ;;  %s65_s4 = ssub.s32 %s1191_s21, %s1535_s25 }
   0xf   : > { %s1293_s30 = scalar_select %p39_p4, %s1175_s17, %s41_s26  }
  0x10   : > { %p76_p6 = scmp.ne.s32.totalorder %s1167_s15, %s1163_s14  ;;  %s66_s5 = sor.u32 %s65_s4, %s37_s27 }
  0x11   : > { %1514 = sst [smem:[#allocation8_spill]] %s1293_s30  ;;  %p121_p7 = scmp.eq.s32.totalorder %s65_s4, 0 }
  0x12   : > { %p67_p8 = scmp.eq.s32.totalorder %s66_s5, 0  ;;  %p1299_p9 = por %p76_p6, %p49_p2 }
  0x13   : > { %s123_s7 = sadd.s32 1, %s1159_s13  ;;  %p133_p10 = scmp.ne.s32.totalorder %s1159_s13, %s1155_s12 }
  0x14   : > { %s1307_s8 = scalar_select %p67_p8, %s1167_s15, %s69_s29  }
  0x15   : > { %s1310_s9 = scalar_select %p121_p7, %s1159_s13, %s123_s7  }
  0x16   : > { %p134_p11 = scmp.eq.s32.totalorder %s904_s23, 8  ;;  %p907_p13 = scmp.ge.s32.totalorder %s1195_s22, 9 }
  0x18   : > { %p1312_p12 = por %p134_p11, %p133_p10  ;;  %156 = sbr.rel (%p907_p13) target bundleno = 62 (0x3e), region = 16 }
  0x1f   : > { %159 = sbr.rel (!%p1285_p5) target bundleno = 38 (0x26), region = 20  ;;  %s161_s11 = sand.u32 (%p1285_p5), 1, %s1175_s17  }
  0x20   : > { %s964_s26 = sshll.u32 (%p1285_p5), %s1187_s20, 3  ;;  %s908_s27 = sshll.u32 (%p1285_p5), %s161_s11, 4 }
  0x21   : > { %s169_s5 = scalar_lea.vmem (%p1285_p5), %s1505_s0, %s964_s26  ;;  %s163_s23 = scalar_lea.vmem (%p1285_p5), [#allocation3], %s908_s27 }
  0x22   : > { %v199_v0 = vld [vmem:[%s169_s5] sm:$0xff] (%p1285_p5)  ;;  %v201_v1 = vld [vmem:[%s169_s5 + $0x18] sm:$0xff] (%p1285_p5) }
  0x23   : > { %200 = vst [vmem:[%s163_s23] sm:$0xff] (%p1285_p5), %v199_v0  ;;  %202 = vst [vmem:[%s163_s23 + $0x8] sm:$0xff] (%p1285_p5), %v201_v1 }
  0x26 PF: > { %208 = sbr.rel (!%p1299_p9) target bundleno = 62 (0x3e), region = 58  ;;  %s210_s28 = sand.u32 (%p1299_p9), 1, %s1167_s15  }
  0x27   : > { %s913_s7 = sshll.u32 (%p1299_p9), %s1191_s21, 1  ;;  %s911_s25 = sshll.u32 (%p1299_p9), %s210_s28, 8 }
  0x28   : > { %s968_s11 = smul.u32 (%p1299_p9), 192, %s1187_s20  ;;  %s1337_s6 = scalar_lea.vmem (%p1299_p9), [#allocation4], %s911_s25 }
  0x2a   : > { %s216_s24 = sadd.s32 (%p1299_p9), %s968_s11, %s913_s7 }
  0x2b   : > { %s915_s30 = sshll.u32 (%p1299_p9), %s216_s24, 2 }
  0x2c   : > { %s1332_s4 = scalar_lea.vmem (%p1299_p9), %s1506_s1, %s915_s30 }
  0x2d   : > { %v308_v2 = vld [vmem:[%s1332_s4] sm:$0xff]  ;;  %v310_v3 = vld [vmem:[%s1332_s4 + $0x18] sm:$0xff]  ;;  %v312_v4 = vld [vmem:[%s1332_s4 + $0x30] sm:$0xff] }
  0x2e   : > { %309 = vst [vmem:[%s1337_s6] sm:$0xff] %v308_v2  ;;  %311 = vst [vmem:[%s1337_s6 + $0x8] sm:$0xff] %v310_v3  ;;  %v314_v5 = vld [vmem:[%s1332_s4 + $0x48] sm:$0xff]  ;;  %v316_v6 = vld [vmem:[%s1332_s4 + $0x60] sm:$0xff] }
  0x2f   : > { %313 = vst [vmem:[%s1337_s6 + $0x10] sm:$0xff] %v312_v4  ;;  %v318_v7 = vld [vmem:[%s1332_s4 + $0x78] sm:$0xff]  ;;  %315 = vst [vmem:[%s1337_s6 + $0x18] sm:$0xff] %v314_v5  ;;  %v320_v8 = vld [vmem:[%s1332_s4 + $0x90] sm:$0xff] }
  0x30   : > { %317 = vst [vmem:[%s1337_s6 + $0x20] sm:$0xff] %v316_v6  ;;  %319 = vst [vmem:[%s1337_s6 + $0x28] sm:$0xff] %v318_v7  ;;  %v322_v9 = vld [vmem:[%s1332_s4 + $0xa8] sm:$0xff]  ;;  %v324_v10 = vld [vmem:[%s1332_s4 + $0xc0] sm:$0xff] }
  0x31   : > { %321 = vst [vmem:[%s1337_s6 + $0x30] sm:$0xff] %v320_v8  ;;  %323 = vst [vmem:[%s1337_s6 + $0x38] sm:$0xff] %v322_v9  ;;  %v326_v11 = vld [vmem:[%s1332_s4 + $0xd8] sm:$0xff]  ;;  %v328_v12 = vld [vmem:[%s1332_s4 + $0xf0] sm:$0xff] }
  0x32   : > { %325 = vst [vmem:[%s1337_s6 + $0x40] sm:$0xff] %v324_v10  ;;  %v330_v13 = vld [vmem:[%s1332_s4 + $0x108] sm:$0xff]  ;;  %327 = vst [vmem:[%s1337_s6 + $0x48] sm:$0xff] %v326_v11  ;;  %v332_v14 = vld [vmem:[%s1332_s4 + $0x120] sm:$0xff] }
  0x33   : > { %329 = vst [vmem:[%s1337_s6 + $0x50] sm:$0xff] %v328_v12  ;;  %331 = vst [vmem:[%s1337_s6 + $0x58] sm:$0xff] %v330_v13  ;;  %v334_v15 = vld [vmem:[%s1332_s4 + $0x138] sm:$0xff]  ;;  %v336_v16 = vld [vmem:[%s1332_s4 + $0x150] sm:$0xff] }
  0x34   : > { %333 = vst [vmem:[%s1337_s6 + $0x60] sm:$0xff] %v332_v14  ;;  %335 = vst [vmem:[%s1337_s6 + $0x68] sm:$0xff] %v334_v15  ;;  %v338_v17 = vld [vmem:[%s1332_s4 + $0x168] sm:$0xff]  ;;  %v340_v18 = vld [vmem:[%s1332_s4 + $0x180] sm:$0xff] }
  0x35   : > { %337 = vst [vmem:[%s1337_s6 + $0x70] sm:$0xff] %v336_v16  ;;  %v342_v19 = vld [vmem:[%s1332_s4 + $0x198] sm:$0xff]  ;;  %339 = vst [vmem:[%s1337_s6 + $0x78] sm:$0xff] %v338_v17  ;;  %v344_v20 = vld [vmem:[%s1332_s4 + $0x1b0] sm:$0xff] }
  0x36   : > { %341 = vst [vmem:[%s1337_s6 + $0x80] sm:$0xff] %v340_v18  ;;  %343 = vst [vmem:[%s1337_s6 + $0x88] sm:$0xff] %v342_v19  ;;  %v346_v21 = vld [vmem:[%s1332_s4 + $0x1c8] sm:$0xff]  ;;  %v348_v22 = vld [vmem:[%s1332_s4 + $0x1e0] sm:$0xff] }
  0x37   : > { %345 = vst [vmem:[%s1337_s6 + $0x90] sm:$0xff] %v344_v20  ;;  %347 = vst [vmem:[%s1337_s6 + $0x98] sm:$0xff] %v346_v21  ;;  %v350_v23 = vld [vmem:[%s1332_s4 + $0x1f8] sm:$0xff]  ;;  %v352_v24 = vld [vmem:[%s1332_s4 + $0x210] sm:$0xff] }
  0x38   : > { %349 = vst [vmem:[%s1337_s6 + $0xa0] sm:$0xff] %v348_v22  ;;  %v354_v25 = vld [vmem:[%s1332_s4 + $0x228] sm:$0xff]  ;;  %351 = vst [vmem:[%s1337_s6 + $0xa8] sm:$0xff] %v350_v23  ;;  %v356_v26 = vld [vmem:[%s1332_s4 + $0x240] sm:$0xff] }
  0x39   : > { %353 = vst [vmem:[%s1337_s6 + $0xb0] sm:$0xff] %v352_v24  ;;  %355 = vst [vmem:[%s1337_s6 + $0xb8] sm:$0xff] %v354_v25  ;;  %v358_v27 = vld [vmem:[%s1332_s4 + $0x258] sm:$0xff]  ;;  %v360_v28 = vld [vmem:[%s1332_s4 + $0x270] sm:$0xff] }
  0x3a   : > { %357 = vst [vmem:[%s1337_s6 + $0xc0] sm:$0xff] %v356_v26  ;;  %359 = vst [vmem:[%s1337_s6 + $0xc8] sm:$0xff] %v358_v27  ;;  %v362_v29 = vld [vmem:[%s1332_s4 + $0x288] sm:$0xff]  ;;  %v364_v30 = vld [vmem:[%s1332_s4 + $0x2a0] sm:$0xff] }
  0x3b   : > { %361 = vst [vmem:[%s1337_s6 + $0xd0] sm:$0xff] %v360_v28  ;;  %v366_v31 = vld [vmem:[%s1332_s4 + $0x2b8] sm:$0xff]  ;;  %363 = vst [vmem:[%s1337_s6 + $0xd8] sm:$0xff] %v362_v29  ;;  %v368_v32 = vld [vmem:[%s1332_s4 + $0x2d0] sm:$0xff] }
  0x3c   : > { %365 = vst [vmem:[%s1337_s6 + $0xe0] sm:$0xff] %v364_v30  ;;  %367 = vst [vmem:[%s1337_s6 + $0xe8] sm:$0xff] %v366_v31  ;;  %v370_v33 = vld [vmem:[%s1332_s4 + $0x2e8] sm:$0xff] }
  0x3d   : > { %369 = vst [vmem:[%s1337_s6 + $0xf0] sm:$0xff] %v368_v32  ;;  %371 = vst [vmem:[%s1337_s6 + $0xf8] sm:$0xff] %v370_v33 }
  0x3e PF: > { %p916_p0 = scmp.ge.s32.totalorder %s1195_s22, 1  ;;  %p384_p1 = scmp.lt.s32.totalorder %s1195_s22, 10 }
  0x40   : > { %p385_p2 = pnand %p916_p0, %p384_p1 }
  0x41   : > { %s391_s24 = sand.u32 (!%p385_p2), 1, %s1171_s16   ;;  %s398_s25 = sand.u32 (!%p385_p2), 1, %s1163_s14  }
  0x42   : > { %388 = sbr.rel (%p385_p2) target bundleno = 385 (0x181), region = 100  ;;  %s1404_s30 = sshll.u32 (!%p385_p2), %s391_s24, 4 }
  0x43   : > { %s918_s27 = sshll.u32 (!%p385_p2), %s398_s25, 8  ;;  %s425_s5 = sand.u32 (!%p385_p2), 1, %s1155_s12  }
  0x44   : > { %s920_s23 = sshll.u32 (!%p385_p2), %s1183_s19, 1  ;;  %s919_s28 = sshll.u32 (!%p385_p2), %s425_s5, 4 }
  0x45   : > { %p433_p3 = scmp.lt.s32.totalorder (!%p385_p2), %s920_s23, 5  ;;  %s393_s26 = scalar_lea.vmem (!%p385_p2), [#allocation3], %s1404_s30 }
  0x46   : > { %s1415_s4 = scalar_lea.vmem (!%p385_p2), [#allocation4], %s918_s27  ;;  %s1417_s16 = scalar_lea.vmem (!%p385_p2), [#allocation5], %s919_s28 }
  0x47   : > { %p921_p4 = scmp.ne.s32.totalorder (!%p385_p2), %s1179_s18, 0 }
  0x49   : > { %s1537_s23 = smov (!%p433_p3, %s920_s23), 5  ;;  %442 = sbr.rel (%p921_p4) target bundleno = 80 (0x50), region = 112 }
  0x4a   : > { %s435_s29 = scalar_lea.vmem %s1507_s2, %s1537_s23  ;;  %v1197_v34 = vmov (!%p921_p4), 0.0  }
  0x4b   : > { %443 = vst [vmem:[#allocation2] sm:$0xff] (!%p921_p4), %v1197_v34  ;;  %444 = vst [vmem:[#allocation2 + $0x8] sm:$0xff] (!%p921_p4), %v1197_v34 }
  0x4c   : > { %445 = vst [vmem:[#allocation2 + $0x10] sm:$0xff] (!%p921_p4), %v1197_v34  ;;  %446 = vst [vmem:[#allocation2 + $0x18] sm:$0xff] (!%p921_p4), %v1197_v34 }
  0x50 PF: > { %v1058_v35 = vld [vmem:[%s1415_s4 + $0x4] ss:$8 sps:$4 sm:$0xff]   ;;  %v1060_v36 = vld [vmem:[%s1415_s4] ss:$8 sps:$4 sm:$0xff]   ;;  %v1061_v37 = vld [vmem:[%s1415_s4 + $0x14] ss:$8 sps:$4 sm:$0xff]  }
  0x51   : > { %655 = vmatprep.subr.bf16.mxu0 %v1058_v35  ;;  %v1063_v38 = vld [vmem:[%s1415_s4 + $0x10] ss:$8 sps:$4 sm:$0xff]   ;;  %v1064_v39 = vld [vmem:[%s1415_s4 + $0x24] ss:$8 sps:$4 sm:$0xff]   ;;  %v1066_v40 = vld [vmem:[%s1415_s4 + $0x20] ss:$8 sps:$4 sm:$0xff]  }
  0x52   : > { %656 = vmatpush1.bf16.msra.mxu0 %v1060_v36  ;;  %v1067_v41 = vld [vmem:[%s1415_s4 + $0x34] ss:$8 sps:$4 sm:$0xff]   ;;  %v1069_v42 = vld [vmem:[%s1415_s4 + $0x30] ss:$8 sps:$4 sm:$0xff]   ;;  %v1070_v43 = vld [vmem:[%s1415_s4 + $0x44] ss:$8 sps:$4 sm:$0xff]  }
  0x53   : > { %657 = vmatprep.subr.bf16.mxu0 %v1061_v37  ;;  %v1072_v44 = vld [vmem:[%s1415_s4 + $0x40] ss:$8 sps:$4 sm:$0xff]   ;;  %v1073_v45 = vld [vmem:[%s1415_s4 + $0x54] ss:$8 sps:$4 sm:$0xff]   ;;  %v1075_v46 = vld [vmem:[%s1415_s4 + $0x50] ss:$8 sps:$4 sm:$0xff]  }
  0x54   : > { %v1076_v47 = vld [vmem:[%s1415_s4 + $0x64] ss:$8 sps:$4 sm:$0xff]   ;;  %v1078_v49 = vld [vmem:[%s1415_s4 + $0x60] ss:$8 sps:$4 sm:$0xff]   ;;  %v1079_v50 = vld [vmem:[%s1415_s4 + $0x74] ss:$8 sps:$4 sm:$0xff]  }
  0x55   : > { %v1108_v48 = vld [vmem:[%s393_s26 + $0x4] ss:$8 sps:$4 sm:$0xff]   ;;  %v1081_v51 = vld [vmem:[%s1415_s4 + $0x70] ss:$8 sps:$4 sm:$0xff]   ;;  %v1084_v53 = vld [vmem:[%s1415_s4 + $0x80] ss:$8 sps:$4 sm:$0xff]  }
  0x56   : > { %658 = vmatpush1.bf16.msra.mxu0 %v1063_v38  ;;  %687 = vmatprep.mubr.bf16.mxu0 %v1108_v48  ;;  %v1082_v52 = vld [vmem:[%s1415_s4 + $0x84] ss:$8 sps:$4 sm:$0xff]   ;;  %v1085_v54 = vld [vmem:[%s1415_s4 + $0x94] ss:$8 sps:$4 sm:$0xff]   ;;  %v1087_v55 = vld [vmem:[%s1415_s4 + $0x90] ss:$8 sps:$4 sm:$0xff]  }
  0x57   : > { %659 = vmatprep.subr.bf16.mxu0 %v1064_v39  ;;  %v1088_v56 = vld [vmem:[%s1415_s4 + $0xa4] ss:$8 sps:$4 sm:$0xff]   ;;  %v1090_v57 = vld [vmem:[%s1415_s4 + $0xa0] ss:$8 sps:$4 sm:$0xff]   ;;  %v1091_v58 = vld [vmem:[%s1415_s4 + $0xb4] ss:$8 sps:$4 sm:$0xff]  }
  0x58   : > { %v1093_v59 = vld [vmem:[%s1415_s4 + $0xb0] ss:$8 sps:$4 sm:$0xff]   ;;  %v1094_v60 = vld [vmem:[%s1415_s4 + $0xc4] ss:$8 sps:$4 sm:$0xff]   ;;  %v1096_v61 = vld [vmem:[%s1415_s4 + $0xc0] ss:$8 sps:$4 sm:$0xff]  }
  0x59   : > { %v1097_v62 = vld [vmem:[%s1415_s4 + $0xd4] ss:$8 sps:$4 sm:$0xff]   ;;  %v1099_v63 = vld [vmem:[%s1415_s4 + $0xd0] ss:$8 sps:$4 sm:$0xff]   ;;  %v1100_v0 = vld [vmem:[%s1415_s4 + $0xe4] ss:$8 sps:$4 sm:$0xff]  }
  0x5a   : > { %660 = vmatpush1.bf16.msra.mxu0 %v1066_v40  ;;  %v1102_v1 = vld [vmem:[%s1415_s4 + $0xe0] ss:$8 sps:$4 sm:$0xff]   ;;  %v1103_v2 = vld [vmem:[%s1415_s4 + $0xf4] ss:$8 sps:$4 sm:$0xff]   ;;  %v1105_v3 = vld [vmem:[%s1415_s4 + $0xf0] ss:$8 sps:$4 sm:$0xff]  }
  0x5b   : > { %661 = vmatprep.subr.bf16.mxu0 %v1067_v41  ;;  %v1106_v4 = vld [vmem:[%s393_s26] ss:$8 sps:$4 sm:$0xff]   ;;  %p956_p5 = scmp.ne.s32.totalorder %s1179_s18, 2 }
  0x5c   : > { %v447_v5 = vld [vmem:[#allocation2] sm:$0xff]  ;;  %v448_v6 = vld [vmem:[#allocation2 + $0x8] sm:$0xff]  ;;  %v449_v8 = vld [vmem:[#allocation2 + $0x10] sm:$0xff]  ;;  %v716_v17 = vlaneseq (!%p956_p5) }
  0x5d   : > { %v450_v11 = vld [vmem:[#allocation2 + $0x18] sm:$0xff]  ;;  %v714_v19 = vld [vmem:[%s435_s29] sm:$0x3] (!%p956_p5) }
  0x5e   : > { %662 = vmatpush1.bf16.msra.mxu0 %v1069_v42  ;;  %v717_v18 = vshrl.u32 (!%p956_p5), %v716_v17, 7 }
  0x5f   : > { %663 = vmatprep.subr.bf16.mxu0 %v1070_v43 }
  0x60   : > { %v718_v21 = vsub.s32 (!%p956_p5), 0, %v717_v18  ;;  %v722_v22 = vsub.s32 (!%p956_p5), 1, %v717_v18 }
  0x62   : > { %664 = vmatpush1.bf16.msra.mxu0 %v1072_v44  ;;  %v719_v26 = vrot.slane (!%p956_p5), %v714_v19, %v718_v21  ;;  %v723_v27 = vrot.slane (!%p956_p5), %v714_v19, %v722_v22 }
  0x63   : > { %665 = vmatprep.subr.bf16.mxu0 %v1073_v45 }
  0x66   : > { %666 = vmatpush1.bf16.msra.mxu0 %v1075_v46 }
  0x67   : > { %667 = vmatprep.subr.bf16.mxu0 %v1076_v47 }
  0x6a   : > { %668 = vmatpush1.bf16.msra.mxu0 %v1078_v49 }
  0x6b   : > { %669 = vmatprep.subr.bf16.mxu0 %v1079_v50 }
  0x6e   : > { %670 = vmatpush1.bf16.msra.mxu0 %v1081_v51 }
  0x6f   : > { %671 = vmatprep.subr.bf16.mxu0 %v1082_v52 }
  0x72   : > { %672 = vmatpush1.bf16.msra.mxu0 %v1084_v53 }
  0x73   : > { %673 = vmatprep.subr.bf16.mxu0 %v1085_v54 }
  0x76   : > { %674 = vmatpush1.bf16.msra.mxu0 %v1087_v55 }
  0x77   : > { %675 = vmatprep.subr.bf16.mxu0 %v1088_v56 }
  0x7a   : > { %676 = vmatpush1.bf16.msra.mxu0 %v1090_v57 }
  0x7b   : > { %677 = vmatprep.subr.bf16.mxu0 %v1091_v58 }
  0x7e   : > { %678 = vmatpush1.bf16.msra.mxu0 %v1093_v59 }
  0x7f   : > { %679 = vmatprep.subr.bf16.mxu0 %v1094_v60 }
  0x82   : > { %680 = vmatpush1.bf16.msra.mxu0 %v1096_v61 }
  0x83   : > { %681 = vmatprep.subr.bf16.mxu0 %v1097_v62 }
  0x86   : > { %682 = vmatpush1.bf16.msra.mxu0 %v1099_v63 }
  0x87   : > { %683 = vmatprep.subr.bf16.mxu0 %v1100_v0 }
  0x8a   : > { %684 = vmatpush1.bf16.msra.mxu0 %v1102_v1 }
  0x8b   : > { %685 = vmatprep.subr.bf16.mxu0 %v1103_v2 }
  0x8e   : > { %686 = vmatpush1.bf16.msra.mxu0 %v1105_v3 }
  0x91   : > { %688 = vmatmul.mubr.bf16.vlgmr.msra.gmra.mrb[0].mxu0 %v1106_v4 }
 0x164   : > { %v689_v7 = vpop.f32.mrb[0].mxu0  ;;  %709 = sbr.rel (%p956_p5) target bundleno = 377 (0x179), region = 116 }
 0x165   : > { %v698_v9 = vadd.f32 %v689_v7, %v447_v5  ;;  %v691_v10 = vpop.f32.mrb[1].mxu0 }
 0x166   : > { %v699_v12 = vadd.f32 %v691_v10, %v448_v6  ;;  %v693_v13 = vpop.f32.mrb[2].mxu0 }
 0x167   : > { %702 = vst [vmem:[#allocation2] sm:$0xff] %v698_v9  ;;  %v700_v14 = vadd.f32 %v693_v13, %v449_v8  ;;  %v695_v15 = vpop.f32.mrb[3].mxu0 }
 0x168   : > { %703 = vst [vmem:[#allocation2 + $0x8] sm:$0xff] %v699_v12  ;;  %v701_v16 = vadd.f32 %v695_v15, %v450_v11 }
 0x169   : > { %704 = vst [vmem:[#allocation2 + $0x10] sm:$0xff] %v700_v14 }
 0x16a   : > { %705 = vst [vmem:[#allocation2 + $0x18] sm:$0xff] %v701_v16 }
 0x16e   : > { %v710_v20 = vld [vmem:[#allocation2] sm:$0xff] }
 0x16f   : > { %v711_v23 = vld [vmem:[#allocation2 + $0x8] sm:$0xff]  ;;  %v726_v28 = vadd.f32 %v719_v26, %v710_v20 }
 0x170   : > { %v712_v24 = vld [vmem:[#allocation2 + $0x10] sm:$0xff]  ;;  %v727_v29 = vadd.f32 %v723_v27, %v711_v23 }
 0x171   : > { %v713_v25 = vld [vmem:[#allocation2 + $0x18] sm:$0xff]  ;;  %v728_v30 = vadd.f32 %v719_v26, %v712_v24  ;;  %v730_v32 = vmax.f32 %v726_v28, 0.0 }
 0x172   : > { %v729_v31 = vadd.f32 %v723_v27, %v713_v25  ;;  %v731_v33 = vmax.f32 %v727_v29, 0.0 }
 0x173   : > { %v732_v34 = vmax.f32 %v728_v30, 0.0 }
 0x174   : > { %v733_v35 = vmax.f32 %v729_v31, 0.0  ;;  %v965_v36 = vpack.c.bf16 %v731_v33, %v730_v32 }
 0x176   : > { %v966_v37 = vpack.c.bf16 %v733_v35, %v732_v34  ;;  %746 = vst [vmem:[%s1417_s16] sm:$0xff] %v965_v36 }
 0x178   : > { %747 = vst [vmem:[%s1417_s16 + $0x8] sm:$0xff] %v966_v37 }
 0x179 PF: > { %754 = sbr.rel (!%p1312_p12) target bundleno = 385 (0x181), region = 120  ;;  %s967_s18 = sshll.u32 (%p1312_p12), %s1183_s19, 3 }
 0x17a   : > { %s760_s25 = scalar_lea.vmem (%p1312_p12), %s1508_s3, %s967_s18 }
 0x17d   : > { %v790_v38 = vld [vmem:[%s1417_s16] sm:$0xff] (%p1312_p12) }
 0x17e   : > { %791 = vst [vmem:[%s760_s25] sm:$0xff] (%p1312_p12), %v790_v38 }
 0x17f   : > { %v792_v39 = vld [vmem:[%s1417_s16 + $0x8] sm:$0xff] (%p1312_p12) }
 0x180   : > { %793 = vst [vmem:[%s760_s25 + $0x18] sm:$0xff] %v792_v39 }
 0x181 PF: > { %s13_s22 = sadd.s32 1, %s1195_s22   ;;  %s1517_s10 = sld [smem:[#allocation8_spill]] }
 0x182   : > { %p10_p6 = scmp.ge.s32.totalorder %s13_s22, 11   ;;  %s1518_s30 = sld [smem:[#allocation6_spill]] }
 0x183   : > { %s1519_s27 = sld [smem:[#allocation7_spill]]  ;;  %s1520_s12 = smov %s1159_s13 }
 0x184   : > { %s1521_s13 = smov %s1310_s9  ;;  %s1522_s14 = smov %s1167_s15 }
 0x185   : > { %s1523_s15 = smov %s1307_s8  ;;  %s1524_s16 = smov %s1175_s17 }
 0x186   : > { %s1526_s18 = smov %s1187_s20  ;;  %s1527_s19 = smov %s1191_s21 }
 0x187   : > { %s1525_s17 = smov %s1517_s10  ;;  %12 = sbr.rel (!%p10_p6) target bundleno = 6 (0x6), region = 200 }
 0x188   : > { %s1528_s20 = smov %s1518_s30 }
 0x189   : > { %s1529_s21 = smov %s1519_s27 }

// kernel: bert_ner_forward.33
= control target key start
LH: loop header
LB: loop body
LE: loop exit
PB: predicated region body
PF: predicated region fallthrough
CT: control target
= control target key end

     0   :  { %s794_s12 = smov 0   ;;  %s796_s13 = smov 0   ;;  %s895_s0 = inlined_call_operand.vmem [shape: bf16[16,768], index: 0, kind: input, shape index: {}]   ;;  %s896_s1 = inlined_call_operand.vmem [shape: bf16[768,128], index: 1, kind: input, shape index: {}]   ;;  %s897_s2 = inlined_call_operand.vmem [shape: f32[1,128], index: 2, kind: input, shape index: {}]   ;;  %s898_s3 = inlined_call_operand.vmem [shape: f32[16,128], index: 3, kind: output, shape index: {}]  }
   0x1   :  { %s798_s14 = smov 0   ;;  %s800_s15 = smov 0  }
   0x2   :  { %s802_s16 = smov 0  }
   0x3 LB: > { %s25_s17 = sadd.s32 1, %s767_s15  ;;  %p48_p1 = scmp.ne.s32.totalorder %s759_s13, %s755_s12  ;;  %s771_s16 = sphi %s802_s16, %s13_s16   ;;  %s767_s15 = sphi %s800_s15, %s902_s15   ;;  %s763_s14 = sphi %s798_s14, %s901_s14   ;;  %s759_s13 = sphi %s796_s13, %s900_s13   ;;  %s755_s12 = sphi %s794_s12, %s899_s12  }
   0x4   : > { %p26_p0 = scmp.ge.s32.totalorder %s25_s17, 3  ;;  %p49_p2 = scmp.eq.s32.totalorder %s771_s16, 0 }
   0x5   : > { %s41_s19 = sadd.s32 1, %s759_s13  ;;  %p617_p5 = scmp.ge.s32.totalorder %s771_s16, 3 }
   0x6   : > { %s904_s17 = smov (%p26_p0, %s25_s17), 0  ;;  %p50_p3 = por %p49_p2, %p48_p1 }
   0x7   : > { %s37_s18 = ssub.s32 %s767_s15, %s904_s17  ;;  %162 = sbr.rel (%p617_p5) target bundleno = 21 (0x15), region = 20 }
   0x8   : > { %p39_p4 = scmp.eq.s32.totalorder %s37_s18, 0 }
   0xa   : > { %s829_s20 = scalar_select %p39_p4, %s759_s13, %s41_s19  }
   0xe   : > { %165 = sbr.rel (!%p50_p3) target bundleno = 21 (0x15), region = 24  ;;  %s167_s21 = sand.u32 (%p50_p3), 1, %s759_s13  }
   0xf   : > { %s650_s22 = sshll.u32 (%p50_p3), %s767_s15, 3  ;;  %s618_s23 = sshll.u32 (%p50_p3), %s167_s21, 4 }
  0x10   : > { %s175_s26 = scalar_lea.vmem (%p50_p3), %s895_s0, %s650_s22  ;;  %s169_s27 = scalar_lea.vmem (%p50_p3), [#allocation3], %s618_s23 }
  0x11   : > { %v205_v0 = vld [vmem:[%s175_s26] sm:$0xff] (%p50_p3)  ;;  %v207_v1 = vld [vmem:[%s175_s26 + $0x18] sm:$0xff] (%p50_p3) }
  0x12   : > { %206 = vst [vmem:[%s169_s27] sm:$0xff] (%p50_p3), %v205_v0  ;;  %208 = vst [vmem:[%s169_s27 + $0x8] sm:$0xff] (%p50_p3), %v207_v1 }
  0x15 PF: > { %p621_p6 = scmp.ge.s32.totalorder %s771_s16, 1  ;;  %p225_p7 = scmp.lt.s32.totalorder %s771_s16, 4 }
  0x17   : > { %p226_p8 = pnand %p621_p6, %p225_p7 }
  0x18   : > { %s232_s28 = sand.u32 (!%p226_p8), 1, %s755_s12   ;;  %s623_s29 = sshll.u32 (!%p226_p8), %s763_s14, 5 }
  0x19   : > { %229 = sbr.rel (%p226_p8) target bundleno = 302 (0x12e), region = 66  ;;  %s841_s30 = sshll.u32 (!%p226_p8), %s232_s28, 4 }
  0x1a   : > { %p272_p9 = scmp.lt.s32.totalorder (!%p226_p8), %s623_s29, 95  ;;  %s234_s8 = scalar_lea.vmem (!%p226_p8), [#allocation3], %s841_s30 }
  0x1b   : > { %p625_p10 = scmp.ne.s32.totalorder (!%p226_p8), %s763_s14, 0 }
  0x20   : > { %s906_s29 = smov (!%p272_p9, %s623_s29), 95  ;;  %296 = sbr.rel (%p625_p10) target bundleno = 39 (0x27), region = 74 }
  0x21   : > { %s624_s4 = sshll.u32 %s906_s29, 2  ;;  %v773_v2 = vmov (!%p625_p10), 0.0  }
  0x22   : > { %s846_s7 = scalar_lea.vmem %s896_s1, %s624_s4  ;;  %297 = vst [vmem:[#allocation2] sm:$0xff] (!%p625_p10), %v773_v2  ;;  %298 = vst [vmem:[#allocation2 + $0x8] sm:$0xff] (!%p625_p10), %v773_v2 }
  0x27 PF: > { %v714_v3 = vld [vmem:[%s846_s7 + $0x40] sm:$0xff]   ;;  %v716_v5 = vld [vmem:[%s846_s7 + $0x48] sm:$0xff]   ;;  %v718_v7 = vld [vmem:[%s846_s7 + $0x50] sm:$0xff]   ;;  %p644_p11 = scmp.ne.s32.totalorder %s763_s14, 2 }
  0x28   : > { %v715_v4 = vld [vmem:[%s846_s7] sm:$0xff]   ;;  %651 = vmatprep.subr.bf16.mxu0 %v714_v3  ;;  %v717_v6 = vld [vmem:[%s846_s7 + $0x8] sm:$0xff]   ;;  %v719_v8 = vld [vmem:[%s846_s7 + $0x10] sm:$0xff]  }
  0x29   : > { %652 = vmatpush3.bf16.msra.mxu0 %v715_v4  ;;  %v720_v9 = vld [vmem:[%s846_s7 + $0x58] sm:$0xff]   ;;  %v722_v11 = vld [vmem:[%s846_s7 + $0x60] sm:$0xff]   ;;  %v724_v13 = vld [vmem:[%s846_s7 + $0x68] sm:$0xff]  }
  0x2a   : > { %653 = vmatprep.subr.bf16.mxu0 %v716_v5  ;;  %v721_v10 = vld [vmem:[%s846_s7 + $0x18] sm:$0xff]   ;;  %v723_v12 = vld [vmem:[%s846_s7 + $0x20] sm:$0xff]   ;;  %v725_v15 = vld [vmem:[%s846_s7 + $0x28] sm:$0xff]  }
  0x2b   : > { %v732_v14 = vld [vmem:[%s234_s8 + $0x4] ss:$8 sps:$4 sm:$0xff]   ;;  %v730_v20 = vld [vmem:[%s234_s8] ss:$8 sps:$4 sm:$0xff]  }
  0x2c   : > { %473 = vmatprep.mubr.bf16.mxu0 %v732_v14  ;;  %v726_v16 = vld [vmem:[%s846_s7 + $0x70] sm:$0xff]   ;;  %v728_v18 = vld [vmem:[%s846_s7 + $0x78] sm:$0xff]   ;;  %v299_v22 = vld [vmem:[#allocation2] sm:$0xff] }
  0x2d   : > { %654 = vmatpush3.bf16.msra.mxu0 %v717_v6  ;;  %v727_v17 = vld [vmem:[%s846_s7 + $0x30] sm:$0xff]   ;;  %v729_v19 = vld [vmem:[%s846_s7 + $0x38] sm:$0xff]   ;;  %v300_v26 = vld [vmem:[#allocation2 + $0x8] sm:$0xff] }
  0x2e   : > { %655 = vmatprep.subr.bf16.mxu0 %v718_v7  ;;  %v645_v32 = vld [vmem:[%s897_s2] ss:$0 sm:$0xff] (!%p644_p11) }
  0x31   : > { %656 = vmatpush3.bf16.msra.mxu0 %v719_v8 }
  0x32   : > { %657 = vmatprep.subr.bf16.mxu0 %v720_v9 }
  0x35   : > { %658 = vmatpush3.bf16.msra.mxu0 %v721_v10 }
  0x36   : > { %659 = vmatprep.subr.bf16.mxu0 %v722_v11 }
  0x39   : > { %660 = vmatpush3.bf16.msra.mxu0 %v723_v12 }
  0x3a   : > { %661 = vmatprep.subr.bf16.mxu0 %v724_v13 }
  0x3d   : > { %662 = vmatpush3.bf16.msra.mxu0 %v725_v15 }
  0x3e   : > { %663 = vmatprep.subr.bf16.mxu0 %v726_v16 }
  0x41   : > { %664 = vmatpush3.bf16.msra.mxu0 %v727_v17 }
  0x42   : > { %665 = vmatprep.subr.bf16.mxu0 %v728_v18 }
  0x45   : > { %666 = vmatpush3.bf16.msra.mxu0 %v729_v19 }
  0x48   : > { %474 = vmatmul.mubr.bf16.vlgmr.msra.gmra.mrb[0].mxu0 %v730_v20 }
 0x11b   : > { %v667_v21 = vpop.f32.mrb[0].mxu0 }
 0x11c   : > { %v668_v23 = vpop.f32.mrb[1].mxu0 }
 0x11d   : > { %v669_v24 = vadd.f32 %v668_v23, %v667_v21  ;;  %v670_v25 = vpop.f32.mrb[2].mxu0  ;;  %489 = sbr.rel (%p644_p11) target bundleno = 302 (0x12e), region = 78 }
 0x11e   : > { %v671_v27 = vpop.f32.mrb[3].mxu0 }
 0x11f   : > { %v482_v28 = vadd.f32 %v669_v24, %v299_v22  ;;  %v672_v29 = vadd.f32 %v671_v27, %v670_v25 }
 0x121   : > { %484 = vst [vmem:[#allocation2] sm:$0xff] %v482_v28  ;;  %v483_v30 = vadd.f32 %v672_v29, %v300_v26 }
 0x123   : > { %485 = vst [vmem:[#allocation2 + $0x8] sm:$0xff] %v483_v30 }
 0x128   : > { %v490_v31 = vld [vmem:[#allocation2] sm:$0xff] }
 0x129   : > { %v499_v34 = vadd.f32 %v645_v32, %v490_v31 }
 0x12a   : > { %v491_v33 = vld [vmem:[#allocation2 + $0x8] sm:$0xff] }
 0x12b   : > { %v500_v35 = vadd.f32 %v645_v32, %v491_v33  ;;  %501 = vst [vmem:[%s898_s3] sm:$0xff] %v499_v34 }
 0x12d   : > { %502 = vst [vmem:[%s898_s3 + $0x8] sm:$0xff] %v500_v35 }
 0x12e PF: > { %s13_s16 = sadd.s32 1, %s771_s16   ;;  %s899_s12 = smov %s759_s13 }
 0x12f   : > { %p10_p12 = scmp.ge.s32.totalorder %s13_s16, 5   ;;  %s900_s13 = smov %s829_s20 }
 0x130   : > { %s901_s14 = smov %s767_s15  ;;  %s902_s15 = smov %s904_s17 }
 0x131   :  { %12 = sbr.rel (!%p10_p12) target bundleno = 3 (0x3), region = 119 }

</bundles_post_ra>
